<compile_context>
chip_gen: v5e
topology: v5e:2x2
jax: 0.10.0
libtpu: 0.0.40
codegen_flags: <defaults>
</compile_context>

<pallas_src>
import functools

import jax
import jax.numpy as jnp
from jax.experimental import pallas as pl
from jax.experimental.pallas import tpu as pltpu


# ------------------------------ fused kernel --------------------------------

def _fused_kernel(xp_ref, q_ref, wr_ref, wkv_ref, wout_ref, g_ref, b_ref,
                  mask_ref, o_ref, col_ref, feat_ref, kv_ref, xn_ref,
                  *, B, H, W, P):
    Cin = xp_ref.shape[0]
    hid = wr_ref.shape[0]
    L = B * P
    Wp = W + 2
    # tap t = kh*3+kw reads the padded input at lane p + (kh-1)*Wp + (kw-1)
    taps = [(kh - 1) * Wp + (kw - 1) for kh in range(3) for kw in range(3)]
    scale = 1.0 / float(hid) ** 0.5
    inv_n = 1.0 / float(hid * H * W)          # true GroupNorm element count

    def shift_lanes(val, d):
        # y[:, p] = val[:, (p + d) % L]; wrap-around only pollutes lanes that
        # are masked/discarded (borders + tail), interior reads never wrap.
        s = d % L
        if s == 0:
            return val
        return jnp.concatenate([val[:, s:], val[:, :s]], axis=1)

    mask = mask_ref[...]                                        # (1, L)

    # ---- conv_reduce: rolled-tap im2col + ONE (hid, 9*Cin)x(9*Cin, L) dot ---
    xp = xp_ref[...]                                            # (Cin, L)
    for t, d in enumerate(taps):
        col_ref[t * Cin:(t + 1) * Cin, :] = shift_lanes(xp, d)
    feat = jnp.dot(wr_ref[...], col_ref[0:9 * Cin, :],
                   preferred_element_type=jnp.float32) * mask   # (hid, L)
    feat_ref[...] = feat          # residual + conv_k/v input, zero outside interior

    # ---- conv_k + conv_v fused: ONE (2*hid, 9*hid)x(9*hid, L) dot -----------
    for t, d in enumerate(taps):
        col_ref[t * hid:(t + 1) * hid, :] = shift_lanes(feat, d)
    kv_ref[...] = jnp.dot(wkv_ref[...], col_ref[0:9 * hid, :],
                          preferred_element_type=jnp.float32) * mask

    # ---- cross-batch attention + softmax(batch) + GroupNorm(1,C) + ReLU -----
    for i in range(B):
        q_i = q_ref[:, i * P:(i + 1) * P]                       # (hid, P)
        s_list = [jnp.sum(q_i * kv_ref[0:hid, j * P:(j + 1) * P],
                          axis=0, keepdims=True) * scale        # (1, P)
                  for j in range(B)]
        m = s_list[0]
        for s_j in s_list[1:]:
            m = jnp.maximum(m, s_j)
        p_list = [jnp.exp(s_j - m) for s_j in s_list]
        den = p_list[0]
        for p_j in p_list[1:]:
            den = den + p_j
        inv = pl.reciprocal(den, approx=True)                   # EUP slot
        virt = (p_list[0] * inv) * kv_ref[hid:2 * hid, 0:P]
        for j in range(1, B):
            virt = virt + (p_list[j] * inv) * kv_ref[hid:2 * hid,
                                                     j * P:(j + 1) * P]
        # GroupNorm(num_groups=1): non-interior lanes of virt are exactly zero,
        # so one-pass sum / sum-of-squares over the slab + true-count divide.
        s1 = jnp.sum(virt)
        s2 = jnp.sum(virt * virt)
        mu = s1 * inv_n
        var = s2 * inv_n - mu * mu
        rstd = jax.lax.rsqrt(var + 1e-5)
        xn = jnp.maximum((virt - mu) * rstd * g_ref[...] + b_ref[...], 0.0)
        xn_ref[:, i * P:(i + 1) * P] = xn * mask_ref[:, i * P:(i + 1) * P]

    # ---- output 3x3 conv (ONE dot) + residual; dropout is identity in eval --
    # TODO(synk): nn.Dropout(0.2) training-mode masking not implemented.
    xn_all = xn_ref[...]
    for t, d in enumerate(taps):
        col_ref[t * hid:(t + 1) * hid, :] = shift_lanes(xn_all, d)
    o_ref[...] = feat_ref[...] + jnp.dot(wout_ref[...], col_ref[0:9 * hid, :],
                                         preferred_element_type=jnp.float32)


# ------------------------------ module forward ------------------------------

def forward(params, status, rois, bbox_featx):
    """Pallas implementation of monkey_switch_QKV.forward (eval mode)."""
    x = jnp.squeeze(bbox_featx, axis=2).astype(jnp.float32)     # (B, Cin, H, W)
    B, Cin, H, W = x.shape
    hid = params['w_reduce'].shape[-1]
    Hp, Wp = H + 2, W + 2
    P = ((Hp * Wp + 127) // 128) * 128                          # lanes per image
    L = B * P

    st = jnp.concatenate([status[:, 0:1], rois[:, 1:]],
                         axis=1).astype(jnp.float32)            # (B, S)

    # conv_q hoist: its input is spatially constant per batch, so the 'SAME'
    # conv collapses to per-pixel tap-validity masks (exact incl. borders).
    hh = jnp.arange(H)[:, None]
    ww = jnp.arange(W)[None, :]
    wq = params['w_q'].astype(jnp.float32)                      # (3,3,S,hid)
    S = wq.shape[2]
    wq_eff = jnp.zeros((H, W, S, hid), jnp.float32)
    for kh in range(3):
        for kw in range(3):
            valid = ((hh + kh - 1 >= 0) & (hh + kh - 1 < H) &
                     (ww + kw - 1 >= 0) & (ww + kw - 1 < W))
            wq_eff = wq_eff + (valid.astype(jnp.float32)[:, :, None, None]
                               * wq[kh, kw][None, None])
    q = jnp.einsum('bs,hwsc->bchw', st, wq_eff)                 # (B, hid, H, W)

    def to_slab(t_nchw):
        # NCHW -> (C, B*P): channels on sublanes, zero-padded spatial on lanes.
        Bx, C = t_nchw.shape[0], t_nchw.shape[1]
        tp = jnp.pad(t_nchw, ((0, 0), (0, 0), (1, 1), (1, 1)))
        tp = tp.reshape(Bx, C, Hp * Wp)
        tp = jnp.pad(tp, ((0, 0), (0, 0), (0, P - Hp * Wp)))
        return jnp.transpose(tp, (1, 0, 2)).reshape(C, Bx * P)

    xp = to_slab(x)                                             # (Cin, L)
    q_slab = to_slab(q)                                         # (hid, L)

    # interior-lane mask (1 at the true H x W pixels, 0 at border / tail lanes)
    lane = jnp.arange(P)
    ip, jp = lane // Wp, lane % Wp
    m = ((ip >= 1) & (ip <= H) & (jp >= 1) & (jp <= W) & (lane < Hp * Wp))
    mask = jnp.tile(m.astype(jnp.float32)[None, :], (1, B))     # (1, L)

    # conv weights repacked for single wide-K dots; conv_k/conv_v fused.
    f32 = jnp.float32
    wrT = params['w_reduce'].astype(f32).reshape(9 * Cin, hid).T          # (hid, 9*Cin)
    wkvT = jnp.concatenate([params['w_k'].astype(f32).reshape(9 * hid, hid),
                            params['w_v'].astype(f32).reshape(9 * hid, hid)],
                           axis=1).T                                      # (2*hid, 9*hid)
    woutT = params['w_out'].astype(f32).reshape(9 * hid, hid).T           # (hid, 9*hid)
    gamma = jnp.broadcast_to(params['gamma'].astype(f32)[:, None], (hid, P))
    beta = jnp.broadcast_to(params['beta'].astype(f32)[:, None], (hid, P))

    vmem = pl.BlockSpec(memory_space=pltpu.MemorySpace.VMEM)
    kern = functools.partial(_fused_kernel, B=B, H=H, W=W, P=P)
    out = pl.pallas_call(
        kern,
        out_shape=jax.ShapeDtypeStruct((hid, L), jnp.float32),
        in_specs=[vmem] * 8,
        out_specs=vmem,
        scratch_shapes=[pltpu.VMEM((9 * max(Cin, hid), L), jnp.float32),  # im2col
                        pltpu.VMEM((hid, L), jnp.float32),                # feat
                        pltpu.VMEM((2 * hid, L), jnp.float32),            # k | v
                        pltpu.VMEM((hid, L), jnp.float32)],               # xn
    )(xp, q_slab, wrT, wkvT, woutT, gamma, beta, mask)

    # channel-major output: only slicing/reshaping left (no big transpose).
    out = jnp.transpose(out.reshape(hid, B, P), (1, 0, 2))[:, :, :Hp * Wp]
    out = out.reshape(B, hid, Hp, Wp)[:, :, 1:H + 1, 1:W + 1]   # (B, hid, H, W)
    return out[:, :, None, :, :]                                # (B, hid, 1, H, W)


# ----------------------------- pure-JAX reference ----------------------------

def _ref_forward(params, status, rois, bbox_featx):
    def conv(xx, w):
        return jax.lax.conv_general_dilated(
            xx, w, (1, 1), 'SAME', dimension_numbers=('NHWC', 'HWIO', 'NHWC'))
    x = jnp.transpose(jnp.squeeze(bbox_featx, axis=2), (0, 2, 3, 1))
    feat = conv(x, params['w_reduce'])
    B, H, W, C = feat.shape
    st = jnp.concatenate([status[:, 0:1], rois[:, 1:]], axis=1)
    st_map = jnp.broadcast_to(st[:, None, None, :], (B, H, W, st.shape[1]))
    q = conv(st_map, params['w_q'])
    k = conv(feat, params['w_k'])
    v = conv(feat, params['w_v'])
    s = jnp.einsum('ihwc,jhwc->ijhw', q, k) / (C ** 0.5)
    att = jax.nn.softmax(s, axis=1)
    virt = jnp.einsum('ijhw,jhwc->ihwc', att, v)
    mu = virt.mean(axis=(1, 2, 3), keepdims=True)
    var = ((virt - mu) ** 2).mean(axis=(1, 2, 3), keepdims=True)
    vn = (virt - mu) / jnp.sqrt(var + 1e-5)
    vn = vn * params['gamma'][None, None, None, :] + params['beta'][None, None, None, :]
    vn = jax.nn.relu(vn)
    out = conv(vn, params['w_out']) + feat
    return jnp.transpose(out, (0, 3, 1, 2))[:, :, None, :, :]


# ---------------------------------- main -------------------------------------

if __name__ == "__main__":
    # Small shapes consistent with the module: B=2, input_dim=64, hidden=32,
    # status_dim=2, H=W=8.
    B, input_dim, hidden_dim, status_dim, H, W = 2, 64, 32, 2, 8, 8
    key = jax.random.PRNGKey(0)
    ks = jax.random.split(key, 10)

    def winit(k, kh, kw, cin, cout):
        return (jax.random.normal(k, (kh, kw, cin, cout), jnp.float32)
                * (2.0 / (kh * kw * cin)) ** 0.5)

    params = {
        'w_reduce': winit(ks[0], 3, 3, input_dim, hidden_dim),
        'w_q':      winit(ks[1], 3, 3, status_dim, hidden_dim),
        'w_k':      winit(ks[2], 3, 3, hidden_dim, hidden_dim),
        'w_v':      winit(ks[3], 3, 3, hidden_dim, hidden_dim),
        'w_out':    winit(ks[4], 3, 3, hidden_dim, hidden_dim),   # mlp_1x1=False -> 3x3
        'gamma':    1.0 + 0.1 * jax.random.normal(ks[5], (hidden_dim,), jnp.float32),
        'beta':     0.1 * jax.random.normal(ks[6], (hidden_dim,), jnp.float32),
    }

    status = jax.random.normal(ks[7], (B, 2), jnp.float32)
    rois = jax.random.normal(ks[8], (B, 2), jnp.float32)          # cat -> status_dim=2
    bbox_featx = jax.random.normal(ks[9], (B, input_dim, 1, H, W), jnp.float32)

    out = jax.block_until_ready(
        jax.jit(forward)(params, status, rois, bbox_featx))
    ref = jax.block_until_ready(_ref_forward(params, status, rois, bbox_featx))

    assert out.shape == (B, hidden_dim, 1, H, W), out.shape
    err = float(jnp.max(jnp.abs(out - ref)))
    tol = 2e-2 * (float(jnp.max(jnp.abs(ref))) + 1.0)
    assert err <= tol, f"max abs err {err} > tol {tol}"
    print("KERNEL_OK")
</pallas_src>

<mosaic_0001>
module attributes {stable_mosaic.version = 11 : i64} {
  func.func @_fused_kernel(%arg0: memref<64x256xf32, #tpu.memory_space<vmem>>, %arg1: memref<32x256xf32, #tpu.memory_space<vmem>>, %arg2: memref<32x576xf32, #tpu.memory_space<vmem>>, %arg3: memref<64x288xf32, #tpu.memory_space<vmem>>, %arg4: memref<32x288xf32, #tpu.memory_space<vmem>>, %arg5: memref<32x128xf32, #tpu.memory_space<vmem>>, %arg6: memref<32x128xf32, #tpu.memory_space<vmem>>, %arg7: memref<1x256xf32, #tpu.memory_space<vmem>>, %arg8: memref<32x256xf32, #tpu.memory_space<vmem>>, %arg9: memref<576x256xf32, #tpu.memory_space<vmem>>, %arg10: memref<32x256xf32, #tpu.memory_space<vmem>>, %arg11: memref<64x256xf32, #tpu.memory_space<vmem>>, %arg12: memref<32x256xf32, #tpu.memory_space<vmem>>) attributes {dimension_semantics = [], scalar_prefetch = 0 : i64, scratch_operands = 4 : i64, tpu.core_type = #tpu.core_type<tc>} {
    %c0 = arith.constant 0 : index
    %c0_0 = arith.constant 0 : index
    %0 = vector.load %arg7[%c0, %c0_0] : memref<1x256xf32, #tpu.memory_space<vmem>>, vector<1x256xf32>
    %c0_1 = arith.constant 0 : index
    %c0_2 = arith.constant 0 : index
    %1 = vector.load %arg0[%c0_1, %c0_2] : memref<64x256xf32, #tpu.memory_space<vmem>>, vector<64x256xf32>
    %2 = vector.extract_strided_slice %1 {offsets = [0, 245], sizes = [64, 11], strides = [1, 1]} : vector<64x256xf32> to vector<64x11xf32>
    %3 = vector.extract_strided_slice %1 {offsets = [0, 0], sizes = [64, 245], strides = [1, 1]} : vector<64x256xf32> to vector<64x245xf32>
    %4 = tpu.concatenate %2, %3 in 1 : vector<64x11xf32>, vector<64x245xf32> -> vector<64x256xf32>
    %c0_3 = arith.constant 0 : index
    %c0_4 = arith.constant 0 : index
    %5 = vector.load %arg9[%c0_3, %c0_4] : memref<576x256xf32, #tpu.memory_space<vmem>>, vector<64x256xf32>
    tpu.vector_store %arg9[%c0_3, %c0_4], %4 {strides = array<i32>} : memref<576x256xf32, #tpu.memory_space<vmem>>, vector<64x256xf32>,
    %6 = vector.extract_strided_slice %1 {offsets = [0, 246], sizes = [64, 10], strides = [1, 1]} : vector<64x256xf32> to vector<64x10xf32>
    %7 = vector.extract_strided_slice %1 {offsets = [0, 0], sizes = [64, 246], strides = [1, 1]} : vector<64x256xf32> to vector<64x246xf32>
    %8 = tpu.concatenate %6, %7 in 1 : vector<64x10xf32>, vector<64x246xf32> -> vector<64x256xf32>
    %c64 = arith.constant 64 : index
    %c0_5 = arith.constant 0 : index
    %9 = vector.load %arg9[%c64, %c0_5] : memref<576x256xf32, #tpu.memory_space<vmem>>, vector<64x256xf32>
    tpu.vector_store %arg9[%c64, %c0_5], %8 {strides = array<i32>} : memref<576x256xf32, #tpu.memory_space<vmem>>, vector<64x256xf32>,
    %10 = vector.extract_strided_slice %1 {offsets = [0, 247], sizes = [64, 9], strides = [1, 1]} : vector<64x256xf32> to vector<64x9xf32>
    %11 = vector.extract_strided_slice %1 {offsets = [0, 0], sizes = [64, 247], strides = [1, 1]} : vector<64x256xf32> to vector<64x247xf32>
    %12 = tpu.concatenate %10, %11 in 1 : vector<64x9xf32>, vector<64x247xf32> -> vector<64x256xf32>
    %c128 = arith.constant 128 : index
    %c0_6 = arith.constant 0 : index
    %13 = vector.load %arg9[%c128, %c0_6] : memref<576x256xf32, #tpu.memory_space<vmem>>, vector<64x256xf32>
    tpu.vector_store %arg9[%c128, %c0_6], %12 {strides = array<i32>} : memref<576x256xf32, #tpu.memory_space<vmem>>, vector<64x256xf32>,
    %14 = vector.extract_strided_slice %1 {offsets = [0, 255], sizes = [64, 1], strides = [1, 1]} : vector<64x256xf32> to vector<64x1xf32>
    %15 = vector.extract_strided_slice %1 {offsets = [0, 0], sizes = [64, 255], strides = [1, 1]} : vector<64x256xf32> to vector<64x255xf32>
    %16 = tpu.concatenate %14, %15 in 1 : vector<64x1xf32>, vector<64x255xf32> -> vector<64x256xf32>
    %c192 = arith.constant 192 : index
    %c0_7 = arith.constant 0 : index
    %17 = vector.load %arg9[%c192, %c0_7] : memref<576x256xf32, #tpu.memory_space<vmem>>, vector<64x256xf32>
    tpu.vector_store %arg9[%c192, %c0_7], %16 {strides = array<i32>} : memref<576x256xf32, #tpu.memory_space<vmem>>, vector<64x256xf32>,
    %c256 = arith.constant 256 : index
    %c0_8 = arith.constant 0 : index
    %18 = vector.load %arg9[%c256, %c0_8] : memref<576x256xf32, #tpu.memory_space<vmem>>, vector<64x256xf32>
    tpu.vector_store %arg9[%c256, %c0_8], %1 {strides = array<i32>} : memref<576x256xf32, #tpu.memory_space<vmem>>, vector<64x256xf32>,
    %19 = vector.extract_strided_slice %1 {offsets = [0, 1], sizes = [64, 255], strides = [1, 1]} : vector<64x256xf32> to vector<64x255xf32>
    %20 = vector.extract_strided_slice %1 {offsets = [0, 0], sizes = [64, 1], strides = [1, 1]} : vector<64x256xf32> to vector<64x1xf32>
    %21 = tpu.concatenate %19, %20 in 1 : vector<64x255xf32>, vector<64x1xf32> -> vector<64x256xf32>
    %c320 = arith.constant 320 : index
    %c0_9 = arith.constant 0 : index
    %22 = vector.load %arg9[%c320, %c0_9] : memref<576x256xf32, #tpu.memory_space<vmem>>, vector<64x256xf32>
    tpu.vector_store %arg9[%c320, %c0_9], %21 {strides = array<i32>} : memref<576x256xf32, #tpu.memory_space<vmem>>, vector<64x256xf32>,
    %23 = vector.extract_strided_slice %1 {offsets = [0, 9], sizes = [64, 247], strides = [1, 1]} : vector<64x256xf32> to vector<64x247xf32>
    %24 = vector.extract_strided_slice %1 {offsets = [0, 0], sizes = [64, 9], strides = [1, 1]} : vector<64x256xf32> to vector<64x9xf32>
    %25 = tpu.concatenate %23, %24 in 1 : vector<64x247xf32>, vector<64x9xf32> -> vector<64x256xf32>
    %c384 = arith.constant 384 : index
    %c0_10 = arith.constant 0 : index
    %26 = vector.load %arg9[%c384, %c0_10] : memref<576x256xf32, #tpu.memory_space<vmem>>, vector<64x256xf32>
    tpu.vector_store %arg9[%c384, %c0_10], %25 {strides = array<i32>} : memref<576x256xf32, #tpu.memory_space<vmem>>, vector<64x256xf32>,
    %27 = vector.extract_strided_slice %1 {offsets = [0, 10], sizes = [64, 246], strides = [1, 1]} : vector<64x256xf32> to vector<64x246xf32>
    %28 = vector.extract_strided_slice %1 {offsets = [0, 0], sizes = [64, 10], strides = [1, 1]} : vector<64x256xf32> to vector<64x10xf32>
    %29 = tpu.concatenate %27, %28 in 1 : vector<64x246xf32>, vector<64x10xf32> -> vector<64x256xf32>
    %c448 = arith.constant 448 : index
    %c0_11 = arith.constant 0 : index
    %30 = vector.load %arg9[%c448, %c0_11] : memref<576x256xf32, #tpu.memory_space<vmem>>, vector<64x256xf32>
    tpu.vector_store %arg9[%c448, %c0_11], %29 {strides = array<i32>} : memref<576x256xf32, #tpu.memory_space<vmem>>, vector<64x256xf32>,
    %31 = vector.extract_strided_slice %1 {offsets = [0, 11], sizes = [64, 245], strides = [1, 1]} : vector<64x256xf32> to vector<64x245xf32>
    %32 = vector.extract_strided_slice %1 {offsets = [0, 0], sizes = [64, 11], strides = [1, 1]} : vector<64x256xf32> to vector<64x11xf32>
    %33 = tpu.concatenate %31, %32 in 1 : vector<64x245xf32>, vector<64x11xf32> -> vector<64x256xf32>
    %c512 = arith.constant 512 : index
    %c0_12 = arith.constant 0 : index
    %34 = vector.load %arg9[%c512, %c0_12] : memref<576x256xf32, #tpu.memory_space<vmem>>, vector<64x256xf32>
    tpu.vector_store %arg9[%c512, %c0_12], %33 {strides = array<i32>} : memref<576x256xf32, #tpu.memory_space<vmem>>, vector<64x256xf32>,
    %c0_13 = arith.constant 0 : index
    %c0_14 = arith.constant 0 : index
    %35 = vector.load %arg2[%c0_13, %c0_14] : memref<32x576xf32, #tpu.memory_space<vmem>>, vector<32x576xf32>
    %c0_15 = arith.constant 0 : index
    %c0_16 = arith.constant 0 : index
    %36 = vector.load %arg9[%c0_15, %c0_16] : memref<576x256xf32, #tpu.memory_space<vmem>>, vector<576x256xf32>
    %cst = arith.constant dense<0.000000e+00> : vector<32x256xf32>
    %37 = tpu.matmul %35, %36, %cst {dimension_numbers = #tpu.dot_dimension_numbers<[1], [0], [0], [1], [0, 0, 1, 1], [], []>} : vector<32x576xf32>, vector<576x256xf32>, vector<32x256xf32> -> vector<32x256xf32>
    %38 = vector.broadcast %0 : vector<1x256xf32> to vector<32x256xf32>
    %39 = arith.mulf %37, %38 : vector<32x256xf32>
    %c0_17 = arith.constant 0 : index
    %c0_18 = arith.constant 0 : index
    %40 = vector.load %arg10[%c0_17, %c0_18] : memref<32x256xf32, #tpu.memory_space<vmem>>, vector<32x256xf32>
    tpu.vector_store %arg10[%c0_17, %c0_18], %39 {strides = array<i32>} : memref<32x256xf32, #tpu.memory_space<vmem>>, vector<32x256xf32>,
    %41 = vector.extract_strided_slice %39 {offsets = [0, 245], sizes = [32, 11], strides = [1, 1]} : vector<32x256xf32> to vector<32x11xf32>
    %42 = vector.extract_strided_slice %39 {offsets = [0, 0], sizes = [32, 245], strides = [1, 1]} : vector<32x256xf32> to vector<32x245xf32>
    %43 = tpu.concatenate %41, %42 in 1 : vector<32x11xf32>, vector<32x245xf32> -> vector<32x256xf32>
    %c0_19 = arith.constant 0 : index
    %c0_20 = arith.constant 0 : index
    %44 = vector.load %arg9[%c0_19, %c0_20] : memref<576x256xf32, #tpu.memory_space<vmem>>, vector<32x256xf32>
    tpu.vector_store %arg9[%c0_19, %c0_20], %43 {strides = array<i32>} : memref<576x256xf32, #tpu.memory_space<vmem>>, vector<32x256xf32>,
    %45 = vector.extract_strided_slice %39 {offsets = [0, 246], sizes = [32, 10], strides = [1, 1]} : vector<32x256xf32> to vector<32x10xf32>
    %46 = vector.extract_strided_slice %39 {offsets = [0, 0], sizes = [32, 246], strides = [1, 1]} : vector<32x256xf32> to vector<32x246xf32>
    %47 = tpu.concatenate %45, %46 in 1 : vector<32x10xf32>, vector<32x246xf32> -> vector<32x256xf32>
    %c32 = arith.constant 32 : index
    %c0_21 = arith.constant 0 : index
    %48 = vector.load %arg9[%c32, %c0_21] : memref<576x256xf32, #tpu.memory_space<vmem>>, vector<32x256xf32>
    tpu.vector_store %arg9[%c32, %c0_21], %47 {strides = array<i32>} : memref<576x256xf32, #tpu.memory_space<vmem>>, vector<32x256xf32>,
    %49 = vector.extract_strided_slice %39 {offsets = [0, 247], sizes = [32, 9], strides = [1, 1]} : vector<32x256xf32> to vector<32x9xf32>
    %50 = vector.extract_strided_slice %39 {offsets = [0, 0], sizes = [32, 247], strides = [1, 1]} : vector<32x256xf32> to vector<32x247xf32>
    %51 = tpu.concatenate %49, %50 in 1 : vector<32x9xf32>, vector<32x247xf32> -> vector<32x256xf32>
    %c64_22 = arith.constant 64 : index
    %c0_23 = arith.constant 0 : index
    %52 = vector.load %arg9[%c64_22, %c0_23] : memref<576x256xf32, #tpu.memory_space<vmem>>, vector<32x256xf32>
    tpu.vector_store %arg9[%c64_22, %c0_23], %51 {strides = array<i32>} : memref<576x256xf32, #tpu.memory_space<vmem>>, vector<32x256xf32>,
    %53 = vector.extract_strided_slice %39 {offsets = [0, 255], sizes = [32, 1], strides = [1, 1]} : vector<32x256xf32> to vector<32x1xf32>
    %54 = vector.extract_strided_slice %39 {offsets = [0, 0], sizes = [32, 255], strides = [1, 1]} : vector<32x256xf32> to vector<32x255xf32>
    %55 = tpu.concatenate %53, %54 in 1 : vector<32x1xf32>, vector<32x255xf32> -> vector<32x256xf32>
    %c96 = arith.constant 96 : index
    %c0_24 = arith.constant 0 : index
    %56 = vector.load %arg9[%c96, %c0_24] : memref<576x256xf32, #tpu.memory_space<vmem>>, vector<32x256xf32>
    tpu.vector_store %arg9[%c96, %c0_24], %55 {strides = array<i32>} : memref<576x256xf32, #tpu.memory_space<vmem>>, vector<32x256xf32>,
    %c128_25 = arith.constant 128 : index
    %c0_26 = arith.constant 0 : index
    %57 = vector.load %arg9[%c128_25, %c0_26] : memref<576x256xf32, #tpu.memory_space<vmem>>, vector<32x256xf32>
    tpu.vector_store %arg9[%c128_25, %c0_26], %39 {strides = array<i32>} : memref<576x256xf32, #tpu.memory_space<vmem>>, vector<32x256xf32>,
    %58 = vector.extract_strided_slice %39 {offsets = [0, 1], sizes = [32, 255], strides = [1, 1]} : vector<32x256xf32> to vector<32x255xf32>
    %59 = vector.extract_strided_slice %39 {offsets = [0, 0], sizes = [32, 1], strides = [1, 1]} : vector<32x256xf32> to vector<32x1xf32>
    %60 = tpu.concatenate %58, %59 in 1 : vector<32x255xf32>, vector<32x1xf32> -> vector<32x256xf32>
    %c160 = arith.constant 160 : index
    %c0_27 = arith.constant 0 : index
    %61 = vector.load %arg9[%c160, %c0_27] : memref<576x256xf32, #tpu.memory_space<vmem>>, vector<32x256xf32>
    tpu.vector_store %arg9[%c160, %c0_27], %60 {strides = array<i32>} : memref<576x256xf32, #tpu.memory_space<vmem>>, vector<32x256xf32>,
    %62 = vector.extract_strided_slice %39 {offsets = [0, 9], sizes = [32, 247], strides = [1, 1]} : vector<32x256xf32> to vector<32x247xf32>
    %63 = vector.extract_strided_slice %39 {offsets = [0, 0], sizes = [32, 9], strides = [1, 1]} : vector<32x256xf32> to vector<32x9xf32>
    %64 = tpu.concatenate %62, %63 in 1 : vector<32x247xf32>, vector<32x9xf32> -> vector<32x256xf32>
    %c192_28 = arith.constant 192 : index
    %c0_29 = arith.constant 0 : index
    %65 = vector.load %arg9[%c192_28, %c0_29] : memref<576x256xf32, #tpu.memory_space<vmem>>, vector<32x256xf32>
    tpu.vector_store %arg9[%c192_28, %c0_29], %64 {strides = array<i32>} : memref<576x256xf32, #tpu.memory_space<vmem>>, vector<32x256xf32>,
    %66 = vector.extract_strided_slice %39 {offsets = [0, 10], sizes = [32, 246], strides = [1, 1]} : vector<32x256xf32> to vector<32x246xf32>
    %67 = vector.extract_strided_slice %39 {offsets = [0, 0], sizes = [32, 10], strides = [1, 1]} : vector<32x256xf32> to vector<32x10xf32>
    %68 = tpu.concatenate %66, %67 in 1 : vector<32x246xf32>, vector<32x10xf32> -> vector<32x256xf32>
    %c224 = arith.constant 224 : index
    %c0_30 = arith.constant 0 : index
    %69 = vector.load %arg9[%c224, %c0_30] : memref<576x256xf32, #tpu.memory_space<vmem>>, vector<32x256xf32>
    tpu.vector_store %arg9[%c224, %c0_30], %68 {strides = array<i32>} : memref<576x256xf32, #tpu.memory_space<vmem>>, vector<32x256xf32>,
    %70 = vector.extract_strided_slice %39 {offsets = [0, 11], sizes = [32, 245], strides = [1, 1]} : vector<32x256xf32> to vector<32x245xf32>
    %71 = vector.extract_strided_slice %39 {offsets = [0, 0], sizes = [32, 11], strides = [1, 1]} : vector<32x256xf32> to vector<32x11xf32>
    %72 = tpu.concatenate %70, %71 in 1 : vector<32x245xf32>, vector<32x11xf32> -> vector<32x256xf32>
    %c256_31 = arith.constant 256 : index
    %c0_32 = arith.constant 0 : index
    %73 = vector.load %arg9[%c256_31, %c0_32] : memref<576x256xf32, #tpu.memory_space<vmem>>, vector<32x256xf32>
    tpu.vector_store %arg9[%c256_31, %c0_32], %72 {strides = array<i32>} : memref<576x256xf32, #tpu.memory_space<vmem>>, vector<32x256xf32>,
    %c0_33 = arith.constant 0 : index
    %c0_34 = arith.constant 0 : index
    %74 = vector.load %arg3[%c0_33, %c0_34] : memref<64x288xf32, #tpu.memory_space<vmem>>, vector<64x288xf32>
    %c0_35 = arith.constant 0 : index
    %c0_36 = arith.constant 0 : index
    %75 = vector.load %arg9[%c0_35, %c0_36] : memref<576x256xf32, #tpu.memory_space<vmem>>, vector<288x256xf32>
    %cst_37 = arith.constant dense<0.000000e+00> : vector<64x256xf32>
    %76 = tpu.matmul %74, %75, %cst_37 {dimension_numbers = #tpu.dot_dimension_numbers<[1], [0], [0], [1], [0, 0, 1, 1], [], []>} : vector<64x288xf32>, vector<288x256xf32>, vector<64x256xf32> -> vector<64x256xf32>
    %77 = vector.broadcast %0 : vector<1x256xf32> to vector<64x256xf32>
    %78 = arith.mulf %76, %77 : vector<64x256xf32>
    %c0_38 = arith.constant 0 : index
    %c0_39 = arith.constant 0 : index
    %79 = vector.load %arg11[%c0_38, %c0_39] : memref<64x256xf32, #tpu.memory_space<vmem>>, vector<64x256xf32>
    tpu.vector_store %arg11[%c0_38, %c0_39], %78 {strides = array<i32>} : memref<64x256xf32, #tpu.memory_space<vmem>>, vector<64x256xf32>,
    %c0_40 = arith.constant 0 : index
    %c0_41 = arith.constant 0 : index
    %80 = vector.load %arg1[%c0_40, %c0_41] : memref<32x256xf32, #tpu.memory_space<vmem>>, vector<32x128xf32>
    %c0_42 = arith.constant 0 : index
    %c0_43 = arith.constant 0 : index
    %81 = vector.load %arg11[%c0_42, %c0_43] : memref<64x256xf32, #tpu.memory_space<vmem>>, vector<32x128xf32>
    %82 = arith.mulf %80, %81 : vector<32x128xf32>
    %cst_44 = arith.constant dense<0.000000e+00> : vector<128xf32>
    %83 = vector.multi_reduction <add>, %82, %cst_44 [0] : vector<32x128xf32> to vector<128xf32>
    %84 = vector.shape_cast %83 : vector<128xf32> to vector<1x128xf32>
    %cst_45 = arith.constant 0.176776692 : f32
    %85 = vector.broadcast %cst_45 : f32 to vector<1x128xf32>
    %86 = arith.mulf %84, %85 : vector<1x128xf32>
    %c0_46 = arith.constant 0 : index
    %c128_47 = arith.constant 128 : index
    %87 = vector.load %arg11[%c0_46, %c128_47] : memref<64x256xf32, #tpu.memory_space<vmem>>, vector<32x128xf32>
    %88 = arith.mulf %80, %87 : vector<32x128xf32>
    %cst_48 = arith.constant dense<0.000000e+00> : vector<128xf32>
    %89 = vector.multi_reduction <add>, %88, %cst_48 [0] : vector<32x128xf32> to vector<128xf32>
    %90 = vector.shape_cast %89 : vector<128xf32> to vector<1x128xf32>
    %cst_49 = arith.constant 0.176776692 : f32
    %91 = vector.broadcast %cst_49 : f32 to vector<1x128xf32>
    %92 = arith.mulf %90, %91 : vector<1x128xf32>
    %93 = arith.maximumf %86, %92 : vector<1x128xf32>
    %94 = arith.subf %86, %93 : vector<1x128xf32>
    %95 = math.exp %94 : vector<1x128xf32>
    %96 = arith.subf %92, %93 : vector<1x128xf32>
    %97 = math.exp %96 : vector<1x128xf32>
    %98 = arith.addf %95, %97 : vector<1x128xf32>
    %99 = tpu.reciprocal %98 {approx = true} : vector<1x128xf32> -> vector<1x128xf32>
    %100 = arith.mulf %95, %99 : vector<1x128xf32>
    %c32_50 = arith.constant 32 : index
    %c0_51 = arith.constant 0 : index
    %101 = vector.load %arg11[%c32_50, %c0_51] : memref<64x256xf32, #tpu.memory_space<vmem>>, vector<32x128xf32>
    %102 = vector.broadcast %100 : vector<1x128xf32> to vector<32x128xf32>
    %103 = arith.mulf %102, %101 : vector<32x128xf32>
    %104 = arith.mulf %97, %99 : vector<1x128xf32>
    %c32_52 = arith.constant 32 : index
    %c128_53 = arith.constant 128 : index
    %105 = vector.load %arg11[%c32_52, %c128_53] : memref<64x256xf32, #tpu.memory_space<vmem>>, vector<32x128xf32>
    %106 = vector.broadcast %104 : vector<1x128xf32> to vector<32x128xf32>
    %107 = arith.mulf %106, %105 : vector<32x128xf32>
    %108 = arith.addf %103, %107 : vector<32x128xf32>
    %109 = vector.shape_cast %108 : vector<32x128xf32> to vector<1x32x128xf32>
    %cst_54 = arith.constant dense<0.000000e+00> : vector<1xf32>
    %110 = vector.multi_reduction <add>, %109, %cst_54 [1, 2] : vector<1x32x128xf32> to vector<1xf32>
    %111 = vector.shape_cast %110 : vector<1xf32> to vector<1x1x1xf32>
    %112 = vector.extract %111[0, 0, 0] : f32 from vector<1x1x1xf32>
    %113 = arith.mulf %108, %108 : vector<32x128xf32>
    %114 = vector.shape_cast %113 : vector<32x128xf32> to vector<1x32x128xf32>
    %cst_55 = arith.constant dense<0.000000e+00> : vector<1xf32>
    %115 = vector.multi_reduction <add>, %114, %cst_55 [1, 2] : vector<1x32x128xf32> to vector<1xf32>
    %116 = vector.shape_cast %115 : vector<1xf32> to vector<1x1x1xf32>
    %117 = vector.extract %116[0, 0, 0] : f32 from vector<1x1x1xf32>
    %cst_56 = arith.constant 4.8828125E-4 : f32
    %118 = arith.mulf %112, %cst_56 : f32
    %cst_57 = arith.constant 4.8828125E-4 : f32
    %119 = arith.mulf %117, %cst_57 : f32
    %120 = arith.mulf %118, %118 : f32
    %121 = arith.subf %119, %120 : f32
    %cst_58 = arith.constant 9.99999974E-6 : f32
    %122 = arith.addf %121, %cst_58 : f32
    %123 = math.rsqrt %122 : f32
    %124 = vector.broadcast %118 : f32 to vector<32x128xf32>
    %125 = arith.subf %108, %124 : vector<32x128xf32>
    %126 = vector.broadcast %123 : f32 to vector<32x128xf32>
    %127 = arith.mulf %125, %126 : vector<32x128xf32>
    %c0_59 = arith.constant 0 : index
    %c0_60 = arith.constant 0 : index
    %128 = vector.load %arg5[%c0_59, %c0_60] : memref<32x128xf32, #tpu.memory_space<vmem>>, vector<32x128xf32>
    %129 = arith.mulf %127, %128 : vector<32x128xf32>
    %c0_61 = arith.constant 0 : index
    %c0_62 = arith.constant 0 : index
    %130 = vector.load %arg6[%c0_61, %c0_62] : memref<32x128xf32, #tpu.memory_space<vmem>>, vector<32x128xf32>
    %131 = arith.addf %129, %130 : vector<32x128xf32>
    %cst_63 = arith.constant 0.000000e+00 : f32
    %132 = vector.broadcast %cst_63 : f32 to vector<32x128xf32>
    %133 = arith.maximumf %131, %132 : vector<32x128xf32>
    %c0_64 = arith.constant 0 : index
    %c0_65 = arith.constant 0 : index
    %134 = vector.load %arg7[%c0_64, %c0_65] : memref<1x256xf32, #tpu.memory_space<vmem>>, vector<1x128xf32>
    %135 = vector.broadcast %134 : vector<1x128xf32> to vector<32x128xf32>
    %136 = arith.mulf %133, %135 : vector<32x128xf32>
    %c0_66 = arith.constant 0 : index
    %c0_67 = arith.constant 0 : index
    %137 = vector.load %arg12[%c0_66, %c0_67] : memref<32x256xf32, #tpu.memory_space<vmem>>, vector<32x128xf32>
    tpu.vector_store %arg12[%c0_66, %c0_67], %136 {strides = array<i32>} : memref<32x256xf32, #tpu.memory_space<vmem>>, vector<32x128xf32>,
    %c0_68 = arith.constant 0 : index
    %c128_69 = arith.constant 128 : index
    %138 = vector.load %arg1[%c0_68, %c128_69] : memref<32x256xf32, #tpu.memory_space<vmem>>, vector<32x128xf32>
    %c0_70 = arith.constant 0 : index
    %c0_71 = arith.constant 0 : index
    %139 = vector.load %arg11[%c0_70, %c0_71] : memref<64x256xf32, #tpu.memory_space<vmem>>, vector<32x128xf32>
    %140 = arith.mulf %138, %139 : vector<32x128xf32>
    %cst_72 = arith.constant dense<0.000000e+00> : vector<128xf32>
    %141 = vector.multi_reduction <add>, %140, %cst_72 [0] : vector<32x128xf32> to vector<128xf32>
    %142 = vector.shape_cast %141 : vector<128xf32> to vector<1x128xf32>
    %cst_73 = arith.constant 0.176776692 : f32
    %143 = vector.broadcast %cst_73 : f32 to vector<1x128xf32>
    %144 = arith.mulf %142, %143 : vector<1x128xf32>
    %c0_74 = arith.constant 0 : index
    %c128_75 = arith.constant 128 : index
    %145 = vector.load %arg11[%c0_74, %c128_75] : memref<64x256xf32, #tpu.memory_space<vmem>>, vector<32x128xf32>
    %146 = arith.mulf %138, %145 : vector<32x128xf32>
    %cst_76 = arith.constant dense<0.000000e+00> : vector<128xf32>
    %147 = vector.multi_reduction <add>, %146, %cst_76 [0] : vector<32x128xf32> to vector<128xf32>
    %148 = vector.shape_cast %147 : vector<128xf32> to vector<1x128xf32>
    %cst_77 = arith.constant 0.176776692 : f32
    %149 = vector.broadcast %cst_77 : f32 to vector<1x128xf32>
    %150 = arith.mulf %148, %149 : vector<1x128xf32>
    %151 = arith.maximumf %144, %150 : vector<1x128xf32>
    %152 = arith.subf %144, %151 : vector<1x128xf32>
    %153 = math.exp %152 : vector<1x128xf32>
    %154 = arith.subf %150, %151 : vector<1x128xf32>
    %155 = math.exp %154 : vector<1x128xf32>
    %156 = arith.addf %153, %155 : vector<1x128xf32>
    %157 = tpu.reciprocal %156 {approx = true} : vector<1x128xf32> -> vector<1x128xf32>
    %158 = arith.mulf %153, %157 : vector<1x128xf32>
    %c32_78 = arith.constant 32 : index
    %c0_79 = arith.constant 0 : index
    %159 = vector.load %arg11[%c32_78, %c0_79] : memref<64x256xf32, #tpu.memory_space<vmem>>, vector<32x128xf32>
    %160 = vector.broadcast %158 : vector<1x128xf32> to vector<32x128xf32>
    %161 = arith.mulf %160, %159 : vector<32x128xf32>
    %162 = arith.mulf %155, %157 : vector<1x128xf32>
    %c32_80 = arith.constant 32 : index
    %c128_81 = arith.constant 128 : index
    %163 = vector.load %arg11[%c32_80, %c128_81] : memref<64x256xf32, #tpu.memory_space<vmem>>, vector<32x128xf32>
    %164 = vector.broadcast %162 : vector<1x128xf32> to vector<32x128xf32>
    %165 = arith.mulf %164, %163 : vector<32x128xf32>
    %166 = arith.addf %161, %165 : vector<32x128xf32>
    %167 = vector.shape_cast %166 : vector<32x128xf32> to vector<1x32x128xf32>
    %cst_82 = arith.constant dense<0.000000e+00> : vector<1xf32>
    %168 = vector.multi_reduction <add>, %167, %cst_82 [1, 2] : vector<1x32x128xf32> to vector<1xf32>
    %169 = vector.shape_cast %168 : vector<1xf32> to vector<1x1x1xf32>
    %170 = vector.extract %169[0, 0, 0] : f32 from vector<1x1x1xf32>
    %171 = arith.mulf %166, %166 : vector<32x128xf32>
    %172 = vector.shape_cast %171 : vector<32x128xf32> to vector<1x32x128xf32>
    %cst_83 = arith.constant dense<0.000000e+00> : vector<1xf32>
    %173 = vector.multi_reduction <add>, %172, %cst_83 [1, 2] : vector<1x32x128xf32> to vector<1xf32>
    %174 = vector.shape_cast %173 : vector<1xf32> to vector<1x1x1xf32>
    %175 = vector.extract %174[0, 0, 0] : f32 from vector<1x1x1xf32>
    %cst_84 = arith.constant 4.8828125E-4 : f32
    %176 = arith.mulf %170, %cst_84 : f32
    %cst_85 = arith.constant 4.8828125E-4 : f32
    %177 = arith.mulf %175, %cst_85 : f32
    %178 = arith.mulf %176, %176 : f32
    %179 = arith.subf %177, %178 : f32
    %cst_86 = arith.constant 9.99999974E-6 : f32
    %180 = arith.addf %179, %cst_86 : f32
    %181 = math.rsqrt %180 : f32
    %182 = vector.broadcast %176 : f32 to vector<32x128xf32>
    %183 = arith.subf %166, %182 : vector<32x128xf32>
    %184 = vector.broadcast %181 : f32 to vector<32x128xf32>
    %185 = arith.mulf %183, %184 : vector<32x128xf32>
    %c0_87 = arith.constant 0 : index
    %c0_88 = arith.constant 0 : index
    %186 = vector.load %arg5[%c0_87, %c0_88] : memref<32x128xf32, #tpu.memory_space<vmem>>, vector<32x128xf32>
    %187 = arith.mulf %185, %186 : vector<32x128xf32>
    %c0_89 = arith.constant 0 : index
    %c0_90 = arith.constant 0 : index
    %188 = vector.load %arg6[%c0_89, %c0_90] : memref<32x128xf32, #tpu.memory_space<vmem>>, vector<32x128xf32>
    %189 = arith.addf %187, %188 : vector<32x128xf32>
    %cst_91 = arith.constant 0.000000e+00 : f32
    %190 = vector.broadcast %cst_91 : f32 to vector<32x128xf32>
    %191 = arith.maximumf %189, %190 : vector<32x128xf32>
    %c0_92 = arith.constant 0 : index
    %c128_93 = arith.constant 128 : index
    %192 = vector.load %arg7[%c0_92, %c128_93] : memref<1x256xf32, #tpu.memory_space<vmem>>, vector<1x128xf32>
    %193 = vector.broadcast %192 : vector<1x128xf32> to vector<32x128xf32>
    %194 = arith.mulf %191, %193 : vector<32x128xf32>
    %c0_94 = arith.constant 0 : index
    %c128_95 = arith.constant 128 : index
    %195 = vector.load %arg12[%c0_94, %c128_95] : memref<32x256xf32, #tpu.memory_space<vmem>>, vector<32x128xf32>
    tpu.vector_store %arg12[%c0_94, %c128_95], %194 {strides = array<i32>} : memref<32x256xf32, #tpu.memory_space<vmem>>, vector<32x128xf32>,
    %c0_96 = arith.constant 0 : index
    %c0_97 = arith.constant 0 : index
    %196 = vector.load %arg12[%c0_96, %c0_97] : memref<32x256xf32, #tpu.memory_space<vmem>>, vector<32x256xf32>
    %197 = vector.extract_strided_slice %196 {offsets = [0, 245], sizes = [32, 11], strides = [1, 1]} : vector<32x256xf32> to vector<32x11xf32>
    %198 = vector.extract_strided_slice %196 {offsets = [0, 0], sizes = [32, 245], strides = [1, 1]} : vector<32x256xf32> to vector<32x245xf32>
    %199 = tpu.concatenate %197, %198 in 1 : vector<32x11xf32>, vector<32x245xf32> -> vector<32x256xf32>
    %c0_98 = arith.constant 0 : index
    %c0_99 = arith.constant 0 : index
    %200 = vector.load %arg9[%c0_98, %c0_99] : memref<576x256xf32, #tpu.memory_space<vmem>>, vector<32x256xf32>
    tpu.vector_store %arg9[%c0_98, %c0_99], %199 {strides = array<i32>} : memref<576x256xf32, #tpu.memory_space<vmem>>, vector<32x256xf32>,
    %201 = vector.extract_strided_slice %196 {offsets = [0, 246], sizes = [32, 10], strides = [1, 1]} : vector<32x256xf32> to vector<32x10xf32>
    %202 = vector.extract_strided_slice %196 {offsets = [0, 0], sizes = [32, 246], strides = [1, 1]} : vector<32x256xf32> to vector<32x246xf32>
    %203 = tpu.concatenate %201, %202 in 1 : vector<32x10xf32>, vector<32x246xf32> -> vector<32x256xf32>
    %c32_100 = arith.constant 32 : index
    %c0_101 = arith.constant 0 : index
    %204 = vector.load %arg9[%c32_100, %c0_101] : memref<576x256xf32, #tpu.memory_space<vmem>>, vector<32x256xf32>
    tpu.vector_store %arg9[%c32_100, %c0_101], %203 {strides = array<i32>} : memref<576x256xf32, #tpu.memory_space<vmem>>, vector<32x256xf32>,
    %205 = vector.extract_strided_slice %196 {offsets = [0, 247], sizes = [32, 9], strides = [1, 1]} : vector<32x256xf32> to vector<32x9xf32>
    %206 = vector.extract_strided_slice %196 {offsets = [0, 0], sizes = [32, 247], strides = [1, 1]} : vector<32x256xf32> to vector<32x247xf32>
    %207 = tpu.concatenate %205, %206 in 1 : vector<32x9xf32>, vector<32x247xf32> -> vector<32x256xf32>
    %c64_102 = arith.constant 64 : index
    %c0_103 = arith.constant 0 : index
    %208 = vector.load %arg9[%c64_102, %c0_103] : memref<576x256xf32, #tpu.memory_space<vmem>>, vector<32x256xf32>
    tpu.vector_store %arg9[%c64_102, %c0_103], %207 {strides = array<i32>} : memref<576x256xf32, #tpu.memory_space<vmem>>, vector<32x256xf32>,
    %209 = vector.extract_strided_slice %196 {offsets = [0, 255], sizes = [32, 1], strides = [1, 1]} : vector<32x256xf32> to vector<32x1xf32>
    %210 = vector.extract_strided_slice %196 {offsets = [0, 0], sizes = [32, 255], strides = [1, 1]} : vector<32x256xf32> to vector<32x255xf32>
    %211 = tpu.concatenate %209, %210 in 1 : vector<32x1xf32>, vector<32x255xf32> -> vector<32x256xf32>
    %c96_104 = arith.constant 96 : index
    %c0_105 = arith.constant 0 : index
    %212 = vector.load %arg9[%c96_104, %c0_105] : memref<576x256xf32, #tpu.memory_space<vmem>>, vector<32x256xf32>
    tpu.vector_store %arg9[%c96_104, %c0_105], %211 {strides = array<i32>} : memref<576x256xf32, #tpu.memory_space<vmem>>, vector<32x256xf32>,
    %c128_106 = arith.constant 128 : index
    %c0_107 = arith.constant 0 : index
    %213 = vector.load %arg9[%c128_106, %c0_107] : memref<576x256xf32, #tpu.memory_space<vmem>>, vector<32x256xf32>
    tpu.vector_store %arg9[%c128_106, %c0_107], %196 {strides = array<i32>} : memref<576x256xf32, #tpu.memory_space<vmem>>, vector<32x256xf32>,
    %214 = vector.extract_strided_slice %196 {offsets = [0, 1], sizes = [32, 255], strides = [1, 1]} : vector<32x256xf32> to vector<32x255xf32>
    %215 = vector.extract_strided_slice %196 {offsets = [0, 0], sizes = [32, 1], strides = [1, 1]} : vector<32x256xf32> to vector<32x1xf32>
    %216 = tpu.concatenate %214, %215 in 1 : vector<32x255xf32>, vector<32x1xf32> -> vector<32x256xf32>
    %c160_108 = arith.constant 160 : index
    %c0_109 = arith.constant 0 : index
    %217 = vector.load %arg9[%c160_108, %c0_109] : memref<576x256xf32, #tpu.memory_space<vmem>>, vector<32x256xf32>
    tpu.vector_store %arg9[%c160_108, %c0_109], %216 {strides = array<i32>} : memref<576x256xf32, #tpu.memory_space<vmem>>, vector<32x256xf32>,
    %218 = vector.extract_strided_slice %196 {offsets = [0, 9], sizes = [32, 247], strides = [1, 1]} : vector<32x256xf32> to vector<32x247xf32>
    %219 = vector.extract_strided_slice %196 {offsets = [0, 0], sizes = [32, 9], strides = [1, 1]} : vector<32x256xf32> to vector<32x9xf32>
    %220 = tpu.concatenate %218, %219 in 1 : vector<32x247xf32>, vector<32x9xf32> -> vector<32x256xf32>
    %c192_110 = arith.constant 192 : index
    %c0_111 = arith.constant 0 : index
    %221 = vector.load %arg9[%c192_110, %c0_111] : memref<576x256xf32, #tpu.memory_space<vmem>>, vector<32x256xf32>
    tpu.vector_store %arg9[%c192_110, %c0_111], %220 {strides = array<i32>} : memref<576x256xf32, #tpu.memory_space<vmem>>, vector<32x256xf32>,
    %222 = vector.extract_strided_slice %196 {offsets = [0, 10], sizes = [32, 246], strides = [1, 1]} : vector<32x256xf32> to vector<32x246xf32>
    %223 = vector.extract_strided_slice %196 {offsets = [0, 0], sizes = [32, 10], strides = [1, 1]} : vector<32x256xf32> to vector<32x10xf32>
    %224 = tpu.concatenate %222, %223 in 1 : vector<32x246xf32>, vector<32x10xf32> -> vector<32x256xf32>
    %c224_112 = arith.constant 224 : index
    %c0_113 = arith.constant 0 : index
    %225 = vector.load %arg9[%c224_112, %c0_113] : memref<576x256xf32, #tpu.memory_space<vmem>>, vector<32x256xf32>
    tpu.vector_store %arg9[%c224_112, %c0_113], %224 {strides = array<i32>} : memref<576x256xf32, #tpu.memory_space<vmem>>, vector<32x256xf32>,
    %226 = vector.extract_strided_slice %196 {offsets = [0, 11], sizes = [32, 245], strides = [1, 1]} : vector<32x256xf32> to vector<32x245xf32>
    %227 = vector.extract_strided_slice %196 {offsets = [0, 0], sizes = [32, 11], strides = [1, 1]} : vector<32x256xf32> to vector<32x11xf32>
    %228 = tpu.concatenate %226, %227 in 1 : vector<32x245xf32>, vector<32x11xf32> -> vector<32x256xf32>
    %c256_114 = arith.constant 256 : index
    %c0_115 = arith.constant 0 : index
    %229 = vector.load %arg9[%c256_114, %c0_115] : memref<576x256xf32, #tpu.memory_space<vmem>>, vector<32x256xf32>
    tpu.vector_store %arg9[%c256_114, %c0_115], %228 {strides = array<i32>} : memref<576x256xf32, #tpu.memory_space<vmem>>, vector<32x256xf32>,
    %c0_116 = arith.constant 0 : index
    %c0_117 = arith.constant 0 : index
    %230 = vector.load %arg10[%c0_116, %c0_117] : memref<32x256xf32, #tpu.memory_space<vmem>>, vector<32x256xf32>
    %c0_118 = arith.constant 0 : index
    %c0_119 = arith.constant 0 : index
    %231 = vector.load %arg4[%c0_118, %c0_119] : memref<32x288xf32, #tpu.memory_space<vmem>>, vector<32x288xf32>
    %c0_120 = arith.constant 0 : index
    %c0_121 = arith.constant 0 : index
    %232 = vector.load %arg9[%c0_120, %c0_121] : memref<576x256xf32, #tpu.memory_space<vmem>>, vector<288x256xf32>
    %cst_122 = arith.constant dense<0.000000e+00> : vector<32x256xf32>
    %233 = tpu.matmul %231, %232, %cst_122 {dimension_numbers = #tpu.dot_dimension_numbers<[1], [0], [0], [1], [0, 0, 1, 1], [], []>} : vector<32x288xf32>, vector<288x256xf32>, vector<32x256xf32> -> vector<32x256xf32>
    %234 = arith.addf %230, %233 : vector<32x256xf32>
    %c0_123 = arith.constant 0 : index
    %c0_124 = arith.constant 0 : index
    %235 = vector.load %arg8[%c0_123, %c0_124] : memref<32x256xf32, #tpu.memory_space<vmem>>, vector<32x256xf32>
    tpu.vector_store %arg8[%c0_123, %c0_124], %234 {strides = array<i32>} : memref<32x256xf32, #tpu.memory_space<vmem>>, vector<32x256xf32>,
    return
  }
}

</mosaic_0001>

<bundles_post_ra>
// kernel: forward.1
= control target key start
LH: loop header
LB: loop body
LE: loop exit
PB: predicated region body
PF: predicated region fallthrough
CT: control target
= control target key end

     0   :  { %s3753_s13 = smov 1   ;;  %s3754_s14 = smov 10   ;;  %vm369_vm0 = vcmask 7168   ;;  %vm191_vm1 = vcmask 80896   ;;  %vm102_vm2 = vcmask 89088   ;;  %vm280_vm3 = vcmask 72704   ;;  %s5681_s0 = inlined_call_operand.vmem [shape: f32[64,256], index: 0, kind: input, shape index: {}]   ;;  %s5682_s2 = inlined_call_operand.vmem [shape: f32[32,576], index: 2, kind: input, shape index: {}]   ;;  %s5683_s7 = inlined_call_operand.vmem [shape: f32[1,256], index: 7, kind: input, shape index: {}]   ;;  %s5684_s3 = inlined_call_operand.vmem [shape: f32[64,288], index: 3, kind: input, shape index: {}]   ;;  %s5685_s1 = inlined_call_operand.vmem [shape: f32[32,256], index: 1, kind: input, shape index: {}]   ;;  %s5686_s5 = inlined_call_operand.vmem [shape: f32[32,128], index: 5, kind: input, shape index: {}]   ;;  %s5687_s6 = inlined_call_operand.vmem [shape: f32[32,128], index: 6, kind: input, shape index: {}]   ;;  %s5688_s4 = inlined_call_operand.vmem [shape: f32[32,288], index: 4, kind: input, shape index: {}]   ;;  %s5689_s8 = inlined_call_operand.vmem [shape: f32[32,256], index: 8, kind: output, shape index: {}]  }
   0x1   :  { %v3809_v0 = vld [vmem:[%s5681_s0 + $0x70] sm:$0xff]  ;;  %v45_v1 = vld [vmem:[%s5681_s0 + $0x78] sm:$0xff]  ;;  %v3818_v3 = vld [vmem:[%s5681_s0 + $0x60] sm:$0xff]  ;;  %s3755_s19 = smov 11   ;;  %s3756_s20 = smov 9   ;;  %vm466_vm4 = vcmask 1039360  }
   0x2   :  { %v3097_v2 = vpack.i.bf16 %v3809_v0, %v45_v1  ;;  %v43_v4 = vld [vmem:[%s5681_s0 + $0x68] sm:$0xff]  ;;  %v3829_v6 = vld [vmem:[%s5681_s0 + $0x50] sm:$0xff]  ;;  %v41_v7 = vld [vmem:[%s5681_s0 + $0x58] sm:$0xff]  ;;  %v3903_v24 = vpack.i.bf16 %v45_v1, %v3809_v0  ;;  %s3757_s21 = smov 127   ;;  %s3758_s22 = smov 118   ;;  %vm644_vm5 = vcmask 965632  }
   0x3   :  { %v3107_v5 = vpack.i.bf16 %v3818_v3, %v43_v4  ;;  %v3838_v8 = vld [vmem:[%s5681_s0 + $0x40] sm:$0xff]  ;;  %v39_v9 = vld [vmem:[%s5681_s0 + $0x48] sm:$0xff]  ;;  %v3102_v10 = vpack.i.bf16 %v3829_v6, %v41_v7  ;;  %v3850_v12 = vld [vmem:[%s5681_s0 + $0x30] sm:$0xff]  ;;  %v3910_v25 = vpack.i.bf16 %v43_v4, %v3818_v3  ;;  %v3921_v26 = vpack.i.bf16 %v41_v7, %v3829_v6  ;;  %s3759_s23 = smov 119   ;;  %s3760_s24 = smov 117  }
   0x4   :  { %3098 = vrot.lane.b32.xlu1 %v3097_v2, %s3753_s13  ;;  %3088 = vrot.lane.b32.xlu0 %v3097_v2, %s3754_s14  ;;  %v3112_v11 = vpack.i.bf16 %v3838_v8, %v39_v9  ;;  %v37_v13 = vld [vmem:[%s5681_s0 + $0x38] sm:$0xff]  ;;  %v3862_v15 = vld [vmem:[%s5681_s0 + $0x20] sm:$0xff]  ;;  %v3929_v27 = vpack.i.bf16 %v39_v9, %v3838_v8  ;;  %vm733_vm6 = vcmask 957440   ;;  %vm555_vm7 = vcmask 973824  }
   0x5   :  { %3108 = vrot.lane.b32.xlu2 %v3107_v5, %s3753_s13  ;;  %v3122_v14 = vpack.i.bf16 %v3850_v12, %v37_v13  ;;  %v35_v16 = vld [vmem:[%s5681_s0 + $0x28] sm:$0xff]  ;;  %v3871_v17 = vld [vmem:[%s5681_s0 + $0x10] sm:$0xff]  ;;  %v33_v18 = vld [vmem:[%s5681_s0 + $0x18] sm:$0xff]  ;;  %v3937_v31 = vpack.i.bf16 %v37_v13, %v3850_v12  ;;  %vm954_vm8 = vcmask 523264   ;;  %vm1742_vm9 = vcmask 261120  }
   0x6   :  { %v3132_v19 = vpack.i.bf16 %v3862_v15, %v35_v16  ;;  %v3142_v20 = vpack.i.bf16 %v3871_v17, %v33_v18  ;;  %v3883_v21 = vld [vmem:[%s5681_s0] sm:$0xff]  ;;  %v3888_v22 = vld [vmem:[%s5681_s0 + $0x8] sm:$0xff]  ;;  %v3947_v36 = vpack.i.bf16 %v35_v16, %v3862_v15  ;;  %v3960_v39 = vpack.i.bf16 %v33_v18, %v3871_v17 }
   0x7   :  { %v3152_v23 = vpack.i.bf16 %v3883_v21, %v3888_v22  ;;  %v3979_v45 = vpack.i.bf16 %v3888_v22, %v3883_v21 }
   0xc   :  { %3093 = vrot.lane.b32.xlu0 %v3107_v5, %s3754_s14  ;;  %3103 = vrot.lane.b32.xlu1 %v3102_v10, %s3754_s14 }
   0xd   :  { %3113 = vrot.lane.b32.xlu2 %v3112_v11, %s3754_s14 }
  0x14   :  { %3118 = vrot.lane.b32.xlu0 %v3102_v10, %s3753_s13  ;;  %3123 = vrot.lane.b32.xlu1 %v3122_v14, %s3754_s14 }
  0x15   :  { %3128 = vrot.lane.b32.xlu2 %v3112_v11, %s3753_s13 }
  0x1c   :  { %3138 = vrot.lane.b32.xlu1 %v3122_v14, %s3753_s13  ;;  %3133 = vrot.lane.b32.xlu0 %v3132_v19, %s3754_s14 }
  0x1d   :  { %3143 = vrot.lane.b32.xlu2 %v3142_v20, %s3754_s14 }
  0x24   :  { %3148 = vrot.lane.b32.xlu0 %v3132_v19, %s3753_s13  ;;  %3153 = vrot.lane.b32.xlu1 %v3152_v23, %s3754_s14 }
  0x25   :  { %3158 = vrot.lane.b32.xlu2 %v3142_v20, %s3753_s13 }
  0x2c   :  { %3163 = vrot.lane.b32.xlu0 %v3097_v2, %s3755_s19  ;;  %3168 = vrot.lane.b32.xlu1 %v3152_v23, %s3753_s13 }
  0x2d   :  { %3173 = vrot.lane.b32.xlu2 %v3107_v5, %s3755_s19 }
  0x34   :  { %3178 = vrot.lane.b32.xlu0 %v3097_v2, %s3756_s20  ;;  %3183 = vrot.lane.b32.xlu1 %v3102_v10, %s3755_s19 }
  0x35   :  { %3188 = vrot.lane.b32.xlu2 %v3107_v5, %s3756_s20 }
  0x3c   :  { %3193 = vrot.lane.b32.xlu0 %v3112_v11, %s3755_s19  ;;  %3198 = vrot.lane.b32.xlu1 %v3102_v10, %s3756_s20 }
  0x3d   :  { %3203 = vrot.lane.b32.xlu2 %v3903_v24, %s3757_s21 }
  0x44   :  { %3208 = vrot.lane.b32.xlu0 %v3122_v14, %s3755_s19  ;;  %3213 = vrot.lane.b32.xlu1 %v3112_v11, %s3756_s20 }
  0x45   :  { %3218 = vrot.lane.b32.xlu2 %v3910_v25, %s3757_s21 }
  0x4c   :  { %3223 = vrot.lane.b32.xlu0 %v3903_v24, %s3758_s22  ;;  %3228 = vrot.lane.b32.xlu1 %v3132_v19, %s3755_s19 }
  0x4d   :  { %3233 = vrot.lane.b32.xlu2 %v3122_v14, %s3756_s20 }
  0x54   :  { %3238 = vrot.lane.b32.xlu0 %v3921_v26, %s3757_s21  ;;  %3243 = vrot.lane.b32.xlu1 %v3910_v25, %s3758_s22 }
  0x55   :  { %3248 = vrot.lane.b32.xlu2 %v3142_v20, %s3755_s19 }
  0x5c   :  { %3253 = vrot.lane.b32.xlu0 %v3132_v19, %s3756_s20  ;;  %3258 = vrot.lane.b32.xlu1 %v3929_v27, %s3757_s21 }
  0x5d   :  { %3263 = vrot.lane.b32.xlu2 %v3921_v26, %s3758_s22 }
  0x5f   :  { %v3109_v28 = vpop.permute.xlu2 %3108 }
  0x60   :  { %v3111_v29 = vunpack.i.h.bf16 %v3109_v28  ;;  %v3110_v30 = vunpack.i.l.bf16 %v3109_v28 }
  0x62   :  { %v3940_v32 = vsel %vm369_vm0, %v3111_v29, %v3110_v30  ;;  %v400_v57 = vsel %vm369_vm0, %v3110_v30, %v3111_v29 }
  0x64   :  { %3268 = vrot.lane.b32.xlu0 %v3152_v23, %s3755_s19  ;;  %3273 = vrot.lane.b32.xlu1 %v3142_v20, %s3756_s20 }
  0x65   :  { %3278 = vrot.lane.b32.xlu2 %v3937_v31, %s3757_s21 }
  0x67   :  { %v3114_v33 = vpop.permute.xlu2 %3113 }
  0x68   :  { %v3116_v34 = vunpack.i.h.bf16 %v3114_v33  ;;  %v3115_v35 = vunpack.i.l.bf16 %v3114_v33 }
  0x6a   :  { %v3950_v37 = vsel %vm191_vm1, %v3116_v34, %v3115_v35  ;;  %v220_v14 = vsel %vm191_vm1, %v3115_v35, %v3116_v34 }
  0x6c   :  { %3283 = vrot.lane.b32.xlu0 %v3929_v27, %s3758_s22  ;;  %3288 = vrot.lane.b32.xlu1 %v3152_v23, %s3756_s20 }
  0x6d   :  { %3293 = vrot.lane.b32.xlu2 %v3947_v36, %s3757_s21 }
  0x6f   :  { %v3957_v38 = vpop.permute.xlu2 %3128 }
  0x70   :  { %v3131_v40 = vunpack.i.h.bf16 %v3957_v38  ;;  %v3130_v41 = vunpack.i.l.bf16 %v3957_v38 }
  0x72   :  { %v3969_v42 = vsel %vm369_vm0, %v3131_v40, %v3130_v41 }
  0x74   :  { %3298 = vrot.lane.b32.xlu0 %v3937_v31, %s3758_s22  ;;  %3303 = vrot.lane.b32.xlu1 %v3960_v39, %s3757_s21 }
  0x75   :  { %3308 = vrot.lane.b32.xlu2 %v3947_v36, %s3758_s22 }
  0x76   :  { %v3099_v43 = vpop.permute.xlu1 %3098  ;;  %v3089_v44 = vpop.permute.xlu0 %3088 }
  0x77   :  { %v3101_v46 = vunpack.i.h.bf16 %v3099_v43  ;;  %v3100_v47 = vunpack.i.l.bf16 %v3099_v43  ;;  %v3091_v48 = vunpack.i.h.bf16 %v3089_v44  ;;  %v3090_v49 = vunpack.i.l.bf16 %v3089_v44  ;;  %v3981_v50 = vpop.permute.xlu2 %3143 }
  0x78   :  { %v3146_v51 = vunpack.i.h.bf16 %v3981_v50  ;;  %v3145_v52 = vunpack.i.l.bf16 %v3981_v50  ;;  %v398_v44 = vsel %vm369_vm0, %v3130_v41, %v3131_v40 }
  0x79   :  { %v223_v53 = vsel %vm191_vm1, %v3090_v49, %v3091_v48  ;;  %v401_v54 = vsel %vm369_vm0, %v3100_v47, %v3101_v46  ;;  %v3988_v55 = vsel %vm191_vm1, %v3091_v48, %v3090_v49  ;;  %v3991_v56 = vsel %vm369_vm0, %v3101_v46, %v3100_v47 }
  0x7a   :  { %967 = vmatpush.msra.mxu0 %v223_v53  ;;  %996 = vmatpush.msra.mxu1 %v401_v54  ;;  %v3999_v58 = vsel %vm191_vm1, %v3146_v51, %v3145_v52 }
  0x7c   :  { %3313 = vrot.lane.b32.xlu0 %v3979_v45, %s3757_s21  ;;  %3318 = vrot.lane.b32.xlu1 %v3960_v39, %s3758_s22 }
  0x7d   :  { %997 = vmatpush.msra.mxu1 %v400_v57  ;;  %3323 = vrot.lane.b32.xlu2 %v3979_v45, %s3758_s22 }
  0x7e   :  { %v3094_v59 = vpop.permute.xlu0 %3093  ;;  %v3104_v60 = vpop.permute.xlu1 %3103 }
  0x7f   :  { %v3096_v61 = vunpack.i.h.bf16 %v3094_v59  ;;  %v3095_v62 = vunpack.i.l.bf16 %v3094_v59  ;;  %v3106_v63 = vunpack.i.h.bf16 %v3104_v60  ;;  %v3105_v1 = vunpack.i.l.bf16 %v3104_v60  ;;  %v4007_v2 = vpop.permute.xlu2 %3158 }
  0x80   :  { %v3161_v4 = vunpack.i.h.bf16 %v4007_v2  ;;  %v3160_v5 = vunpack.i.l.bf16 %v4007_v2 }
  0x81   :  { %v222_v7 = vsel %vm191_vm1, %v3095_v62, %v3096_v61  ;;  %v4013_v9 = vsel %vm191_vm1, %v3096_v61, %v3095_v62  ;;  %v4016_v10 = vsel %vm191_vm1, %v3106_v63, %v3105_v1  ;;  %v221_v11 = vsel %vm191_vm1, %v3105_v1, %v3106_v63 }
  0x82   :  { %968 = vmatpush.msra.mxu0 %v222_v7  ;;  %v4024_v13 = vsel %vm369_vm0, %v3161_v4, %v3160_v5  ;;  %v217_v62 = vsel %vm191_vm1, %v3145_v52, %v3146_v51 }
  0x84   :  { %3328 = vrot.lane.b32.xlu0 %v3903_v24, %s3759_s23  ;;  %3333 = vrot.lane.b32.xlu1 %v3910_v25, %s3759_s23 }
  0x85   :  { %969 = vmatpush.msra.mxu0 %v221_v11  ;;  %3338 = vrot.lane.b32.xlu2 %v3921_v26, %s3759_s23 }
  0x86   :  { %v3119_v16 = vpop.permute.xlu0 %3118  ;;  %v3124_v18 = vpop.permute.xlu1 %3123 }
  0x87   :  { %v3121_v19 = vunpack.i.h.bf16 %v3119_v16  ;;  %v3120_v20 = vunpack.i.l.bf16 %v3119_v16  ;;  %v3126_v22 = vunpack.i.h.bf16 %v3124_v18  ;;  %v3125_v23 = vunpack.i.l.bf16 %v3124_v18  ;;  %970 = vmatpush.msra.mxu0 %v220_v14  ;;  %v4033_v28 = vpop.permute.xlu2 %3173 }
  0x88   :  { %v3176_v29 = vunpack.i.h.bf16 %v4033_v28  ;;  %v3175_v30 = vunpack.i.l.bf16 %v4033_v28 }
  0x89   :  { %v399_v33 = vsel %vm369_vm0, %v3120_v20, %v3121_v19  ;;  %v219_v34 = vsel %vm191_vm1, %v3125_v23, %v3126_v22  ;;  %v4040_v35 = vsel %vm191_vm1, %v3126_v22, %v3125_v23  ;;  %v4043_v43 = vsel %vm369_vm0, %v3121_v19, %v3120_v20 }
  0x8a   :  { %998 = vmatpush.msra.mxu1 %v399_v33  ;;  %971 = vmatpush.msra.mxu0 %v219_v34  ;;  %v4055_v46 = vsel %vm102_vm2, %v3176_v29, %v3175_v30  ;;  %v395_v23 = vsel %vm369_vm0, %v3160_v5, %v3161_v4 }
  0x8c   :  { %3343 = vrot.lane.b32.xlu0 %v3929_v27, %s3759_s23  ;;  %3348 = vrot.lane.b32.xlu1 %v3937_v31, %s3759_s23 }
  0x8d   :  { %999 = vmatpush.msra.mxu1 %v398_v44  ;;  %3353 = vrot.lane.b32.xlu2 %v3903_v24, %s3760_s24 }
  0x8e   :  { %v3139_v38 = vpop.permute.xlu1 %3138  ;;  %v3134_v40 = vpop.permute.xlu0 %3133 }
  0x8f   :  { %v3141_v41 = vunpack.i.h.bf16 %v3139_v38  ;;  %v3140_v47 = vunpack.i.l.bf16 %v3139_v38  ;;  %v3136_v48 = vunpack.i.h.bf16 %v3134_v40  ;;  %v3135_v49 = vunpack.i.l.bf16 %v3134_v40  ;;  %v4063_v53 = vpop.permute.xlu2 %3188 }
  0x90   :  { %v3191_v54 = vunpack.i.h.bf16 %v4063_v53  ;;  %v3190_v57 = vunpack.i.l.bf16 %v4063_v53 }
  0x91   :  { %v218_v59 = vsel %vm191_vm1, %v3135_v49, %v3136_v48  ;;  %v397_v60 = vsel %vm369_vm0, %v3140_v47, %v3141_v41  ;;  %v4070_v61 = vsel %vm191_vm1, %v3136_v48, %v3135_v49  ;;  %v4073_v24 = vsel %vm369_vm0, %v3141_v41, %v3140_v47 }
  0x92   :  { %972 = vmatpush.msra.mxu0 %v218_v59  ;;  %1000 = vmatpush.msra.mxu1 %v397_v60  ;;  %v4085_v63 = vsel %vm280_vm3, %v3191_v54, %v3190_v57 }
  0x94   :  { %3358 = vrot.lane.b32.xlu0 %v3947_v36, %s3759_s23  ;;  %3363 = vrot.lane.b32.xlu1 %v3910_v25, %s3760_s24 }
  0x95   :  { %973 = vmatpush.msra.mxu0 %v217_v62  ;;  %3368 = vrot.lane.b32.xlu2 %v3960_v39, %s3759_s23 }
  0x96   :  { %v3149_v50 = vpop.permute.xlu0 %3148  ;;  %v3154_v1 = vpop.permute.xlu1 %3153 }
  0x97   :  { %v3151_v51 = vunpack.i.h.bf16 %v3149_v50  ;;  %v3150_v52 = vunpack.i.l.bf16 %v3149_v50  ;;  %v3156_v7 = vunpack.i.h.bf16 %v3154_v1  ;;  %v3155_v11 = vunpack.i.l.bf16 %v3154_v1  ;;  %v3204_v14 = vpop.permute.xlu2 %3203 }
  0x98   :  { %v3206_v16 = vunpack.i.h.bf16 %v3204_v14  ;;  %v3205_v18 = vunpack.i.l.bf16 %v3204_v14 }
  0x99   :  { %v396_v19 = vsel %vm369_vm0, %v3150_v52, %v3151_v51  ;;  %v216_v20 = vsel %vm191_vm1, %v3155_v11, %v3156_v7  ;;  %v4096_v25 = vsel %vm191_vm1, %v3156_v7, %v3155_v11  ;;  %v4099_v22 = vsel %vm369_vm0, %v3151_v51, %v3150_v52 }
  0x9a   :  { %1001 = vmatpush.msra.mxu1 %v396_v19  ;;  %974 = vmatpush.msra.mxu0 %v216_v20  ;;  %v474_v33 = vsel %vm466_vm4, %v3205_v18, %v3206_v16  ;;  %v4108_v34 = vsel %vm466_vm4, %v3206_v16, %v3205_v18 }
  0x9b   :  { %1025 = vmatpush.msra.mxu2 %v474_v33 }
  0x9c   :  { %3373 = vrot.lane.b32.xlu0 %v3921_v26, %s3760_s24  ;;  %3378 = vrot.lane.b32.xlu1 %v3979_v45, %s3759_s23 }
  0x9d   :  { %1002 = vmatpush.msra.mxu1 %v395_v23  ;;  %3383 = vrot.lane.b32.xlu2 %v3929_v27, %s3760_s24  ;;  %v133_v27 = vsel %vm102_vm2, %v3175_v30, %v3176_v29 }
  0x9e   :  { %v3164_v44 = vpop.permute.xlu0 %3163  ;;  %v3169_v2 = vpop.permute.xlu1 %3168 }
  0x9f   :  { %v3166_v38 = vunpack.i.h.bf16 %v3164_v44  ;;  %v3165_v4 = vunpack.i.l.bf16 %v3164_v44  ;;  %v3171_v5 = vunpack.i.h.bf16 %v3169_v2  ;;  %v3170_v40 = vunpack.i.l.bf16 %v3169_v2  ;;  %v3219_v41 = vpop.permute.xlu2 %3218 }
  0xa0   :  { %v3221_v47 = vunpack.i.h.bf16 %v3219_v41  ;;  %v3220_v48 = vunpack.i.l.bf16 %v3219_v41 }
  0xa1   :  { %v134_v49 = vsel %vm102_vm2, %v3165_v4, %v3166_v38  ;;  %v394_v26 = vsel %vm369_vm0, %v3170_v40, %v3171_v5  ;;  %v4119_v59 = vsel %vm102_vm2, %v3166_v38, %v3165_v4  ;;  %v4122_v60 = vsel %vm369_vm0, %v3171_v5, %v3170_v40 }
  0xa2   :  { %975 = vmatpush.msra.mxu0 %v134_v49  ;;  %1003 = vmatpush.msra.mxu1 %v394_v26  ;;  %v473_v62 = vsel %vm466_vm4, %v3220_v48, %v3221_v47  ;;  %v4131_v50 = vsel %vm466_vm4, %v3221_v47, %v3220_v48 }
  0xa3   :  { %1026 = vmatpush.msra.mxu2 %v473_v62 }
  0xa4   :  { %3388 = vrot.lane.b32.xlu0 %v3937_v31, %s3760_s24  ;;  %3393 = vrot.lane.b32.xlu1 %v3947_v36, %s3760_s24  ;;  %v311_v31 = vsel %vm280_vm3, %v3190_v57, %v3191_v54 }
  0xa5   :  { %976 = vmatpush.msra.mxu0 %v133_v27  ;;  %3398 = vrot.lane.b32.xlu2 %v3960_v39, %s3760_s24 }
  0xa6   :  { %v3179_v1 = vpop.permute.xlu0 %3178  ;;  %v3184_v28 = vpop.permute.xlu1 %3183 }
  0xa7   :  { %v3181_v51 = vunpack.i.h.bf16 %v3179_v1  ;;  %v3180_v29 = vunpack.i.l.bf16 %v3179_v1  ;;  %v3186_v30 = vunpack.i.h.bf16 %v3184_v28  ;;  %v3185_v52 = vunpack.i.l.bf16 %v3184_v28  ;;  %v3234_v7 = vpop.permute.xlu2 %3233 }
  0xa8   :  { %v3236_v11 = vunpack.i.h.bf16 %v3234_v7  ;;  %v3235_v14 = vunpack.i.l.bf16 %v3234_v7 }
  0xa9   :  { %v312_v36 = vsel %vm280_vm3, %v3180_v29, %v3181_v51  ;;  %v132_v16 = vsel %vm102_vm2, %v3185_v52, %v3186_v30  ;;  %v4147_v39 = vsel %vm102_vm2, %v3186_v30, %v3185_v52  ;;  %v4150_v18 = vsel %vm280_vm3, %v3181_v51, %v3180_v29 }
  0xaa   :  { %1004 = vmatpush.msra.mxu1 %v312_v36  ;;  %977 = vmatpush.msra.mxu0 %v132_v16  ;;  %v4153_v19 = vsel %vm280_vm3, %v3236_v11, %v3235_v14  ;;  %v308_v27 = vsel %vm280_vm3, %v3235_v14, %v3236_v11 }
  0xac   :  { %3403 = vrot.lane.b32.xlu0 %v3979_v45, %s3760_s24  ;;  %1005 = vmatpush.msra.mxu1 %v311_v31 }
  0xae   :  { %v3194_v53 = vpop.permute.xlu0 %3193  ;;  %v3199_v54 = vpop.permute.xlu1 %3198 }
  0xaf   :  { %v3196_v57 = vunpack.i.h.bf16 %v3194_v53  ;;  %v3195_v20 = vunpack.i.l.bf16 %v3194_v53  ;;  %v3201_v23 = vunpack.i.h.bf16 %v3199_v54  ;;  %v3200_v33 = vunpack.i.l.bf16 %v3199_v54  ;;  %v4157_v44 = vpop.permute.xlu2 %3248 }
  0xb0   :  { %v5690_v7 = vunpack.i.h.bf16 %v4157_v44  ;;  %v5691_v31 = vunpack.i.l.bf16 %v4157_v44 }
  0xb1   :  { %v131_v2 = vsel %vm102_vm2, %v3195_v20, %v3196_v57  ;;  %v310_v38 = vsel %vm280_vm3, %v3200_v33, %v3201_v23  ;;  %v4162_v4 = vsel %vm102_vm2, %v3196_v57, %v3195_v20  ;;  %v4165_v5 = vsel %vm280_vm3, %v3201_v23, %v3200_v33 }
  0xb2   :  { %978 = vmatpush.msra.mxu0 %v131_v2  ;;  %1006 = vmatpush.msra.mxu1 %v310_v38  ;;  %v128_v38 = vsel %vm102_vm2, %v5691_v31, %v5690_v7 }
  0xb6   :  { %v3209_v45 = vpop.permute.xlu0 %3208  ;;  %v3214_v40 = vpop.permute.xlu1 %3213 }
  0xb7   :  { %v3211_v41 = vunpack.i.h.bf16 %v3209_v45  ;;  %v3210_v47 = vunpack.i.l.bf16 %v3209_v45  ;;  %v3216_v48 = vunpack.i.h.bf16 %v3214_v40  ;;  %v3215_v49 = vunpack.i.l.bf16 %v3214_v40  ;;  %v3264_v26 = vpop.permute.xlu2 %3263 }
  0xb8   :  { %v3266_v62 = vunpack.i.h.bf16 %v3264_v26  ;;  %v3265_v1 = vunpack.i.l.bf16 %v3264_v26 }
  0xb9   :  { %v130_v28 = vsel %vm102_vm2, %v3210_v47, %v3211_v41  ;;  %v309_v51 = vsel %vm280_vm3, %v3215_v49, %v3216_v48  ;;  %v4171_v29 = vsel %vm102_vm2, %v3211_v41, %v3210_v47  ;;  %v4174_v30 = vsel %vm280_vm3, %v3216_v48, %v3215_v49 }
  0xba   :  { %979 = vmatpush.msra.mxu0 %v130_v28  ;;  %1007 = vmatpush.msra.mxu1 %v309_v51  ;;  %v4177_v52 = vsel %vm644_vm5, %v3266_v62, %v3265_v1  ;;  %v650_v51 = vsel %vm644_vm5, %v3265_v1, %v3266_v62 }
  0xbb   :  { %5704 = vst [vmem:[#allocation6_spill] sm:$0xff] %v4177_v52 }
  0xbc   :  { %1008 = vmatpush.msra.mxu1 %v308_v27 }
  0xbe   :  { %v3224_v11 = vpop.permute.xlu0 %3223  ;;  %v4181_v14 = vpop.permute.xlu1 %3228 }
  0xbf   :  { %v3226_v36 = vunpack.i.h.bf16 %v3224_v11  ;;  %v3225_v16 = vunpack.i.l.bf16 %v3224_v11  ;;  %v5692_v53 = vunpack.i.h.bf16 %v4181_v14  ;;  %v5693_v54 = vunpack.i.l.bf16 %v4181_v14  ;;  %v3279_v57 = vpop.permute.xlu2 %3278 }
  0xc0   :  { %v3281_v20 = vunpack.i.h.bf16 %v3279_v57  ;;  %v3280_v23 = vunpack.i.l.bf16 %v3279_v57 }
  0xc1   :  { %v652_v33 = vsel %vm644_vm5, %v3225_v16, %v3226_v36  ;;  %v129_v2 = vsel %vm102_vm2, %v5693_v54, %v5692_v53  ;;  %v4197_v45 = vsel %vm644_vm5, %v3226_v36, %v3225_v16 }
  0xc2   :  { %1054 = vmatpush.msra.mxu3 %v652_v33  ;;  %980 = vmatpush.msra.mxu0 %v129_v2  ;;  %v4200_v40 = vsel %vm466_vm4, %v3281_v20, %v3280_v23 }
  0xc4   :  { %981 = vmatpush.msra.mxu0 %v128_v38 }
  0xc6   :  { %v3239_v41 = vpop.permute.xlu0 %3238  ;;  %v3244_v47 = vpop.permute.xlu1 %3243 }
  0xc7   :  { %v3241_v48 = vunpack.i.h.bf16 %v3239_v41  ;;  %v3240_v49 = vunpack.i.l.bf16 %v3239_v41  ;;  %v3246_v26 = vunpack.i.h.bf16 %v3244_v47  ;;  %v3245_v27 = vunpack.i.l.bf16 %v3244_v47  ;;  %v3294_v28 = vpop.permute.xlu2 %3293 }
  0xc8   :  { %v3296_v11 = vunpack.i.h.bf16 %v3294_v28  ;;  %v3295_v57 = vunpack.i.l.bf16 %v3294_v28 }
  0xc9   :  { %v472_v36 = vsel %vm466_vm4, %v3240_v49, %v3241_v48  ;;  %v651_v16 = vsel %vm644_vm5, %v3245_v27, %v3246_v26  ;;  %v4206_v33 = vsel %vm466_vm4, %v3241_v48, %v3240_v49  ;;  %v4209_v2 = vsel %vm644_vm5, %v3246_v26, %v3245_v27 }
  0xca   :  { %1027 = vmatpush.msra.mxu2 %v472_v36  ;;  %1055 = vmatpush.msra.mxu3 %v651_v16  ;;  %v4212_v38 = vsel %vm466_vm4, %v3296_v11, %v3295_v57  ;;  %v470_v48 = vsel %vm466_vm4, %v3280_v23, %v3281_v20  ;;  %v469_v20 = vsel %vm466_vm4, %v3295_v57, %v3296_v11 }
  0xcc   :  { %1056 = vmatpush.msra.mxu3 %v650_v51 }
  0xce   :  { %v3254_v41 = vpop.permute.xlu0 %3253  ;;  %v3259_v62 = vpop.permute.xlu1 %3258 }
  0xcf   :  { %v3256_v1 = vunpack.i.h.bf16 %v3254_v41  ;;  %v3255_v47 = vunpack.i.l.bf16 %v3254_v41  ;;  %v3261_v28 = vunpack.i.h.bf16 %v3259_v62  ;;  %v3260_v7 = vunpack.i.l.bf16 %v3259_v62  ;;  %v4214_v31 = vpop.permute.xlu2 %3308 }
  0xd0   :  { %v3311_v49 = vunpack.i.h.bf16 %v4214_v31  ;;  %v3310_v26 = vunpack.i.l.bf16 %v4214_v31 }
  0xd1   :  { %v307_v27 = vsel %vm280_vm3, %v3255_v47, %v3256_v1  ;;  %v471_v36 = vsel %vm466_vm4, %v3260_v7, %v3261_v28  ;;  %v4222_v51 = vsel %vm466_vm4, %v3261_v28, %v3260_v7  ;;  %v4225_v16 = vsel %vm280_vm3, %v3256_v1, %v3255_v47 }
  0xd2   :  { %1009 = vmatpush.msra.mxu1 %v307_v27  ;;  %1028 = vmatpush.msra.mxu2 %v471_v36  ;;  %v4228_v41 = vsel %vm644_vm5, %v3311_v49, %v3310_v26 }
  0xd3   :  { %5705 = vst [vmem:[#allocation7_spill] sm:$0xff] %v4228_v41 }
  0xd4   :  { %1029 = vmatpush.msra.mxu2 %v470_v48 }
  0xd6   :  { %v4231_v23 = vpop.permute.xlu0 %3268  ;;  %v3274_v31 = vpop.permute.xlu1 %3273  ;;  %1030 = vmatpush.msra.mxu2 %v469_v20 }
  0xd7   :  { %v5694_v62 = vunpack.i.h.bf16 %v4231_v23  ;;  %v5695_v7 = vunpack.i.l.bf16 %v4231_v23  ;;  %v3276_v28 = vunpack.i.h.bf16 %v3274_v31  ;;  %v3275_v53 = vunpack.i.l.bf16 %v3274_v31  ;;  %v4235_v1 = vpop.permute.xlu2 %3323 }
  0xd8   :  { %v5697_v47 = vunpack.i.h.bf16 %v4235_v1  ;;  %v5696_v27 = vunpack.i.l.bf16 %v4235_v1 }
  0xd9   :  { %v127_v11 = vsel %vm102_vm2, %v5695_v7, %v5694_v62  ;;  %v306_v57 = vsel %vm280_vm3, %v3275_v53, %v3276_v28  ;;  %v4246_v48 = vsel %vm280_vm3, %v3276_v28, %v3275_v53 }
  0xda   :  { %982 = vmatpush.msra.mxu0 %v127_v11  ;;  %1010 = vmatpush.msra.mxu1 %v306_v57  ;;  %v4253_v36 = vsel %vm644_vm5, %v5697_v47, %v5696_v27 }
  0xdb   :  { %5706 = vst [vmem:[#allocation8_spill] sm:$0xff] %v4253_v36  ;;  %v647_v36 = vsel %vm644_vm5, %v3310_v26, %v3311_v49  ;;  %v4313_v49 = vld [vmem:[%s5682_s2 + $0x30] sm:$0xff] }
  0xde   :  { %v3284_v20 = vpop.permute.xlu0 %3283  ;;  %v3289_v31 = vpop.permute.xlu1 %3288 }
  0xdf   :  { %v3286_v54 = vunpack.i.h.bf16 %v3284_v20  ;;  %v3285_v41 = vunpack.i.l.bf16 %v3284_v20  ;;  %v3291_v52 = vunpack.i.h.bf16 %v3289_v31  ;;  %v3290_v62 = vunpack.i.l.bf16 %v3289_v31  ;;  %v4255_v7 = vpop.permute.xlu2 %3338  ;;  %v4268_v20 = vld [vmem:[%s5682_s2] sm:$0xff]  ;;  %v4273_v31 = vld [vmem:[%s5682_s2 + $0x8] sm:$0xff] }
  0xe0   :  { %983 = vmatmul.f32.vlgmr.msra.gmra.mxu0 %v4268_v20 }
  0xe1   :  { %v305_v53 = vsel %vm280_vm3, %v3290_v62, %v3291_v52  ;;  %v649_v28 = vsel %vm644_vm5, %v3285_v41, %v3286_v54  ;;  %v4260_v11 = vsel %vm280_vm3, %v3291_v52, %v3290_v62  ;;  %v4263_v57 = vsel %vm644_vm5, %v3286_v54, %v3285_v41 }
  0xe2   :  { %5707 = vst [vmem:[#allocation9_spill] sm:$0xff] %v4263_v57  ;;  %1011 = vmatpush.msra.mxu1 %v305_v53  ;;  %1057 = vmatpush.msra.mxu3 %v649_v28  ;;  %v4307_v57 = vld [vmem:[%s5682_s2 + $0x28] sm:$0xff] }
  0xe3   :  { %1012 = vmatmul.f32.vlgmr.msra.gmra.mxu1 %v4273_v31 }
  0xe4   :  { %1112 = vmatpush.msrb.mxu1 %v3988_v55 }
  0xe6   :  { %1113 = vmatpush.msrb.mxu1 %v4013_v9  ;;  %v3299_v52 = vpop.permute.xlu0 %3298  ;;  %v4279_v54 = vpop.permute.xlu1 %3303 }
  0xe7   :  { %v3301_v41 = vunpack.i.h.bf16 %v3299_v52  ;;  %v3300_v62 = vunpack.i.l.bf16 %v3299_v52  ;;  %v5698_v53 = vunpack.i.h.bf16 %v4279_v54  ;;  %v5699_v28 = vunpack.i.l.bf16 %v4279_v54  ;;  %v4284_v27 = vpop.permute.xlu2 %3353 }
  0xe8   :  { %1114 = vmatpush.msrb.mxu1 %v4016_v10  ;;  %v3356_v55 = vunpack.i.h.bf16 %v4284_v27  ;;  %v3355_v47 = vunpack.i.l.bf16 %v4284_v27  ;;  %986 = vmatmul.f32.gmra.mxu0 %v4307_v57 }
  0xe9   :  { %v648_v9 = vsel %vm644_vm5, %v3300_v62, %v3301_v41  ;;  %v468_v52 = vsel %vm466_vm4, %v5699_v28, %v5698_v53  ;;  %v4297_v10 = vsel %vm644_vm5, %v3301_v41, %v3300_v62  ;;  %v5709_v53 = vunpack.i.l.bf16 %v4235_v1 }
  0xea   :  { %1115 = vmatpush.msrb.mxu1 %v3950_v37  ;;  %1058 = vmatpush.msra.mxu3 %v648_v9  ;;  %v741_v37 = vsel %vm733_vm6, %v3355_v47, %v3356_v55 }
  0xeb   :  { %1031 = vmatpush.msra.mxu2 %v468_v52  ;;  %1091 = vmatpush.msrb.mxu0 %v741_v37  ;;  %v5708_v37 = vunpack.i.h.bf16 %v4235_v1 }
  0xec   :  { %1116 = vmatpush.msrb.mxu1 %v4040_v35  ;;  %1059 = vmatpush.msra.mxu3 %v647_v36 }
  0xed   :  { %1015 = vmatmul.f32.gmra.mxu1 %v4313_v49  ;;  %v645_v28 = vsel %vm644_vm5, %v5709_v53, %v5708_v37  ;;  %v5700_v53 = vunpack.i.h.bf16 %v4255_v7 }
  0xee   :  { %1117 = vmatpush.msrb.mxu1 %v4070_v61  ;;  %v4317_v26 = vpop.permute.xlu0 %3313  ;;  %v3319_v41 = vpop.permute.xlu1 %3318 }
  0xef   :  { %v3316_v62 = vunpack.i.h.bf16 %v4317_v26  ;;  %v3315_v35 = vunpack.i.l.bf16 %v4317_v26  ;;  %v3321_v9 = vunpack.i.h.bf16 %v3319_v41  ;;  %v3320_v52 = vunpack.i.l.bf16 %v3319_v41  ;;  %v5718_v26 = vld [vmem:[#allocation6_spill] sm:$0xff] }
  0xf0   :  { %1118 = vmatpush.msrb.mxu1 %v3999_v58  ;;  %v4342_v58 = vld [vmem:[%s5682_s2 + $0x50] sm:$0xff] }
  0xf1   :  { %v467_v61 = vsel %vm466_vm4, %v3315_v35, %v3316_v62  ;;  %v646_v36 = vsel %vm644_vm5, %v3320_v52, %v3321_v9  ;;  %v4336_v41 = vsel %vm644_vm5, %v3321_v9, %v3320_v52  ;;  %989 = vmatmul.f32.gmra.mxu0 %v4342_v58  ;;  %v5701_v9 = vunpack.i.l.bf16 %v4255_v7 }
  0xf2   :  { %1119 = vmatpush.msrb.mxu1 %v4096_v25  ;;  %1032 = vmatpush.msra.mxu2 %v467_v61  ;;  %v4347_v25 = vld [vmem:[%s5682_s2 + $0x58] sm:$0xff] }
  0xf3   :  { %1060 = vmatpush.msra.mxu3 %v646_v36 }
  0xf4   :  { %1120 = vmatpush.msrb.mxu1 %v4119_v59  ;;  %1033 = vmatpush.msra.mxu2 %v3809_v0 }
  0xf5   :  { %1061 = vmatpush.msra.mxu3 %v645_v28  ;;  %1018 = vmatmul.f32.gmra.mxu1 %v4347_v25 }
  0xf6   :  { %1121 = vmatpush.msrb.mxu1 %v4055_v46  ;;  %v4352_v1 = vpop.permute.xlu0 %3328  ;;  %v4354_v59 = vpop.permute.xlu1 %3333  ;;  %1034 = vmatpush.msra.mxu2 %v3818_v3 }
  0xf7   :  { %v3331_v0 = vunpack.i.h.bf16 %v4352_v1  ;;  %v3330_v28 = vunpack.i.l.bf16 %v4352_v1  ;;  %v3336_v46 = vunpack.i.h.bf16 %v4354_v59  ;;  %v3335_v52 = vunpack.i.l.bf16 %v4354_v59 }
  0xf8   :  { %1122 = vmatpush.msrb.mxu1 %v4147_v39  ;;  %1035 = vmatpush.msra.mxu2 %v3829_v6  ;;  %v561_v6 = vsel %vm555_vm7, %v5701_v9, %v5700_v53  ;;  %v4387_v39 = vld [vmem:[%s5682_s2 + $0x78] sm:$0xff]  ;;  %v5715_v9 = vunpack.i.h.bf16 %v4231_v23 }
  0xf9   :  { %v563_v3 = vsel %vm555_vm7, %v3330_v28, %v3331_v0  ;;  %v562_v61 = vsel %vm555_vm7, %v3335_v52, %v3336_v46  ;;  %992 = vmatmul.f32.gmra.mxu0 %v4387_v39 }
  0xfa   :  { %1123 = vmatpush.msrb.mxu1 %v4162_v4  ;;  %1036 = vmatpush.msra.mxu2 %v3838_v8  ;;  %v5710_v4 = vunpack.i.l.bf16 %v4181_v14  ;;  %v5711_v8 = vunpack.i.h.bf16 %v4181_v14  ;;  %v5713_v14 = vunpack.i.h.bf16 %v4157_v44 }
  0xfb   :  { %1062 = vmatpush.msra.mxu3 %v563_v3 }
  0xfc   :  { %1124 = vmatpush.msrb.mxu1 %v4171_v29  ;;  %1037 = vmatpush.msra.mxu2 %v3850_v12  ;;  %v105_v36 = vsel %vm102_vm2, %v5711_v8, %v5710_v4  ;;  %v4399_v29 = vld [vmem:[%s5682_s2 + $0x80] sm:$0xff]  ;;  %v5712_v12 = vunpack.i.l.bf16 %v4157_v44 }
  0xfd   :  { %1063 = vmatpush.msra.mxu3 %v562_v61  ;;  %1021 = vmatmul.f32.gmra.mxu1 %v4399_v29 }
  0xfe   :  { %1125 = vmatpush.msrb.mxu1 %v105_v36  ;;  %v4401_v37 = vpop.permute.xlu0 %3343  ;;  %v4403_v3 = vpop.permute.xlu1 %3348  ;;  %1038 = vmatpush.msra.mxu2 %v3862_v15  ;;  %v104_v61 = vsel %vm102_vm2, %v5713_v14, %v5712_v12  ;;  %v5714_v15 = vunpack.i.l.bf16 %v4231_v23  ;;  %v773_v12 = vsel %vm733_vm6, %v3356_v55, %v3355_v47 }
  0xff   :  { %1064 = vmatpush.msra.mxu3 %v561_v6  ;;  %v3346_v4 = vunpack.i.h.bf16 %v4401_v37  ;;  %v3345_v8 = vunpack.i.l.bf16 %v4401_v37  ;;  %v3351_v36 = vunpack.i.h.bf16 %v4403_v3  ;;  %v3350_v53 = vunpack.i.l.bf16 %v4403_v3  ;;  %v4424_v6 = vld [vmem:[%s5682_s2 + $0x10] sm:$0xff] }
 0x100   :  { %1126 = vmatpush.msrb.mxu1 %v104_v61  ;;  %1039 = vmatpush.msra.mxu2 %v3871_v17  ;;  %v103_v44 = vsel %vm102_vm2, %v5715_v9, %v5714_v15  ;;  %v4442_v9 = vpop.permute.xlu2 %3368 }
 0x101   :  { %v560_v17 = vsel %vm555_vm7, %v3345_v8, %v3346_v4  ;;  %v559_v23 = vsel %vm555_vm7, %v3350_v53, %v3351_v36  ;;  %v5703_v55 = vunpack.i.h.bf16 %v4442_v9  ;;  %v3370_v14 = vunpack.i.l.bf16 %v4442_v9 }
 0x102   :  { %1127 = vmatpush.msrb.mxu1 %v103_v44  ;;  %1040 = vmatpush.msra.mxu2 %v3883_v21  ;;  %v592_v59 = vsel %vm555_vm7, %v3346_v4, %v3345_v8 }
 0x103   :  { %1065 = vmatpush.msra.mxu3 %v560_v17  ;;  %1041 = vmatmul.f32.vlgmr.msra.gmra.mxu2 %v4424_v6 }
 0x104   :  { %1236 = vmatpush.msra.mxu1 %v773_v12  ;;  %1141 = vmatpush.msrb.mxu2 %v3991_v56  ;;  %v4458_v56 = vld [vmem:[%s5682_s2 + $0x38] sm:$0xff] }
 0x105   :  { %1066 = vmatpush.msra.mxu3 %v559_v23  ;;  %1128 = vmatmul.f32.vlgmr.msrb.gmra.mxu1 %v4268_v20 }
 0x106   :  { %1142 = vmatpush.msrb.mxu2 %v3940_v32  ;;  %v4448_v47 = vpop.permute.xlu0 %3358  ;;  %v3364_v27 = vpop.permute.xlu1 %3363 }
 0x107   :  { %v5702_v61 = vunpack.i.h.bf16 %v4448_v47  ;;  %v3360_v21 = vunpack.i.l.bf16 %v4448_v47  ;;  %v3366_v15 = vunpack.i.h.bf16 %v3364_v27  ;;  %v3365_v44 = vunpack.i.l.bf16 %v3364_v27 }
 0x108   :  { %1143 = vmatpush.msrb.mxu2 %v4043_v43  ;;  %v557_v43 = vsel %vm555_vm7, %v3370_v14, %v5703_v55  ;;  %v3384_v20 = vpop.permute.xlu2 %3383 }
 0x109   :  { %v558_v32 = vsel %vm555_vm7, %v3360_v21, %v5702_v61  ;;  %v740_v12 = vsel %vm733_vm6, %v3365_v44, %v3366_v15  ;;  %v772_v17 = vsel %vm733_vm6, %v3366_v15, %v3365_v44  ;;  %v3385_v15 = vunpack.i.l.bf16 %v3384_v20 }
 0x10a   :  { %1144 = vmatpush.msrb.mxu2 %v3969_v42  ;;  %1067 = vmatpush.msra.mxu3 %v558_v32  ;;  %v3386_v42 = vunpack.i.h.bf16 %v3384_v20 }
 0x10b   :  { %1044 = vmatmul.f32.gmra.mxu2 %v4458_v56  ;;  %1092 = vmatpush.msrb.mxu0 %v740_v12 }
 0x10c   :  { %1145 = vmatpush.msrb.mxu2 %v4073_v24  ;;  %1237 = vmatpush.msra.mxu1 %v772_v17  ;;  %v4493_v17 = vld [vmem:[%s5682_s2 + $0x60] sm:$0xff] }
 0x10d   :  { %1068 = vmatpush.msra.mxu3 %v557_v43  ;;  %1131 = vmatmul.f32.gmra.mxu1 %v4307_v57  ;;  %v738_v57 = vsel %vm733_vm6, %v3385_v15, %v3386_v42  ;;  %v770_v43 = vsel %vm733_vm6, %v3386_v42, %v3385_v15 }
 0x10e   :  { %1146 = vmatpush.msrb.mxu2 %v4099_v22  ;;  %v3374_v23 = vpop.permute.xlu0 %3373  ;;  %v4477_v27 = vpop.permute.xlu1 %3378 }
 0x10f   :  { %v3376_v44 = vunpack.i.h.bf16 %v3374_v23  ;;  %v3375_v32 = vunpack.i.l.bf16 %v3374_v23  ;;  %v3381_v61 = vunpack.i.h.bf16 %v4477_v27  ;;  %v3380_v55 = vunpack.i.l.bf16 %v4477_v27 }
 0x110   :  { %1147 = vmatpush.msrb.mxu2 %v4024_v13  ;;  %v4498_v13 = vld [vmem:[%s5682_s2 + $0x18] sm:$0xff]  ;;  %v3399_v20 = vpop.permute.xlu2 %3398 }
 0x111   :  { %v556_v24 = vsel %vm555_vm7, %v3380_v55, %v3381_v61  ;;  %v739_v22 = vsel %vm733_vm6, %v3375_v32, %v3376_v44  ;;  %v771_v12 = vsel %vm733_vm6, %v3376_v44, %v3375_v32 }
 0x112   :  { %1148 = vmatpush.msrb.mxu2 %v4122_v60  ;;  %1069 = vmatpush.msra.mxu3 %v556_v24  ;;  %v3401_v24 = vunpack.i.h.bf16 %v3399_v20 }
 0x113   :  { %1093 = vmatpush.msrb.mxu0 %v739_v22  ;;  %1238 = vmatpush.msra.mxu1 %v771_v12 }
 0x114   :  { %1047 = vmatmul.f32.gmra.mxu2 %v4493_v17  ;;  %1070 = vmatmul.f32.vlgmr.msra.gmra.mxu3 %v4498_v13 }
 0x115   :  { %1149 = vmatpush.msrb.mxu2 %v4150_v18  ;;  %1170 = vmatpush.msrb.mxu3 %v4108_v34 }
 0x116   :  { %v3389_v23 = vpop.permute.xlu0 %3388  ;;  %1094 = vmatpush.msrb.mxu0 %v738_v57  ;;  %1239 = vmatpush.msra.mxu1 %v770_v43  ;;  %v3394_v60 = vpop.permute.xlu1 %3393  ;;  %v5716_v43 = vunpack.i.l.bf16 %v4279_v54 }
 0x117   :  { %1150 = vmatpush.msrb.mxu2 %v4085_v63  ;;  %1171 = vmatpush.msrb.mxu3 %v4131_v50  ;;  %v3391_v44 = vunpack.i.h.bf16 %v3389_v23  ;;  %v3390_v32 = vunpack.i.l.bf16 %v3389_v23  ;;  %v3396_v42 = vunpack.i.h.bf16 %v3394_v60  ;;  %v3395_v15 = vunpack.i.l.bf16 %v3394_v60  ;;  %v4517_v63 = vld [vmem:[%s5682_s2 + $0x88] sm:$0xff]  ;;  %v4522_v50 = vld [vmem:[%s5682_s2 + $0x40] sm:$0xff] }
 0x118   :  { %1134 = vmatmul.f32.gmra.mxu1 %v4342_v58  ;;  %v3400_v58 = vunpack.i.l.bf16 %v3399_v20  ;;  %v5717_v20 = vunpack.i.h.bf16 %v4279_v54  ;;  %v794_v54 = vld [vmem:[%s5682_s2 + $0x20] sm:$0xff]  ;;  %v499_v23 = vsel %vm466_vm4, %v3316_v62, %v3315_v35  ;;  %v5719_v62 = vld [vmem:[#allocation9_spill] sm:$0xff]  ;;  %v3748_v35 = vld [vmem:[%s5681_s0 + $0x48] sm:$0xff] }
 0x119   :  { %1151 = vmatpush.msrb.mxu2 %v4165_v5  ;;  %1172 = vmatpush.msrb.mxu3 %v4206_v33  ;;  %v737_v34 = vsel %vm733_vm6, %v3390_v32, %v3391_v44  ;;  %v769_v18 = vsel %vm733_vm6, %v3391_v44, %v3390_v32  ;;  %v736_v5 = vsel %vm733_vm6, %v3395_v15, %v3396_v42  ;;  %v5720_v60 = vld [vmem:[#allocation7_spill] sm:$0xff]  ;;  %v5721_v32 = vld [vmem:[#allocation8_spill] sm:$0xff] }
 0x11a   :  { %1095 = vmatpush.msrb.mxu0 %v737_v34  ;;  %1240 = vmatpush.msra.mxu1 %v769_v18  ;;  %v768_v33 = vsel %vm733_vm6, %v3396_v42, %v3395_v15  ;;  %v735_v22 = vsel %vm733_vm6, %v3400_v58, %v3401_v24  ;;  %v767_v12 = vsel %vm733_vm6, %v3401_v24, %v3400_v58  ;;  %v3750_v44 = vld [vmem:[%s5681_s0 + $0x28] sm:$0xff]  ;;  %v5723_v34 = vunpack.i.h.bf16 %v4255_v7 }
 0x11b   :  { %1152 = vmatpush.msrb.mxu2 %v4174_v30  ;;  %1173 = vmatpush.msrb.mxu3 %v4222_v51  ;;  %v3752_v42 = vld [vmem:[%s5681_s0 + $0x8] sm:$0xff]  ;;  %v594_v15 = vsel %vm555_vm7, %v3336_v46, %v3335_v52  ;;  %v5725_v52 = vunpack.i.h.bf16 %v4442_v9 }
 0x11c   :  { %1050 = vmatmul.f32.gmra.mxu2 %v4517_v63  ;;  %1073 = vmatmul.f32.gmra.mxu3 %v4522_v50 }
 0x11d   :  { %1153 = vmatpush.msrb.mxu2 %v4153_v19  ;;  %1174 = vmatpush.msrb.mxu3 %v4200_v40  ;;  %v500_v19 = vsel %vm466_vm4, %v5717_v20, %v5716_v43  ;;  %v4544_v40 = vld [vmem:[%s5682_s2 + $0x68] sm:$0xff] }
 0x11e   :  { %v3404_v57 = vpop.permute.xlu0 %3403  ;;  %1096 = vmatpush.msrb.mxu0 %v736_v5  ;;  %1241 = vmatpush.msra.mxu1 %v768_v33 }
 0x11f   :  { %1154 = vmatpush.msrb.mxu2 %v4225_v16  ;;  %1175 = vmatpush.msrb.mxu3 %v4212_v38  ;;  %v3406_v30 = vunpack.i.h.bf16 %v3404_v57  ;;  %v3405_v51 = vunpack.i.l.bf16 %v3404_v57 }
 0x120   :  { %1097 = vmatpush.msrb.mxu0 %v735_v22  ;;  %1242 = vmatpush.msra.mxu1 %v767_v12 }
 0x121   :  { %1155 = vmatpush.msrb.mxu2 %v4246_v48  ;;  %1176 = vmatpush.msrb.mxu3 %v500_v19  ;;  %v734_v38 = vsel %vm733_vm6, %v3405_v51, %v3406_v30  ;;  %v766_v16 = vsel %vm733_vm6, %v3406_v30, %v3405_v51  ;;  %v3745_v48 = vld [vmem:[%s5681_s0 + $0x78] sm:$0xff]  ;;  %v29_v19 = vld [vmem:[%s5683_s7] sm:$0x3] }
 0x122   :  { %1098 = vmatpush.msrb.mxu0 %v734_v38  ;;  %1243 = vmatpush.msra.mxu1 %v766_v16 }
 0x123   :  { %1156 = vmatpush.msrb.mxu2 %v4260_v11  ;;  %1177 = vmatpush.msrb.mxu3 %v499_v23  ;;  %v3746_v11 = vld [vmem:[%s5681_s0 + $0x68] sm:$0xff] }
 0x124   :  { %1076 = vmatmul.f32.gmra.mxu3 %v4544_v40  ;;  %3035 = vmatmul.msk.f32.vlgmr.msrb.gmra.mxu0 %vm954_vm8, %v794_v54 }
 0x125   :  { %1157 = vmatmul.f32.vlgmr.msrb.gmra.mxu2 %v4273_v31  ;;  %1199 = vmatpush.msra.mxu0 %v4197_v45  ;;  %v799_v45 = vld [vmem:[%s5682_s2 + $0x48] sm:$0xff]  ;;  %v3747_v31 = vld [vmem:[%s5681_s0 + $0x58] sm:$0xff] }
 0x126   :  { %1178 = vmatpush.msrb.mxu3 %v3745_v48  ;;  %1137 = vmatmul.f32.gmra.mxu1 %v4387_v39  ;;  %v3749_v39 = vld [vmem:[%s5681_s0 + $0x38] sm:$0xff]  ;;  %v4676_v48 = vperm.slane %v29_v19, 0 }
 0x127   :  { %1200 = vmatpush.msra.mxu0 %v4209_v2  ;;  %v808_v2 = vld [vmem:[%s5682_s2 + $0x90] sm:$0xff] }
 0x128   :  { %1179 = vmatpush.msrb.mxu3 %v3746_v11 }
 0x129   :  { %1201 = vmatpush.msra.mxu0 %v5718_v26  ;;  %v4678_v26 = vperm.slane %v29_v19, 1 }
 0x12a   :  { %1180 = vmatpush.msrb.mxu3 %v3747_v31 }
 0x12b   :  { %1202 = vmatpush.msra.mxu0 %v5719_v62 }
 0x12c   :  { %1181 = vmatpush.msrb.mxu3 %v3748_v35  ;;  %3036 = vmatmul.msk.f32.gmra.mxu0 %vm954_vm8, %v799_v45 }
 0x12d   :  { %1079 = vmatmul.f32.gmra.mxu3 %v808_v2  ;;  %1160 = vmatmul.f32.gmra.mxu2 %v4313_v49  ;;  %v804_v49 = vld [vmem:[%s5682_s2 + $0x70] sm:$0xff] }
 0x12e   :  { %1203 = vmatpush.msra.mxu0 %v4297_v10  ;;  %1182 = vmatpush.msrb.mxu3 %v3749_v39  ;;  %v3751_v10 = vld [vmem:[%s5681_s0 + $0x18] sm:$0xff] }
 0x12f   :  { %3039 = vmatmul.msk.f32.vlgmr.msra.gmra.mxu1 %vm954_vm8, %v794_v54 }
 0x130   :  { %1204 = vmatpush.msra.mxu0 %v5720_v60  ;;  %1183 = vmatpush.msrb.mxu3 %v3750_v44 }
 0x132   :  { %1205 = vmatpush.msra.mxu0 %v4336_v41  ;;  %1184 = vmatpush.msrb.mxu3 %v3751_v10  ;;  %v595_v41 = vsel %vm555_vm7, %v3331_v0, %v3330_v28  ;;  %v809_v0 = vld [vmem:[%s5682_s2 + $0x98] sm:$0xff]  ;;  %v5724_v28 = vunpack.i.h.bf16 %v4448_v47 }
 0x134   :  { %1206 = vmatpush.msra.mxu0 %v5721_v32  ;;  %1185 = vmatpush.msrb.mxu3 %v3752_v42  ;;  %v590_v46 = vsel %vm555_vm7, %v5724_v28, %v3360_v21 }
 0x135   :  { %3037 = vmatmul.msk.f32.gmra.mxu0 %vm954_vm8, %v804_v49  ;;  %1163 = vmatmul.f32.gmra.mxu2 %v4347_v25  ;;  %v5722_v25 = vunpack.i.l.bf16 %v4255_v7  ;;  %v591_v7 = vsel %vm555_vm7, %v3351_v36, %v3350_v53  ;;  %v588_v53 = vsel %vm555_vm7, %v3381_v61, %v3380_v55 }
 0x136   :  { %1186 = vmatmul.f32.vlgmr.msrb.gmra.mxu3 %v4424_v6  ;;  %1207 = vmatpush.msra.mxu0 %v595_v41 }
 0x137   :  { %3040 = vmatmul.msk.f32.gmra.mxu1 %vm954_vm8, %v799_v45  ;;  %v593_v1 = vsel %vm555_vm7, %v5723_v34, %v5722_v25 }
 0x138   :  { %1208 = vmatpush.msra.mxu0 %v594_v15 }
 0x13a   :  { %1209 = vmatpush.msra.mxu0 %v593_v1 }
 0x13c   :  { %1210 = vmatpush.msra.mxu0 %v592_v59 }
 0x13d   :  { %3038 = vmatmul.msk.f32.gmra.mxu0 %vm954_vm8, %v809_v0  ;;  %1166 = vmatmul.f32.gmra.mxu2 %v4399_v29  ;;  %v589_v29 = vsel %vm555_vm7, %v5725_v52, %v3370_v14 }
 0x13e   :  { %1189 = vmatmul.f32.gmra.mxu3 %v4458_v56  ;;  %1211 = vmatpush.msra.mxu0 %v591_v7 }
 0x13f   :  { %3041 = vmatmul.msk.f32.gmra.mxu1 %vm954_vm8, %v804_v49 }
 0x140   :  { %1212 = vmatpush.msra.mxu0 %v590_v46 }
 0x142   :  { %1213 = vmatpush.msra.mxu0 %v589_v29 }
 0x144   :  { %1214 = vmatpush.msra.mxu0 %v588_v53 }
 0x145   :  { %1215 = vmatmul.f32.vlgmr.msra.gmra.mxu0 %v4498_v13 }
 0x146   :  { %1192 = vmatmul.f32.gmra.mxu3 %v4493_v17 }
 0x147   :  { %3042 = vmatmul.msk.f32.gmra.mxu1 %vm954_vm8, %v809_v0 }
 0x14d   :  { %1218 = vmatmul.f32.gmra.mxu0 %v4522_v50 }
 0x14e   :  { %1195 = vmatmul.f32.gmra.mxu3 %v4517_v63 }
 0x155   :  { %1221 = vmatmul.f32.gmra.mxu0 %v4544_v40 }
 0x15d   :  { %1224 = vmatmul.f32.gmra.mxu0 %v808_v2  ;;  %v984_v3 = vpop.f32.mrf.mxu0 }
 0x160   :  { %v1013_v37 = vpop.f32.mrf.mxu1 }
 0x161   :  { %v1014_v30 = vadd.f32 %v1013_v37, %v984_v3 }
 0x165   :  { %v987_v8 = vpop.f32.mrf.mxu0 }
 0x16a   :  { %v1016_v4 = vpop.f32.mrf.mxu1 }
 0x16b   :  { %v1017_v31 = vadd.f32 %v1016_v4, %v987_v8 }
 0x16e   :  { %v990_v6 = vpop.f32.mrf.mxu0 }
 0x172   :  { %v1019_v36 = vpop.f32.mrf.mxu1 }
 0x173   :  { %v1020_v34 = vadd.f32 %v1019_v36, %v990_v6 }
 0x176   :  { %v4665_v61 = vpop.f32.mrf.mxu0 }
 0x17a   :  { %v4663_v9 = vpop.f32.mrf.mxu1 }
 0x182   :  { %v1129_v55 = vpop.f32.mrf.mxu1 }
 0x186   :  { %v1042_v47 = vpop.f32.mrf.mxu2 }
 0x187   :  { %v1043_v43 = vadd.f32 %v1042_v47, %v1014_v30 }
 0x18a   :  { %v1132_v27 = vpop.f32.mrf.mxu1 }
 0x18e   :  { %v1045_v21 = vpop.f32.mrf.mxu2 }
 0x18f   :  { %v1046_v62 = vadd.f32 %v1045_v21, %v1017_v31 }
 0x195   :  { %v1135_v50 = vpop.f32.mrf.mxu1 }
 0x197   :  { %v1071_v14 = vpop.f32.mrf.mxu3  ;;  %v1048_v13 = vpop.f32.mrf.mxu2 }
 0x198   :  { %v1072_v40 = vadd.f32 %v1071_v14, %v1043_v43  ;;  %v1049_v59 = vadd.f32 %v1048_v13, %v1020_v34 }
 0x19f   :  { %v1074_v56 = vpop.f32.mrf.mxu3  ;;  %v4667_v24 = vpop.f32.mrf.mxu2 }
 0x1a0   :  { %v1075_v10 = vadd.f32 %v1074_v56, %v1046_v62 }
 0x1a1   :  { %v1100_v17 = vpop.f32.mrf.mxu0 }
 0x1a2   :  { %v1101_v23 = vadd.f32 %v1100_v17, %v1072_v40 }
 0x1a3   :  { %v1138_v33 = vpop.f32.mrf.mxu1 }
 0x1a4   :  { %v4681_v35 = vmul.f32 %v4676_v48, %v1101_v23 }
 0x1a7   :  { %v1077_v18 = vpop.f32.mrf.mxu3 }
 0x1a8   :  { %v1158_v22 = vpop.f32.mrf.mxu2  ;;  %v1078_v52 = vadd.f32 %v1077_v18, %v1049_v59 }
 0x1a9   :  { %v1103_v63 = vpop.f32.mrf.mxu0  ;;  %v1159_v20 = vadd.f32 %v1158_v22, %v1129_v55 }
 0x1aa   :  { %v1104_v41 = vadd.f32 %v1103_v63, %v1075_v10  ;;  %v1023_v63 = vadd.f32 %v4663_v9, %v4665_v61 }
 0x1ac   :  { %v1245_v51 = vpop.f32.mrf.mxu1  ;;  %v4695_v7 = vmul.f32 %v4676_v48, %v1104_v41  ;;  %v1052_v22 = vadd.f32 %v4667_v24, %v1023_v63 }
 0x1b0   :  { %v4669_v58 = vpop.f32.mrf.mxu3  ;;  %v1161_v16 = vpop.f32.mrf.mxu2 }
 0x1b1   :  { %v1162_v39 = vadd.f32 %v1161_v16, %v1132_v27 }
 0x1b2   :  { %v1106_v5 = vpop.f32.mrf.mxu0 }
 0x1b3   :  { %v1107_v8 = vadd.f32 %v1106_v5, %v1078_v52 }
 0x1b4   :  { %v1248_v44 = vpop.f32.mrf.mxu1 }
 0x1b5   :  { %v4708_v47 = vmul.f32 %v4676_v48, %v1107_v8 }
 0x1b8   :  { %v1164_v25 = vpop.f32.mrf.mxu2 }
 0x1b9   :  { %v1187_v12 = vpop.f32.mrf.mxu3  ;;  %v1165_v28 = vadd.f32 %v1164_v25, %v1135_v50 }
 0x1ba   :  { %v4671_v57 = vpop.f32.mrf.mxu0  ;;  %v1188_v38 = vadd.f32 %v1187_v12, %v1159_v20 }
 0x1bc   :  { %v1251_v4 = vpop.f32.mrf.mxu1 }
 0x1c0   :  { %v1167_v55 = vpop.f32.mrf.mxu2 }
 0x1c1   :  { %v1190_v45 = vpop.f32.mrf.mxu3  ;;  %v1168_v17 = vadd.f32 %v1167_v55, %v1138_v33  ;;  %v1081_v33 = vadd.f32 %v4669_v58, %v1052_v22 }
 0x1c2   :  { %v1216_v54 = vpop.f32.mrf.mxu0  ;;  %v1191_v49 = vadd.f32 %v1190_v45, %v1162_v39 }
 0x1c3   :  { %v1217_v11 = vadd.f32 %v1216_v54, %v1188_v38 }
 0x1c4   :  { %v1254_v5 = vpop.f32.mrf.mxu1 }
 0x1c5   :  { %v1246_v2 = vadd.f32 %v1245_v51, %v1217_v11  ;;  %v1110_v51 = vadd.f32 %v4671_v57, %v1081_v33 }
 0x1c7   :  { %v4684_v60 = vmul.f32 %v4678_v26, %v1246_v2  ;;  %v4734_v61 = vmul.f32 %v4676_v48, %v1110_v51 }
 0x1c9   :  { %v4688_v32 = vpack.i.bf16 %v4681_v35, %v4684_v60  ;;  %v1193_v0 = vpop.f32.mrf.mxu3  ;;  %v3422_v37 = vpack.i.bf16 %v4684_v60, %v4681_v35 }
 0x1ca   :  { %v1219_v42 = vpop.f32.mrf.mxu0  ;;  %v1194_v29 = vadd.f32 %v1193_v0, %v1165_v28 }
 0x1cb   :  { %v1220_v15 = vadd.f32 %v1219_v42, %v1191_v49  ;;  %3418 = vrot.lane.b32.xlu2 %v4688_v32, %s3756_s20  ;;  %3408 = vrot.lane.b32.xlu0 %v4688_v32, %s3753_s13 }
 0x1cd   :  { %v1249_v1 = vadd.f32 %v1248_v44, %v1220_v15 }
 0x1cf   :  { %v4698_v46 = vmul.f32 %v4678_v26, %v1249_v1 }
 0x1d1   :  { %v3427_v53 = vpack.i.bf16 %v4695_v7, %v4698_v46  ;;  %v1196_v21 = vpop.f32.mrf.mxu3  ;;  %v3432_v56 = vpack.i.bf16 %v4698_v46, %v4695_v7 }
 0x1d2   :  { %v1222_v3 = vpop.f32.mrf.mxu0  ;;  %v1197_v18 = vadd.f32 %v1196_v21, %v1168_v17 }
 0x1d3   :  { %v1223_v36 = vadd.f32 %v1222_v3, %v1194_v29  ;;  %3428 = vrot.lane.b32.xlu1 %v3427_v53, %s3753_s13  ;;  %3423 = vrot.lane.b32.xlu2 %v3422_v37, %s3759_s23 }
 0x1d4   :  { %3413 = vrot.lane.b32.xlu0 %v3422_v37, %s3758_s22 }
 0x1d5   :  { %v1252_v6 = vadd.f32 %v1251_v4, %v1223_v36 }
 0x1d7   :  { %v4711_v14 = vmul.f32 %v4678_v26, %v1252_v6 }
 0x1d9   :  { %v3447_v27 = vpack.i.bf16 %v4708_v47, %v4711_v14  ;;  %v3452_v12 = vpack.i.bf16 %v4711_v14, %v4708_v47 }
 0x1da   :  { %v1225_v13 = vpop.f32.mrf.mxu0 }
 0x1db   :  { %3433 = vrot.lane.b32.xlu1 %v3432_v56, %s3758_s22  ;;  %3448 = vrot.lane.b32.xlu2 %v3447_v27, %s3753_s13  ;;  %v1226_v50 = vadd.f32 %v1225_v13, %v1197_v18 }
 0x1dc   :  { %3438 = vrot.lane.b32.xlu0 %v3427_v53, %s3756_s20 }
 0x1dd   :  { %v1255_v30 = vadd.f32 %v1254_v5, %v1226_v50 }
 0x1df   :  { %v4731_v9 = vmul.f32 %v4678_v26, %v1255_v30 }
 0x1e1   :  { %v3472_v24 = vpack.i.bf16 %v4731_v9, %v4734_v61  ;;  %v3497_v58 = vpack.i.bf16 %v4734_v61, %v4731_v9 }
 0x1e3   :  { %3458 = vrot.lane.b32.xlu1 %v3447_v27, %s3756_s20  ;;  %3453 = vrot.lane.b32.xlu2 %v3452_v12, %s3758_s22 }
 0x1e4   :  { %3443 = vrot.lane.b32.xlu0 %v3432_v56, %s3759_s23 }
 0x1eb   :  { %3463 = vrot.lane.b32.xlu1 %v3452_v12, %s3759_s23  ;;  %3483 = vrot.lane.b32.xlu2 %v3427_v53, %s3754_s14 }
 0x1ec   :  { %3473 = vrot.lane.b32.xlu0 %v3472_v24, %s3758_s22 }
 0x1f3   :  { %3498 = vrot.lane.b32.xlu2 %v3497_v58, %s3756_s20  ;;  %3468 = vrot.lane.b32.xlu1 %v3497_v58, %s3753_s13 }
 0x1f4   :  { %3478 = vrot.lane.b32.xlu0 %v3447_v27, %s3754_s14 }
 0x1fb   :  { %3503 = vrot.lane.b32.xlu2 %v3472_v24, %s3759_s23  ;;  %3493 = vrot.lane.b32.xlu1 %v4688_v32, %s3754_s14 }
 0x1fc   :  { %3488 = vrot.lane.b32.xlu0 %v3452_v12, %s3757_s21 }
 0x203   :  { %3508 = vrot.lane.b32.xlu2 %v3432_v56, %s3757_s21  ;;  %3513 = vrot.lane.b32.xlu1 %v3497_v58, %s3754_s14 }
 0x204   :  { %3533 = vrot.lane.b32.xlu0 %v3497_v58, %s3755_s19 }
 0x20b   :  { %3528 = vrot.lane.b32.xlu2 %v3447_v27, %s3755_s19  ;;  %3518 = vrot.lane.b32.xlu1 %v3472_v24, %s3757_s21 }
 0x20c   :  { %3538 = vrot.lane.b32.xlu0 %v3427_v53, %s3755_s19 }
 0x213   :  { %3558 = vrot.lane.b32.xlu2 %v3472_v24, %s3760_s24  ;;  %3523 = vrot.lane.b32.xlu1 %v3422_v37, %s3757_s21 }
 0x214   :  { %3548 = vrot.lane.b32.xlu0 %v3452_v12, %s3760_s24 }
 0x21b   :  { %3563 = vrot.lane.b32.xlu2 %v3422_v37, %s3760_s24  ;;  %3543 = vrot.lane.b32.xlu1 %v4688_v32, %s3755_s19 }
 0x223   :  { %3553 = vrot.lane.b32.xlu1 %v3432_v56, %s3760_s24 }
 0x225   :  { %v4763_v57 = vpop.permute.xlu2 %3418 }
 0x22d   :  { %v4765_v43 = vpop.permute.xlu2 %3423 }
 0x22e   :  { %v3426_v51 = vunpack.i.h.bf16 %v4765_v43  ;;  %v3425_v24 = vunpack.i.l.bf16 %v4765_v43 }
 0x235   :  { %v3449_v20 = vpop.permute.xlu2 %3448 }
 0x236   :  { %v3451_v3 = vunpack.i.h.bf16 %v3449_v20  ;;  %v3450_v4 = vunpack.i.l.bf16 %v3449_v20 }
 0x238   :  { %v1452_v33 = vsel %vm369_vm0, %v3450_v4, %v3451_v3  ;;  %v1440_v30 = vsel %vm369_vm0, %v3451_v3, %v3450_v4 }
 0x23d   :  { %v4767_v19 = vpop.permute.xlu2 %3453  ;;  %v4769_v40 = vpop.permute.xlu0 %3408 }
 0x23e   :  { %v3456_v49 = vunpack.i.h.bf16 %v4767_v19  ;;  %v3455_v32 = vunpack.i.l.bf16 %v4767_v19  ;;  %v3411_v55 = vunpack.i.h.bf16 %v4769_v40  ;;  %v3410_v50 = vunpack.i.l.bf16 %v4769_v40  ;;  %v1649_v19 = vld [vmem:[%s5684_s3 + $0x18] sm:$0xff] }
 0x240   :  { %v1576_v59 = vsel %vm644_vm5, %v3455_v32, %v3456_v49  ;;  %v1450_v3 = vsel %vm369_vm0, %v3410_v50, %v3411_v55 }
 0x245   :  { %v4771_v38 = vpop.permute.xlu1 %3428  ;;  %v4773_v16 = vpop.permute.xlu2 %3483 }
 0x246   :  { %v4775_v54 = vpop.permute.xlu0 %3413  ;;  %v3431_v17 = vunpack.i.h.bf16 %v4771_v38  ;;  %v3430_v13 = vunpack.i.l.bf16 %v4771_v38 }
 0x247   :  { %v3416_v1 = vunpack.i.h.bf16 %v4775_v54  ;;  %v3415_v0 = vunpack.i.l.bf16 %v4775_v54 }
 0x248   :  { %v1451_v38 = vsel %vm369_vm0, %v3430_v13, %v3431_v17 }
 0x249   :  { %v1574_v27 = vsel %vm644_vm5, %v3415_v0, %v3416_v1 }
 0x24d   :  { %v4777_v23 = vpop.permute.xlu1 %3433  ;;  %v4779_v11 = vpop.permute.xlu2 %3498 }
 0x24e   :  { %v4781_v45 = vpop.permute.xlu0 %3438  ;;  %v3436_v15 = vunpack.i.h.bf16 %v4777_v23  ;;  %v3435_v25 = vunpack.i.l.bf16 %v4777_v23  ;;  %v3501_v20 = vunpack.i.h.bf16 %v4779_v11  ;;  %v3500_v40 = vunpack.i.l.bf16 %v4779_v11  ;;  %v5000_v23 = vld [vmem:[%s5684_s3 + $0x20] sm:$0xff] }
 0x24f   :  { %v1438_v11 = vsel %vm369_vm0, %v3411_v55, %v3410_v50  ;;  %v3441_v55 = vunpack.i.h.bf16 %v4781_v45  ;;  %v3421_v50 = vunpack.i.h.bf16 %v4763_v57 }
 0x250   :  { %v1575_v53 = vsel %vm644_vm5, %v3435_v25, %v3436_v15 }
 0x255   :  { %v4783_v31 = vpop.permute.xlu1 %3458  ;;  %v4785_v2 = vpop.permute.xlu2 %3503 }
 0x256   :  { %v4787_v62 = vpop.permute.xlu0 %3443  ;;  %v3506_v28 = vunpack.i.h.bf16 %v4785_v2  ;;  %v3505_v52 = vunpack.i.l.bf16 %v4785_v2  ;;  %v3461_v4 = vunpack.i.h.bf16 %v4783_v31 }
 0x257   :  { %v3446_v5 = vunpack.i.h.bf16 %v4787_v62  ;;  %v3445_v22 = vunpack.i.l.bf16 %v4787_v62 }
 0x258   :  { %v1533_v12 = vsel %vm555_vm7, %v3505_v52, %v3506_v28  ;;  %v1549_v54 = vsel %vm555_vm7, %v3506_v28, %v3505_v52  ;;  %v1652_v28 = vld [vmem:[%s5684_s3 + $0x30] sm:$0xff]  ;;  %v1653_v52 = vld [vmem:[%s5684_s3 + $0x38] sm:$0xff] }
 0x25d   :  { %v4789_v39 = vpop.permute.xlu1 %3463  ;;  %v4791_v44 = vpop.permute.xlu2 %3508 }
 0x25e   :  { %v4793_v10 = vpop.permute.xlu0 %3473  ;;  %v3466_v21 = vunpack.i.h.bf16 %v4789_v39  ;;  %v3465_v56 = vunpack.i.l.bf16 %v4789_v39  ;;  %v1546_v39 = vsel %vm555_vm7, %v3426_v51, %v3425_v24 }
 0x25f   :  { %v3476_v42 = vunpack.i.h.bf16 %v4793_v10  ;;  %v3475_v41 = vunpack.i.l.bf16 %v4793_v10 }
 0x260   :  { %v1532_v58 = vsel %vm555_vm7, %v3465_v56, %v3466_v21  ;;  %v1548_v2 = vsel %vm555_vm7, %v3466_v21, %v3465_v56  ;;  %v1651_v21 = vld [vmem:[%s5684_s3 + $0x28] sm:$0xff] }
 0x261   :  { %v1577_v34 = vsel %vm644_vm5, %v3475_v41, %v3476_v42 }
 0x262   :  { %1808 = vmatpush.msra.mxu3 %v1577_v34  ;;  %v1439_v34 = vsel %vm369_vm0, %v3431_v17, %v3430_v13  ;;  %v1530_v13 = vsel %vm555_vm7, %v3425_v24, %v3426_v51  ;;  %v1656_v51 = vld [vmem:[%s5684_s3 + $0x50] sm:$0xff]  ;;  %v1658_v24 = vld [vmem:[%s5684_s3 + $0x60] sm:$0xff] }
 0x264   :  { %1809 = vmatpush.msra.mxu3 %v1576_v59 }
 0x265   :  { %v4815_v29 = vpop.permute.xlu2 %3528  ;;  %v3469_v37 = vpop.permute.xlu1 %3468 }
 0x266   :  { %v4822_v8 = vpop.permute.xlu0 %3478  ;;  %1810 = vmatpush.msra.mxu3 %v1575_v53  ;;  %v3471_v36 = vunpack.i.h.bf16 %v3469_v37  ;;  %v3470_v6 = vunpack.i.l.bf16 %v3469_v37  ;;  %v1531_v53 = vsel %vm555_vm7, %v3445_v22, %v3446_v5 }
 0x268   :  { %1811 = vmatpush.msra.mxu3 %v1574_v27  ;;  %v1453_v18 = vsel %vm369_vm0, %v3470_v6, %v3471_v36  ;;  %v1441_v63 = vsel %vm369_vm0, %v3471_v36, %v3470_v6  ;;  %v3460_v36 = vunpack.i.l.bf16 %v4783_v31  ;;  %v1409_v31 = vsel %vm280_vm3, %v3500_v40, %v3501_v20 }
 0x269   :  { %1767 = vmatpush.msra.mxu2 %v1453_v18  ;;  %1890 = vmatpush.msrb.mxu1 %v1441_v63  ;;  %v3440_v18 = vunpack.i.l.bf16 %v4781_v45 }
 0x26a   :  { %1812 = vmatpush.msra.mxu3 %v1533_v12  ;;  %v3420_v12 = vunpack.i.l.bf16 %v4763_v57  ;;  %v1408_v45 = vsel %vm280_vm3, %v3460_v36, %v3461_v4  ;;  %v3481_v57 = vunpack.i.h.bf16 %v4822_v8 }
 0x26b   :  { %1768 = vmatpush.msra.mxu2 %v1452_v33  ;;  %1891 = vmatpush.msrb.mxu1 %v1440_v30  ;;  %v1397_v33 = vsel %vm280_vm3, %v3501_v20, %v3500_v40  ;;  %v1396_v30 = vsel %vm280_vm3, %v3461_v4, %v3460_v36  ;;  %v3486_v36 = vunpack.i.h.bf16 %v4773_v16 }
 0x26c   :  { %1813 = vmatpush.msra.mxu3 %v1532_v58  ;;  %v1407_v58 = vsel %vm280_vm3, %v3440_v18, %v3441_v55  ;;  %v1394_v4 = vsel %vm280_vm3, %v3421_v50, %v3420_v12 }
 0x26d   :  { %v4857_v59 = vpop.permute.xlu2 %3558  ;;  %v4864_v37 = vpop.permute.xlu1 %3493  ;;  %1769 = vmatpush.msra.mxu2 %v1451_v38  ;;  %1892 = vmatpush.msrb.mxu1 %v1439_v34  ;;  %v1395_v34 = vsel %vm280_vm3, %v3441_v55, %v3440_v18 }
 0x26e   :  { %v3561_v6 = vunpack.i.h.bf16 %v4857_v59  ;;  %v3560_v27 = vunpack.i.l.bf16 %v4857_v59  ;;  %v4872_v17 = vpop.permute.xlu0 %3488  ;;  %1814 = vmatpush.msra.mxu3 %v1531_v53  ;;  %v1406_v53 = vsel %vm280_vm3, %v3420_v12, %v3421_v50  ;;  %v1591_v59 = vsel %vm644_vm5, %v3436_v15, %v3435_v25  ;;  %v5010_v15 = vld [vmem:[%s5684_s3 + $0x10] sm:$0xff] }
 0x26f   :  { %1770 = vmatpush.msra.mxu2 %v1450_v3  ;;  %1893 = vmatpush.msrb.mxu1 %v1438_v11  ;;  %v3480_v3 = vunpack.i.l.bf16 %v4822_v8  ;;  %v3495_v8 = vunpack.i.l.bf16 %v4864_v37 }
 0x270   :  { %1815 = vmatpush.msra.mxu3 %v1530_v13  ;;  %v1621_v63 = vsel %vm733_vm6, %v3560_v27, %v3561_v6  ;;  %v3485_v13 = vunpack.i.l.bf16 %v4773_v16 }
 0x271   :  { %1771 = vmatpush.msra.mxu2 %v1409_v31  ;;  %1861 = vmatpush.msrb.mxu0 %v1621_v63  ;;  %v3496_v31 = vunpack.i.h.bf16 %v4864_v37  ;;  %v1364_v63 = vsel %vm191_vm1, %v3480_v3, %v3481_v57  ;;  %v1352_v50 = vsel %vm191_vm1, %v3481_v57, %v3480_v3 }
 0x272   :  { %1894 = vmatpush.msrb.mxu1 %v1397_v33  ;;  %v1363_v16 = vsel %vm191_vm1, %v3485_v13, %v3486_v36  ;;  %v1351_v37 = vsel %vm191_vm1, %v3486_v36, %v3485_v13 }
 0x273   :  { %1772 = vmatpush.msra.mxu2 %v1408_v45  ;;  %v3531_v45 = vunpack.i.h.bf16 %v4815_v29 }
 0x274   :  { %1895 = vmatpush.msrb.mxu1 %v1396_v30  ;;  %v3530_v30 = vunpack.i.l.bf16 %v4815_v29  ;;  %v3510_v29 = vunpack.i.l.bf16 %v4791_v44 }
 0x275   :  { %v3514_v38 = vpop.permute.xlu1 %3513  ;;  %1773 = vmatpush.msra.mxu2 %v1407_v58  ;;  %v3491_v58 = vunpack.i.h.bf16 %v4872_v17 }
 0x276   :  { %v3534_v20 = vpop.permute.xlu0 %3533  ;;  %v3516_v40 = vunpack.i.h.bf16 %v3514_v38  ;;  %v3515_v11 = vunpack.i.l.bf16 %v3514_v38  ;;  %1896 = vmatpush.msrb.mxu1 %v1395_v34  ;;  %v3490_v34 = vunpack.i.l.bf16 %v4872_v17  ;;  %v1659_v17 = vld [vmem:[%s5684_s3 + $0x68] sm:$0xff] }
 0x277   :  { %1774 = vmatpush.msra.mxu2 %v1406_v53  ;;  %v3536_v12 = vunpack.i.h.bf16 %v3534_v20  ;;  %v3535_v33 = vunpack.i.l.bf16 %v3534_v20  ;;  %v1362_v20 = vsel %vm191_vm1, %v3495_v8, %v3496_v31 }
 0x278   :  { %1897 = vmatpush.msrb.mxu1 %v1394_v4  ;;  %v1365_v55 = vsel %vm191_vm1, %v3515_v11, %v3516_v40  ;;  %v1353_v18 = vsel %vm191_vm1, %v3516_v40, %v3515_v11  ;;  %v3511_v40 = vunpack.i.h.bf16 %v4791_v44  ;;  %v1350_v11 = vsel %vm191_vm1, %v3496_v31, %v3495_v8  ;;  %v1654_v44 = vld [vmem:[%s5684_s3 + $0x40] sm:$0xff] }
 0x279   :  { %1775 = vmatpush.msra.mxu2 %v1365_v55  ;;  %v1321_v36 = vsel %vm102_vm2, %v3535_v33, %v3536_v12  ;;  %v1488_v31 = vsel %vm466_vm4, %v3490_v34, %v3491_v58  ;;  %v1308_v8 = vsel %vm102_vm2, %v3531_v45, %v3530_v30  ;;  %v1504_v43 = vsel %vm466_vm4, %v3491_v58, %v3490_v34  ;;  %v1657_v58 = vld [vmem:[%s5684_s3 + $0x58] sm:$0xff]  ;;  %v1662_v34 = vld [vmem:[%s5684_s3 + $0x80] sm:$0xff] }
 0x27a   :  { %1898 = vmatpush.msrb.mxu1 %v1353_v18  ;;  %v1309_v18 = vsel %vm102_vm2, %v3536_v12, %v3535_v33  ;;  %v1487_v12 = vsel %vm466_vm4, %v3510_v29, %v3511_v40  ;;  %v1503_v56 = vsel %vm466_vm4, %v3511_v40, %v3510_v29  ;;  %v1665_v40 = vld [vmem:[%s5684_s3 + $0x98] sm:$0xff]  ;;  %v1663_v29 = vld [vmem:[%s5684_s3 + $0x88] sm:$0xff] }
 0x27b   :  { %1776 = vmatpush.msra.mxu2 %v1364_v63  ;;  %v1320_v63 = vsel %vm102_vm2, %v3530_v30, %v3531_v45 }
 0x27c   :  { %1899 = vmatpush.msrb.mxu1 %v1352_v50 }
 0x27d   :  { %v4910_v38 = vpop.permute.xlu1 %3518  ;;  %1777 = vmatpush.msra.mxu2 %v1363_v16 }
 0x27e   :  { %v3539_v53 = vpop.permute.xlu0 %3538  ;;  %v3521_v57 = vunpack.i.h.bf16 %v4910_v38  ;;  %v3520_v3 = vunpack.i.l.bf16 %v4910_v38  ;;  %1900 = vmatpush.msrb.mxu1 %v1351_v37  ;;  %v1661_v38 = vld [vmem:[%s5684_s3 + $0x78] sm:$0xff] }
 0x27f   :  { %1778 = vmatpush.msra.mxu2 %v1362_v20  ;;  %v3541_v4 = vunpack.i.h.bf16 %v3539_v53  ;;  %v3540_v55 = vunpack.i.l.bf16 %v3539_v53 }
 0x280   :  { %1901 = vmatpush.msrb.mxu1 %v1350_v11  ;;  %v1489_v13 = vsel %vm466_vm4, %v3520_v3, %v3521_v57  ;;  %v1505_v62 = vsel %vm466_vm4, %v3521_v57, %v3520_v3  ;;  %v1660_v57 = vld [vmem:[%s5684_s3 + $0x70] sm:$0xff] }
 0x281   :  { %1779 = vmatpush.msra.mxu2 %v1321_v36  ;;  %1816 = vmatpush.msra.mxu3 %v1489_v13  ;;  %v1319_v50 = vsel %vm102_vm2, %v3540_v55, %v3541_v4  ;;  %v1307_v16 = vsel %vm102_vm2, %v3541_v4, %v3540_v55  ;;  %v1664_v3 = vld [vmem:[%s5684_s3 + $0x90] sm:$0xff] }
 0x282   :  { %1902 = vmatpush.msrb.mxu1 %v1309_v18  ;;  %v1646_v18 = vld [vmem:[%s5684_s3] sm:$0xff] }
 0x283   :  { %1780 = vmatpush.msra.mxu2 %v1320_v63  ;;  %1817 = vmatpush.msra.mxu3 %v1488_v31 }
 0x284   :  { %1903 = vmatpush.msrb.mxu1 %v1308_v8  ;;  %v4962_v8 = vld [vmem:[%s5684_s3 + $0x8] sm:$0xff] }
 0x285   :  { %v4940_v33 = vpop.permute.xlu1 %3523  ;;  %1781 = vmatpush.msra.mxu2 %v1319_v50  ;;  %1818 = vmatpush.msra.mxu3 %v1487_v12  ;;  %v1593_v50 = vsel %vm644_vm5, %v3476_v42, %v3475_v41  ;;  %v1637_v12 = vsel %vm733_vm6, %v3561_v6, %v3560_v27 }
 0x286   :  { %v3549_v37 = vpop.permute.xlu0 %3548  ;;  %v3526_v53 = vunpack.i.h.bf16 %v4940_v33  ;;  %v3525_v45 = vunpack.i.l.bf16 %v4940_v33  ;;  %1904 = vmatpush.msrb.mxu1 %v1307_v16  ;;  %v3564_v16 = vpop.permute.xlu2 %3563  ;;  %v1667_v33 = vld [vmem:[%s5684_s3 + $0xa8] sm:$0xff] }
 0x287   :  { %v3551_v30 = vunpack.i.h.bf16 %v3549_v37  ;;  %v3550_v20 = vunpack.i.l.bf16 %v3549_v37  ;;  %v1592_v37 = vsel %vm644_vm5, %v3456_v49, %v3455_v32  ;;  %v3566_v6 = vunpack.i.h.bf16 %v3564_v16 }
 0x288   :  { %v1486_v11 = vsel %vm466_vm4, %v3525_v45, %v3526_v53  ;;  %v3565_v27 = vunpack.i.l.bf16 %v3564_v16  ;;  %v1590_v49 = vsel %vm644_vm5, %v3416_v1, %v3415_v0  ;;  %v1547_v0 = vsel %vm555_vm7, %v3446_v5, %v3445_v22  ;;  %v1655_v5 = vld [vmem:[%s5684_s3 + $0x48] sm:$0xff]  ;;  %v5135_v16 = vld [vmem:[%s5685_s1] sm:$0xff] }
 0x289   :  { %1819 = vmatpush.msra.mxu3 %v1486_v11  ;;  %v1620_v36 = vsel %vm733_vm6, %v3550_v20, %v3551_v30  ;;  %v1636_v10 = vsel %vm733_vm6, %v3551_v30, %v3550_v20  ;;  %v1502_v22 = vsel %vm466_vm4, %v3526_v53, %v3525_v45  ;;  %v1668_v53 = vld [vmem:[%s5684_s3 + $0xb0] sm:$0xff]  ;;  %v1666_v45 = vld [vmem:[%s5684_s3 + $0xa0] sm:$0xff]  ;;  %v1669_v20 = vld [vmem:[%s5684_s3 + $0xb8] sm:$0xff] }
 0x28a   :  { %1862 = vmatpush.msrb.mxu0 %v1620_v36  ;;  %v1618_v25 = vsel %vm733_vm6, %v3565_v27, %v3566_v6  ;;  %v1634_v1 = vsel %vm733_vm6, %v3566_v6, %v3565_v27 }
 0x28b   :  { %1820 = vmatpush.msra.mxu3 %v4734_v61 }
 0x28d   :  { %v3544_v4 = vpop.permute.xlu1 %3543  ;;  %1821 = vmatpush.msra.mxu3 %v4708_v47 }
 0x28e   :  { %v3546_v55 = vunpack.i.h.bf16 %v3544_v4  ;;  %v3545_v13 = vunpack.i.l.bf16 %v3544_v4 }
 0x28f   :  { %1822 = vmatpush.msra.mxu3 %v4695_v7 }
 0x290   :  { %v1318_v63 = vsel %vm102_vm2, %v3545_v13, %v3546_v55  ;;  %v1306_v31 = vsel %vm102_vm2, %v3546_v55, %v3545_v13 }
 0x291   :  { %1782 = vmatpush.msra.mxu2 %v1318_v63  ;;  %1823 = vmatpush.msra.mxu3 %v4681_v35 }
 0x292   :  { %1905 = vmatpush.msrb.mxu1 %v1306_v31  ;;  %1783 = vmatmul.f32.vlgmr.msra.gmra.mxu2 %v1646_v18 }
 0x293   :  { %1824 = vmatmul.f32.vlgmr.msra.gmra.mxu3 %v4962_v8  ;;  %1931 = vmatpush.msrb.mxu2 %v1593_v50 }
 0x294   :  { %1984 = vmatpush.msrb.mxu3 %v1637_v12  ;;  %1906 = vmatmul.f32.vlgmr.msrb.gmra.mxu1 %v1646_v18 }
 0x295   :  { %1932 = vmatpush.msrb.mxu2 %v1592_v37  ;;  %v3554_v42 = vpop.permute.xlu1 %3553 }
 0x296   :  { %1985 = vmatpush.msrb.mxu3 %v1636_v10  ;;  %v3556_v41 = vunpack.i.h.bf16 %v3554_v42  ;;  %v3555_v11 = vunpack.i.l.bf16 %v3554_v42  ;;  %v5140_v10 = vld [vmem:[%s5685_s1 + $0x8] sm:$0xff]  ;;  %v5145_v42 = vld [vmem:[%s5685_s1 + $0x10] sm:$0xff] }
 0x297   :  { %1933 = vmatpush.msrb.mxu2 %v1591_v59 }
 0x298   :  { %v1619_v32 = vsel %vm733_vm6, %v3555_v11, %v3556_v41  ;;  %v1635_v30 = vsel %vm733_vm6, %v3556_v41, %v3555_v11  ;;  %v5150_v41 = vld [vmem:[%s5685_s1 + $0x18] sm:$0xff] }
 0x299   :  { %1934 = vmatpush.msrb.mxu2 %v1590_v49  ;;  %1863 = vmatpush.msrb.mxu0 %v1619_v32 }
 0x29a   :  { %1986 = vmatpush.msrb.mxu3 %v1635_v30  ;;  %1786 = vmatmul.f32.gmra.mxu2 %v1649_v19 }
 0x29b   :  { %1827 = vmatmul.f32.gmra.mxu3 %v5000_v23  ;;  %1935 = vmatpush.msrb.mxu2 %v1549_v54 }
 0x29c   :  { %1864 = vmatpush.msrb.mxu0 %v1618_v25  ;;  %1987 = vmatpush.msrb.mxu3 %v1634_v1  ;;  %v2047_v1 = vld [vmem:[%s5685_s1 + $0x20] sm:$0xff] }
 0x29d   :  { %3043 = vmatmul.msk.f32.vlgmr.msrb.gmra.mxu0 %vm1742_vm9, %v5010_v15  ;;  %1936 = vmatpush.msrb.mxu2 %v1548_v2  ;;  %v2205_v2 = vld [vmem:[%s5685_s1 + $0x28] sm:$0xff] }
 0x29e   :  { %1909 = vmatmul.f32.gmra.mxu1 %v1649_v19 }
 0x29f   :  { %1937 = vmatpush.msrb.mxu2 %v1547_v0 }
 0x2a1   :  { %1938 = vmatpush.msrb.mxu2 %v1546_v39 }
 0x2a2   :  { %1789 = vmatmul.f32.gmra.mxu2 %v1652_v28 }
 0x2a3   :  { %1830 = vmatmul.f32.gmra.mxu3 %v1653_v52  ;;  %1939 = vmatpush.msrb.mxu2 %v1505_v62 }
 0x2a5   :  { %3044 = vmatmul.msk.f32.gmra.mxu0 %vm1742_vm9, %v1651_v21  ;;  %1940 = vmatpush.msrb.mxu2 %v1504_v43 }
 0x2a6   :  { %1912 = vmatmul.f32.gmra.mxu1 %v1652_v28 }
 0x2a7   :  { %1941 = vmatpush.msrb.mxu2 %v1503_v56 }
 0x2a9   :  { %1942 = vmatpush.msrb.mxu2 %v1502_v22 }
 0x2aa   :  { %1792 = vmatmul.f32.gmra.mxu2 %v1655_v5 }
 0x2ab   :  { %1833 = vmatmul.f32.gmra.mxu3 %v1656_v51  ;;  %1943 = vmatpush.msrb.mxu2 %v4731_v9 }
 0x2ad   :  { %3045 = vmatmul.msk.f32.gmra.mxu0 %vm1742_vm9, %v1654_v44  ;;  %1944 = vmatpush.msrb.mxu2 %v4711_v14 }
 0x2ae   :  { %1915 = vmatmul.f32.gmra.mxu1 %v1655_v5 }
 0x2af   :  { %1945 = vmatpush.msrb.mxu2 %v4698_v46 }
 0x2b1   :  { %1946 = vmatpush.msrb.mxu2 %v4684_v60 }
 0x2b2   :  { %1795 = vmatmul.f32.gmra.mxu2 %v1658_v24 }
 0x2b3   :  { %1836 = vmatmul.f32.gmra.mxu3 %v1659_v17 }
 0x2b5   :  { %3046 = vmatmul.msk.f32.gmra.mxu0 %vm1742_vm9, %v1657_v58 }
 0x2b6   :  { %1918 = vmatmul.f32.gmra.mxu1 %v1658_v24 }
 0x2ba   :  { %1798 = vmatmul.f32.gmra.mxu2 %v1661_v38 }
 0x2bb   :  { %1839 = vmatmul.f32.gmra.mxu3 %v1662_v34 }
 0x2bd   :  { %3047 = vmatmul.msk.f32.gmra.mxu0 %vm1742_vm9, %v1660_v57 }
 0x2be   :  { %1921 = vmatmul.f32.gmra.mxu1 %v1661_v38 }
 0x2c2   :  { %1801 = vmatmul.f32.gmra.mxu2 %v1664_v3 }
 0x2c3   :  { %1842 = vmatmul.f32.gmra.mxu3 %v1665_v40 }
 0x2c5   :  { %3048 = vmatmul.msk.f32.gmra.mxu0 %vm1742_vm9, %v1663_v29 }
 0x2c6   :  { %1924 = vmatmul.f32.gmra.mxu1 %v1664_v3 }
 0x2ca   :  { %1804 = vmatmul.f32.gmra.mxu2 %v1667_v33 }
 0x2cb   :  { %1845 = vmatmul.f32.gmra.mxu3 %v1668_v53 }
 0x2cd   :  { %3049 = vmatmul.msk.f32.gmra.mxu0 %vm1742_vm9, %v1666_v45 }
 0x2ce   :  { %1927 = vmatmul.f32.gmra.mxu1 %v1667_v33 }
 0x2d2   :  { %1947 = vmatmul.f32.vlgmr.msrb.gmra.mxu2 %v4962_v8 }
 0x2d3   :  { %3051 = vmatmul.msk.f32.vlgmr.msrb.gmra.mxu3 %vm1742_vm9, %v5010_v15 }
 0x2d5   :  { %3050 = vmatmul.msk.f32.gmra.mxu0 %vm1742_vm9, %v1669_v20 }
 0x2da   :  { %1950 = vmatmul.f32.gmra.mxu2 %v5000_v23 }
 0x2db   :  { %3052 = vmatmul.msk.f32.gmra.mxu3 %vm1742_vm9, %v1651_v21 }
 0x2e2   :  { %1953 = vmatmul.f32.gmra.mxu2 %v1653_v52 }
 0x2e3   :  { %3053 = vmatmul.msk.f32.gmra.mxu3 %vm1742_vm9, %v1654_v44  ;;  %v2206_v44 = vld [vmem:[%s5685_s1 + $0x38] sm:$0xff] }
 0x2ea   :  { %1956 = vmatmul.f32.gmra.mxu2 %v1656_v51  ;;  %v2048_v51 = vld [vmem:[%s5685_s1 + $0x30] sm:$0xff] }
 0x2eb   :  { %3054 = vmatmul.msk.f32.gmra.mxu3 %vm1742_vm9, %v1657_v58 }
 0x2f2   :  { %1959 = vmatmul.f32.gmra.mxu2 %v1659_v17 }
 0x2f3   :  { %3055 = vmatmul.msk.f32.gmra.mxu3 %vm1742_vm9, %v1660_v57 }
 0x2fa   :  { %1962 = vmatmul.f32.gmra.mxu2 %v1662_v34 }
 0x2fb   :  { %3056 = vmatmul.msk.f32.gmra.mxu3 %vm1742_vm9, %v1663_v29 }
 0x302   :  { %1965 = vmatmul.f32.gmra.mxu2 %v1665_v40 }
 0x303   :  { %3057 = vmatmul.msk.f32.gmra.mxu3 %vm1742_vm9, %v1666_v45 }
 0x30a   :  { %1968 = vmatmul.f32.gmra.mxu2 %v1668_v53 }
 0x30b   :  { %3058 = vmatmul.msk.f32.gmra.mxu3 %vm1742_vm9, %v1669_v20 }
 0x315   :  { %v1784_v36 = vpop.f32.mrf.mxu2 }
 0x316   :  { %v1825_v4 = vpop.f32.mrf.mxu3 }
 0x317   :  { %v1826_v55 = vadd.f32 %v1825_v4, %v1784_v36 }
 0x31a   :  { %v1866_v13 = vpop.f32.mrf.mxu0 }
 0x31b   :  { %v1867_v63 = vadd.f32 %v1866_v13, %v1826_v55  ;;  %v1907_v55 = vpop.f32.mrf.mxu1 }
 0x31d   :  { %v1787_v18 = vpop.f32.mrf.mxu2  ;;  %v2013_v50 = vmul.f32 %v1867_v63, %v4676_v48 }
 0x31e   :  { %v1828_v31 = vpop.f32.mrf.mxu3 }
 0x31f   :  { %v1829_v8 = vadd.f32 %v1828_v31, %v1787_v18  ;;  %v2053_v6 = vmul.f32 %v5135_v16, %v2013_v50  ;;  %v2211_v19 = vmul.f32 %v5140_v10, %v2013_v50 }
 0x322   :  { %v1869_v12 = vpop.f32.mrf.mxu0 }
 0x323   :  { %v1870_v37 = vadd.f32 %v1869_v12, %v1829_v8  ;;  %v1910_v8 = vpop.f32.mrf.mxu1 }
 0x325   :  { %v2015_v11 = vmul.f32 %v1870_v37, %v4676_v48  ;;  %v1790_v59 = vpop.f32.mrf.mxu2 }
 0x326   :  { %v1831_v27 = vpop.f32.mrf.mxu3 }
 0x327   :  { %v2054_v49 = vmul.f32 %v5145_v42, %v2015_v11  ;;  %v2212_v32 = vmul.f32 %v5150_v41, %v2015_v11  ;;  %v1832_v30 = vadd.f32 %v1831_v27, %v1790_v59 }
 0x329   :  { %v2057_v23 = vadd.f32 %v2054_v49, %v2053_v6  ;;  %v2215_v54 = vadd.f32 %v2212_v32, %v2211_v19 }
 0x32a   :  { %v1872_v15 = vpop.f32.mrf.mxu0 }
 0x32b   :  { %v1873_v25 = vadd.f32 %v1872_v15, %v1832_v30  ;;  %v1913_v37 = vpop.f32.mrf.mxu1 }
 0x32d   :  { %v2017_v0 = vmul.f32 %v1873_v25, %v4676_v48  ;;  %v1793_v28 = vpop.f32.mrf.mxu2 }
 0x32e   :  { %v1834_v39 = vpop.f32.mrf.mxu3 }
 0x32f   :  { %v2055_v52 = vmul.f32 %v2047_v1, %v2017_v0  ;;  %v2213_v62 = vmul.f32 %v2205_v2, %v2017_v0  ;;  %v1835_v56 = vadd.f32 %v1834_v39, %v1793_v28 }
 0x331   :  { %v2058_v21 = vadd.f32 %v2057_v23, %v2055_v52  ;;  %v2216_v43 = vadd.f32 %v2215_v54, %v2213_v62 }
 0x332   :  { %v1875_v5 = vpop.f32.mrf.mxu0 }
 0x333   :  { %v1876_v22 = vadd.f32 %v1875_v5, %v1835_v56  ;;  %v1916_v0 = vpop.f32.mrf.mxu1 }
 0x335   :  { %v2019_v24 = vmul.f32 %v1876_v22, %v4676_v48  ;;  %v1796_v17 = vpop.f32.mrf.mxu2 }
 0x336   :  { %v1837_v58 = vpop.f32.mrf.mxu3 }
 0x337   :  { %v2056_v38 = vmul.f32 %v2048_v51, %v2019_v24  ;;  %v2214_v34 = vmul.f32 %v2206_v44, %v2019_v24  ;;  %v5171_v57 = vadd.f32 %v1837_v58, %v1796_v17 }
 0x339   :  { %v2059_v3 = vadd.f32 %v2058_v21, %v2056_v38  ;;  %v2217_v40 = vadd.f32 %v2216_v43, %v2214_v34 }
 0x33b   :  { %v2060_v54 = vrot.slane %v2059_v3, 4  ;;  %v2218_v15 = vrot.slane %v2217_v40, 4 }
 0x33d   :  { %v1799_v29 = vpop.f32.mrf.mxu2  ;;  %v2061_v56 = vadd.f32 %v2060_v54, %v2059_v3  ;;  %v2219_v5 = vadd.f32 %v2218_v15, %v2217_v40 }
 0x33e   :  { %v1840_v33 = vpop.f32.mrf.mxu3 }
 0x33f   :  { %v5173_v53 = vadd.f32 %v1840_v33, %v1799_v29 }
 0x345   :  { %v1802_v45 = vpop.f32.mrf.mxu2 }
 0x346   :  { %v1843_v20 = vpop.f32.mrf.mxu3 }
 0x347   :  { %v5175_v36 = vadd.f32 %v1843_v20, %v1802_v45  ;;  %v2062_v45 = vrot.slane %v2061_v56, 2  ;;  %v2220_v20 = vrot.slane %v2219_v5, 2 }
 0x34d   :  { %v1805_v4 = vpop.f32.mrf.mxu2 }
 0x34e   :  { %v1846_v13 = vpop.f32.mrf.mxu3 }
 0x34f   :  { %v5177_v18 = vadd.f32 %v1846_v13, %v1805_v4  ;;  %v1919_v13 = vpop.f32.mrf.mxu1 }
 0x355   :  { %v1948_v63 = vpop.f32.mrf.mxu2 }
 0x356   :  { %v1989_v31 = vpop.f32.mrf.mxu3  ;;  %v1949_v59 = vadd.f32 %v1948_v63, %v1907_v55 }
 0x358   :  { %v1990_v32 = vadd.f32 %v1989_v31, %v1949_v59  ;;  %v2221_v31 = vadd.f32 %v2220_v20, %v2219_v5 }
 0x35a   :  { %v2014_v25 = vmul.f32 %v1990_v32, %v4678_v26 }
 0x35c   :  { %v2071_v22 = vmul.f32 %v5135_v16, %v2014_v25  ;;  %v2229_v24 = vmul.f32 %v5140_v10, %v2014_v25  ;;  %v2063_v16 = vadd.f32 %v2062_v45, %v2061_v56 }
 0x35d   :  { %v1951_v50 = vpop.f32.mrf.mxu2 }
 0x35e   :  { %v1992_v12 = vpop.f32.mrf.mxu3  ;;  %v1952_v11 = vadd.f32 %v1951_v50, %v1910_v8 }
 0x360   :  { %v1993_v27 = vadd.f32 %v1992_v12, %v1952_v11  ;;  %v2222_v11 = vrot.slane %v2221_v31, 1 }
 0x362   :  { %v2016_v23 = vmul.f32 %v1993_v27, %v4678_v26  ;;  %v2223_v32 = vadd.f32 %v2222_v11, %v2221_v31 }
 0x364   :  { %v2072_v52 = vmul.f32 %v5145_v42, %v2016_v23  ;;  %v2230_v62 = vmul.f32 %v5150_v41, %v2016_v23 }
 0x365   :  { %v1954_v6 = vpop.f32.mrf.mxu2 }
 0x366   :  { %v1955_v19 = vadd.f32 %v1954_v6, %v1913_v37  ;;  %v1995_v49 = vpop.f32.mrf.mxu3  ;;  %v2075_v34 = vadd.f32 %v2072_v52, %v2071_v22  ;;  %v2233_v29 = vadd.f32 %v2230_v62, %v2229_v24  ;;  %v2064_v37 = vrot.slane %v2063_v16, 1 }
 0x368   :  { %v1996_v30 = vadd.f32 %v1995_v49, %v1955_v19 }
 0x36a   :  { %v2018_v28 = vmul.f32 %v1996_v30, %v4678_v26 }
 0x36c   :  { %v2073_v17 = vmul.f32 %v2047_v1, %v2018_v28  ;;  %v2231_v58 = vmul.f32 %v2205_v2, %v2018_v28  ;;  %v1878_v2 = vpop.f32.mrf.mxu0 }
 0x36d   :  { %v1957_v39 = vpop.f32.mrf.mxu2 }
 0x36e   :  { %v1958_v21 = vadd.f32 %v1957_v39, %v1916_v0  ;;  %v1998_v43 = vpop.f32.mrf.mxu3  ;;  %v2076_v42 = vadd.f32 %v2075_v34, %v2073_v17  ;;  %v2234_v4 = vadd.f32 %v2233_v29, %v2231_v58  ;;  %v2224_v39 = vmul.f32 0.17677669, %v2223_v32 }
 0x370   :  { %v1999_v38 = vadd.f32 %v1998_v43, %v1958_v21 }
 0x372   :  { %v2020_v33 = vmul.f32 %v1999_v38, %v4678_v26 }
 0x374   :  { %v2074_v41 = vmul.f32 %v2048_v51, %v2020_v33  ;;  %v2232_v55 = vmul.f32 %v2206_v44, %v2020_v33  ;;  %v2065_v51 = vadd.f32 %v2064_v37, %v2063_v16  ;;  %v1922_v44 = vpop.f32.mrf.mxu1  ;;  %v1881_v0 = vpop.f32.mrf.mxu0 }
 0x375   :  { %v1960_v3 = vpop.f32.mrf.mxu2 }
 0x376   :  { %v2077_v40 = vadd.f32 %v2076_v42, %v2074_v41  ;;  %v2235_v63 = vadd.f32 %v2234_v4, %v2232_v55  ;;  %v2001_v8 = vpop.f32.mrf.mxu3  ;;  %v2066_v25 = vmul.f32 0.17677669, %v2065_v51  ;;  %v1961_v31 = vadd.f32 %v1960_v3, %v1919_v13 }
 0x378   :  { %v2078_v10 = vrot.slane %v2077_v40, 4  ;;  %v2236_v1 = vrot.slane %v2235_v63, 4 }
 0x37a   :  { %v2079_v50 = vadd.f32 %v2078_v10, %v2077_v40  ;;  %v2237_v12 = vadd.f32 %v2236_v1, %v2235_v63 }
 0x37c   :  { %v2080_v59 = vrot.slane %v2079_v50, 2  ;;  %v2238_v6 = vrot.slane %v2237_v12, 2  ;;  %v1925_v17 = vpop.f32.mrf.mxu1  ;;  %v1884_v45 = vpop.f32.mrf.mxu0 }
 0x37d   :  { %v1963_v49 = vpop.f32.mrf.mxu2 }
 0x37e   :  { %v2081_v27 = vadd.f32 %v2080_v59, %v2079_v50  ;;  %v2239_v19 = vadd.f32 %v2238_v6, %v2237_v12  ;;  %v2004_v28 = vpop.f32.mrf.mxu3  ;;  %v1964_v10 = vadd.f32 %v1963_v49, %v1922_v44  ;;  %v1879_v59 = vadd.f32 %v1878_v2, %v5171_v57 }
 0x37f   :  { %v1882_v6 = vadd.f32 %v1881_v0, %v5173_v53 }
 0x380   :  { %v2082_v30 = vrot.slane %v2081_v27, 1  ;;  %v2240_v23 = vrot.slane %v2239_v19, 1  ;;  %v2005_v32 = vadd.f32 %v2004_v28, %v1964_v10  ;;  %v2021_v44 = vmul.f32 %v1879_v59, %v4676_v48 }
 0x381   :  { %v2023_v49 = vmul.f32 %v1882_v6, %v4676_v48 }
 0x382   :  { %v2083_v54 = vadd.f32 %v2082_v30, %v2081_v27  ;;  %v2241_v15 = vadd.f32 %v2240_v23, %v2239_v19  ;;  %v1885_v27 = vadd.f32 %v1884_v45, %v5175_v36  ;;  %v2002_v19 = vadd.f32 %v2001_v8, %v1961_v31 }
 0x383   :  { %v2024_v8 = vmul.f32 %v2005_v32, %v4678_v26 }
 0x384   :  { %v2084_v52 = vmul.f32 0.17677669, %v2083_v54  ;;  %v2242_v62 = vmul.f32 0.17677669, %v2241_v15  ;;  %v1928_v41 = vpop.f32.mrf.mxu1  ;;  %v1887_v37 = vpop.f32.mrf.mxu0  ;;  %v2025_v23 = vmul.f32 %v1885_v27, %v4676_v48  ;;  %v2022_v57 = vmul.f32 %v2002_v19, %v4678_v26 }
 0x385   :  { %v1966_v58 = vpop.f32.mrf.mxu2  ;;  %v1888_v51 = vadd.f32 %v1887_v37, %v5177_v18 }
 0x386   :  { %v2085_v21 = vmax.f32 %v2066_v25, %v2084_v52  ;;  %v2243_v43 = vmax.f32 %v2224_v39, %v2242_v62  ;;  %v2007_v20 = vpop.f32.mrf.mxu3  ;;  %v1967_v50 = vadd.f32 %v1966_v58, %v1925_v17 }
 0x387   :  { %v2027_v36 = vmul.f32 %v1888_v51, %v4676_v48 }
 0x388   :  { %v2086_v56 = vsub.f32 %v2066_v25, %v2085_v21  ;;  %v2089_v5 = vsub.f32 %v2084_v52, %v2085_v21  ;;  %v2244_v22 = vsub.f32 %v2224_v39, %v2243_v43  ;;  %v2247_v24 = vsub.f32 %v2242_v62, %v2243_v43 }
 0x389   :  { %v2008_v30 = vadd.f32 %v2007_v20, %v1967_v50 }
 0x38a   :  { %v2087_v38 = vmul.f32 1.442695, %v2086_v56  ;;  %v2090_v34 = vmul.f32 1.442695, %v2089_v5  ;;  %v2245_v29 = vmul.f32 1.442695, %v2244_v22 }
 0x38b   :  { %v2248_v33 = vmul.f32 1.442695, %v2247_v24  ;;  %v2026_v18 = vmul.f32 %v2008_v30, %v4678_v26 }
 0x38c   :  { %3729 = vpow2.f32 %v2087_v38 }
 0x38d   :  { %3731 = vpow2.f32 %v2090_v34  ;;  %v1969_v55 = vpop.f32.mrf.mxu2 }
 0x38e   :  { %3733 = vpow2.f32 %v2245_v29  ;;  %v1970_v12 = vadd.f32 %v1969_v55, %v1928_v41  ;;  %v2010_v11 = vpop.f32.mrf.mxu3 }
 0x38f   :  { %3735 = vpow2.f32 %v2248_v33 }
 0x390   :  { %v2011_v13 = vadd.f32 %v2010_v11, %v1970_v12 }
 0x392   :  { %v3730_v42 = vpop.eup %3729  ;;  %v2028_v15 = vmul.f32 %v2011_v13, %v4678_v26 }
 0x393   :  { %v3732_v4 = vpop.eup %3731 }
 0x394   :  { %v3734_v40 = vpop.eup %3733  ;;  %v2092_v63 = vadd.f32 %v3732_v4, %v3730_v42 }
 0x395   :  { %v3736_v16 = vpop.eup %3735 }
 0x396   :  { %3737 = vrcp.f32 %v2092_v63  ;;  %v2250_v1 = vadd.f32 %v3736_v16, %v3734_v40 }
 0x398   :  { %3739 = vrcp.f32 %v2250_v1 }
 0x39c   :  { %v3738_v3 = vpop.eup %3737 }
 0x39d   :  { %v2094_v2 = vmul.f32 %v3738_v3, %v3730_v42  ;;  %v2103_v53 = vmul.f32 %v3738_v3, %v3732_v4 }
 0x39e   :  { %v3740_v54 = vpop.eup %3739 }
 0x39f   :  { %v2099_v25 = vmul.f32 %v2094_v2, %v2021_v44  ;;  %v2108_v0 = vmul.f32 %v2103_v53, %v2022_v57  ;;  %v2252_v28 = vmul.f32 %v3740_v54, %v3734_v40  ;;  %v2261_v39 = vmul.f32 %v3740_v54, %v3736_v16 }
 0x3a0   :  { %v2100_v52 = vmul.f32 %v2094_v2, %v2023_v49  ;;  %v2109_v62 = vmul.f32 %v2103_v53, %v2024_v8  ;;  %v2101_v21 = vmul.f32 %v2094_v2, %v2025_v23  ;;  %v2110_v43 = vmul.f32 %v2103_v53, %v2026_v18 }
 0x3a1   :  { %v5199_v56 = vadd.f32 %v2108_v0, %v2099_v25  ;;  %v2257_v5 = vmul.f32 %v2252_v28, %v2021_v44  ;;  %v2266_v22 = vmul.f32 %v2261_v39, %v2022_v57  ;;  %v2258_v24 = vmul.f32 %v2252_v28, %v2023_v49 }
 0x3a2   :  { %v5201_v48 = vadd.f32 %v2109_v62, %v2100_v52  ;;  %v2267_v17 = vmul.f32 %v2261_v39, %v2024_v8  ;;  %v5203_v58 = vadd.f32 %v2110_v43, %v2101_v21  ;;  %v2259_v38 = vmul.f32 %v2252_v28, %v2025_v23 }
 0x3a3   :  { %v5205_v26 = vadd.f32 %v2266_v22, %v2257_v5  ;;  %v2268_v34 = vmul.f32 %v2261_v39, %v2026_v18  ;;  %v2111_v29 = vmul.f32 %v2103_v53, %v2028_v15  ;;  %v2269_v33 = vmul.f32 %v2261_v39, %v2028_v15 }
 0x3a4   :  { %v5207_v45 = vadd.f32 %v2267_v17, %v2258_v24  ;;  %v2260_v20 = vmul.f32 %v2252_v28, %v2027_v36  ;;  %v2102_v42 = vmul.f32 %v2094_v2, %v2027_v36  ;;  %v2116_v4 = vadd.f32 %v5201_v48, %v5199_v56 }
 0x3a5   :  { %v5211_v41 = vadd.f32 %v2268_v34, %v2259_v38  ;;  %v2128_v55 = vmul.f32 %v5199_v56, %v5199_v56  ;;  %v2129_v40 = vmul.f32 %v5201_v48, %v5201_v48  ;;  %v2130_v1 = vmul.f32 %v5203_v58, %v5203_v58 }
 0x3a6   :  { %v5217_v63 = vadd.f32 %v2269_v33, %v2260_v20  ;;  %v2274_v16 = vadd.f32 %v5207_v45, %v5205_v26  ;;  %v5221_v31 = vadd.f32 %v2111_v29, %v2102_v42  ;;  %v2117_v10 = vadd.f32 %v2116_v4, %v5203_v58 }
 0x3a7   :  { %v2132_v50 = vadd.f32 %v2129_v40, %v2128_v55  ;;  %v2286_v12 = vmul.f32 %v5205_v26, %v5205_v26  ;;  %v2287_v37 = vmul.f32 %v5207_v45, %v5207_v45  ;;  %v2288_v30 = vmul.f32 %v5211_v41, %v5211_v41 }
 0x3a8   :  { %v2275_v11 = vadd.f32 %v2274_v16, %v5211_v41  ;;  %v2118_v59 = vadd.f32 %v2117_v10, %v5221_v31  ;;  %v2131_v6 = vmul.f32 %v5221_v31, %v5221_v31  ;;  %v2289_v3 = vmul.f32 %v5217_v63, %v5217_v63 }
 0x3a9   :  { %v2133_v27 = vadd.f32 %v2132_v50, %v2130_v1  ;;  %v2290_v51 = vadd.f32 %v2287_v37, %v2286_v12 }
 0x3aa   :  { %v2276_v19 = vadd.f32 %v2275_v11, %v5217_v63  ;;  %2119 = vadd.xlane.f32.xlu0 %v2118_v59 }
 0x3ab   :  { %v2134_v32 = vadd.f32 %v2133_v27, %v2131_v6  ;;  %v2291_v13 = vadd.f32 %v2290_v51, %v2288_v30 }
 0x3ac   :  { %2277 = vadd.xlane.f32.xlu2 %v2276_v19 }
 0x3ad   :  { %2135 = vadd.xlane.f32.xlu1 %v2134_v32  ;;  %v2292_v44 = vadd.f32 %v2291_v13, %v2289_v3 }
 0x3b4   :  { %2293 = vadd.xlane.f32.xlu2 %v2292_v44 }
 0x41d   :  { %v2120_v49 = vpop.xlane.xlu0 %2119 }
 0x41e   :  { %v2121_v23 = vrot.slane %v2120_v49, 4 }
 0x41f   :  { %v2278_v52 = vpop.xlane.xlu2 %2277 }
 0x420   :  { %v2122_v57 = vadd.f32 %v2121_v23, %v2120_v49  ;;  %v2136_v2 = vpop.xlane.xlu1 %2135  ;;  %v2279_v21 = vrot.slane %v2278_v52, 4 }
 0x421   :  { %v2137_v53 = vrot.slane %v2136_v2, 4 }
 0x422   :  { %v2123_v54 = vrot.slane %v2122_v57, 2  ;;  %v2280_v22 = vadd.f32 %v2279_v21, %v2278_v52  ;;  %v2172_v21 = vld [vmem:[%s5686_s5 + $0x8] sm:$0xff] }
 0x423   :  { %v2138_v36 = vadd.f32 %v2137_v53, %v2136_v2  ;;  %v2174_v2 = vld [vmem:[%s5686_s5 + $0x18] sm:$0xff] }
 0x424   :  { %v2124_v8 = vadd.f32 %v2123_v54, %v2122_v57  ;;  %v2281_v17 = vrot.slane %v2280_v22, 2  ;;  %v2173_v57 = vld [vmem:[%s5686_s5 + $0x10] sm:$0xff] }
 0x425   :  { %v2139_v18 = vrot.slane %v2138_v36, 2 }
 0x426   :  { %v2125_v15 = vrot.slane %v2124_v8, 1  ;;  %v2282_v20 = vadd.f32 %v2281_v17, %v2280_v22 }
 0x427   :  { %v2140_v25 = vadd.f32 %v2139_v18, %v2138_v36  ;;  %v2294_v62 = vpop.xlane.xlu2 %2293  ;;  %v2182_v18 = vld [vmem:[%s5687_s6 + $0x18] sm:$0xff] }
 0x428   :  { %v2126_v0 = vadd.f32 %v2125_v15, %v2124_v8  ;;  %v2295_v43 = vrot.slane %v2294_v62, 4  ;;  %v2283_v40 = vrot.slane %v2282_v20, 1  ;;  %v2181_v8 = vld [vmem:[%s5687_s6 + $0x10] sm:$0xff] }
 0x429   :  { %v2141_v28 = vrot.slane %v2140_v25, 1 }
 0x42a   :  { %3067 = vpush %v2126_v0  ;;  %v2296_v24 = vadd.f32 %v2295_v43, %v2294_v62  ;;  %v2284_v50 = vadd.f32 %v2283_v40, %v2282_v20  ;;  %v3727_v20 = vld [vmem:[%s5683_s7] ss:$0 sm:$0xff] }
 0x42b   :  { %v2142_v39 = vadd.f32 %v2141_v28, %v2140_v25 }
 0x42c   :  { %v2297_v34 = vrot.slane %v2296_v24, 2 }
 0x42d   :  { %3069 = vpush %v2142_v39 }
 0x42e   :  { %v2298_v42 = vadd.f32 %v2297_v34, %v2296_v24 }
 0x430   :  { %v2299_v16 = vrot.slane %v2298_v42, 1 }
 0x432   :  { %v2300_v12 = vadd.f32 %v2299_v16, %v2298_v42  ;;  %v2179_v16 = vld [vmem:[%s5687_s6] sm:$0xff] }
 0x45b   :  { %s3068_s1 = spop %3067 }
 0x45c   :  { %s5239_s18 = smul.f32 0.00048828125, %s3068_s1 }
 0x45e   :  { %s2146_s3 = smul.f32 %s5239_s18, %s5239_s18  ;;  %s3070_s25 = spop %3069  ;;  %v2161_v37 = vstv %s5239_s18 }
 0x45f   :  { %s2145_s26 = smul.f32 0.00048828125, %s3070_s25  ;;  %v2162_v11 = vsub.f32 %v5199_v56, %v2161_v37  ;;  %v2163_v59 = vsub.f32 %v5201_v48, %v2161_v37  ;;  %v2164_v6 = vsub.f32 %v5203_v58, %v2161_v37  ;;  %v2165_v27 = vsub.f32 %v5221_v31, %v2161_v37 }
 0x461   :  { %s2147_s27 = ssub.f32 %s2145_s26, %s2146_s3 }
 0x463   :  { %s2148_s28 = sadd.f32 1e-05, %s2147_s27 }
 0x465   :  { %v2149_v5 = vstv %s2148_s28 }
 0x466   :  { %3741 = vrsqrt.f32 %v2149_v5  ;;  %vm2156_vm11 = vweird.f32 %v2149_v5 }
 0x46c   :  { %v3742_v38 = vpop.eup %3741 }
 0x46d   :  { %v2151_v29 = vmul.f32 %v3742_v38, %v2149_v5  ;;  %vm2157_vm10 = vweird.f32 %v3742_v38 }
 0x46e   :  { %vm2158_vm12 = vmor %vm2156_vm11, %vm2157_vm10 }
 0x46f   :  { %v2152_v33 = vmul.f32 %v3742_v38, %v2151_v29 }
 0x471   :  { %v2153_v4 = vmul.f32 0.5, %v2152_v33 }
 0x473   :  { %v2154_v55 = vsub.f32 1.5, %v2153_v4 }
 0x475   :  { %v2155_v10 = vmul.f32 %v3742_v38, %v2154_v55  ;;  %v3728_v55 = vld [vmem:[%s5683_s7 + $0x1] ss:$0 sm:$0xff] }
 0x477   :  { %v2159_v1 = vsel %vm2158_vm12, %v3742_v38, %v2155_v10 }
 0x478   :  { %3071 = vpush %v2159_v1 }
 0x479   :  { %3073 = vpush %v2284_v50 }
 0x47a   :  { %3075 = vpush %v2300_v12 }
 0x4a9   :  { %s3072_s29 = spop %3071 }
 0x4aa   :  { %v2166_v19 = vstv %s3072_s29  ;;  %s3074_s30 = spop %3073 }
 0x4ab   :  { %v2167_v51 = vmul.f32 %v2166_v19, %v2162_v11  ;;  %v2168_v32 = vmul.f32 %v2166_v19, %v2163_v59  ;;  %v2169_v30 = vmul.f32 %v2166_v19, %v2164_v6  ;;  %v2170_v13 = vmul.f32 %v2166_v19, %v2165_v27  ;;  %s2302_s9 = smul.f32 0.00048828125, %s3074_s30  ;;  %s3076_s10 = spop %3075 }
 0x4ac   :  { %s2303_s11 = smul.f32 0.00048828125, %s3076_s10 }
 0x4ad   :  { %s2304_s12 = smul.f32 %s2302_s9, %s2302_s9  ;;  %v2177_v53 = vmul.f32 %v2173_v57, %v2169_v30  ;;  %v2178_v54 = vmul.f32 %v2174_v2, %v2170_v13  ;;  %v2319_v36 = vstv %s2302_s9  ;;  %v2176_v38 = vmul.f32 %v2172_v21, %v2168_v32 }
 0x4ae   :  { %v2320_v15 = vsub.f32 %v5205_v26, %v2319_v36  ;;  %v2321_v25 = vsub.f32 %v5207_v45, %v2319_v36  ;;  %v2322_v0 = vsub.f32 %v5211_v41, %v2319_v36  ;;  %v2323_v28 = vsub.f32 %v5217_v63, %v2319_v36  ;;  %v2171_v26 = vld [vmem:[%s5686_s5] sm:$0xff]  ;;  %v2180_v63 = vld [vmem:[%s5687_s6 + $0x8] sm:$0xff] }
 0x4af   :  { %s2305_s15 = ssub.f32 %s2303_s11, %s2304_s12  ;;  %v2185_v39 = vadd.f32 %v2181_v8, %v2177_v53  ;;  %v2186_v52 = vadd.f32 %v2182_v18, %v2178_v54  ;;  %v2175_v40 = vmul.f32 %v2171_v26, %v2167_v51  ;;  %v2184_v12 = vadd.f32 %v2180_v63, %v2176_v38 }
 0x4b1   :  { %s2306_s16 = sadd.f32 1e-05, %s2305_s15  ;;  %v2189_v29 = vmax.f32 %v2185_v39, 0.0  ;;  %v2190_v33 = vmax.f32 %v2186_v52, 0.0  ;;  %v2183_v19 = vadd.f32 %v2179_v16, %v2175_v40 }
 0x4b3   :  { %v2307_v3 = vstv %s2306_s16  ;;  %v5282_v11 = vmul.f32 %v3727_v20, %v2189_v29  ;;  %v5284_v59 = vmul.f32 %v3727_v20, %v2190_v33 }
 0x4b4   :  { %3743 = vrsqrt.f32 %v2307_v3  ;;  %vm2314_vm14 = vweird.f32 %v2307_v3 }
 0x4ba   :  { %v3744_v56 = vpop.eup %3743 }
 0x4bb   :  { %v2309_v48 = vmul.f32 %v3744_v56, %v2307_v3  ;;  %vm2315_vm13 = vweird.f32 %v3744_v56 }
 0x4bc   :  { %vm2316_vm15 = vmor %vm2314_vm14, %vm2315_vm13 }
 0x4bd   :  { %v2310_v44 = vmul.f32 %v3744_v56, %v2309_v48  ;;  %v2187_v48 = vmax.f32 %v2183_v19, 0.0 }
 0x4bf   :  { %v2311_v58 = vmul.f32 0.5, %v2310_v44 }
 0x4c1   :  { %v2312_v49 = vsub.f32 1.5, %v2311_v58 }
 0x4c3   :  { %v2313_v31 = vmul.f32 %v3744_v56, %v2312_v49 }
 0x4c5   :  { %v2317_v23 = vsel %vm2316_vm15, %v3744_v56, %v2313_v31  ;;  %v2188_v56 = vmax.f32 %v2184_v12, 0.0  ;;  %v5305_v31 = vmul.f32 %v3727_v20, %v2187_v48 }
 0x4c6   :  { %3077 = vpush %v2317_v23 }
 0x4c7   :  { %v5303_v49 = vmul.f32 %v3727_v20, %v2188_v56 }
 0x4f7   :  { %s3078_s27 = spop %3077 }
 0x4f8   :  { %v2324_v62 = vstv %s3078_s27 }
 0x4f9   :  { %v2325_v43 = vmul.f32 %v2324_v62, %v2320_v15  ;;  %v2326_v5 = vmul.f32 %v2324_v62, %v2321_v25  ;;  %v2327_v22 = vmul.f32 %v2324_v62, %v2322_v0  ;;  %v2328_v24 = vmul.f32 %v2324_v62, %v2323_v28 }
 0x4fb   :  { %v2334_v45 = vmul.f32 %v2326_v5, %v2172_v21  ;;  %v2335_v17 = vmul.f32 %v2327_v22, %v2173_v57  ;;  %v2336_v41 = vmul.f32 %v2328_v24, %v2174_v2  ;;  %v2333_v34 = vmul.f32 %v2325_v43, %v2171_v26 }
 0x4fd   :  { %v2343_v42 = vadd.f32 %v2335_v17, %v2181_v8  ;;  %v2344_v4 = vadd.f32 %v2336_v41, %v2182_v18  ;;  %v2342_v10 = vadd.f32 %v2334_v45, %v2180_v63  ;;  %v2341_v37 = vadd.f32 %v2333_v34, %v2179_v16 }
 0x4ff   :  { %v2347_v1 = vmax.f32 %v2343_v42, 0.0  ;;  %v2348_v50 = vmax.f32 %v2344_v4, 0.0  ;;  %v2346_v32 = vmax.f32 %v2342_v10, 0.0  ;;  %v2345_v3 = vmax.f32 %v2341_v37, 0.0 }
 0x501   :  { %v5286_v6 = vmul.f32 %v3728_v55, %v2347_v1  ;;  %v5288_v27 = vmul.f32 %v3728_v55, %v2348_v50  ;;  %v5299_v44 = vmul.f32 %v3728_v55, %v2346_v32  ;;  %v5301_v58 = vmul.f32 %v3728_v55, %v2345_v3 }
 0x503   :  { %v3572_v51 = vpack.i.bf16 %v5284_v59, %v5288_v27  ;;  %v3567_v30 = vpack.i.bf16 %v5288_v27, %v5284_v59  ;;  %v3577_v13 = vpack.i.bf16 %v5286_v6, %v5282_v11  ;;  %v3582_v23 = vpack.i.bf16 %v5282_v11, %v5286_v6 }
 0x504   :  { %v3587_v57 = vpack.i.bf16 %v5299_v44, %v5303_v49  ;;  %v3597_v2 = vpack.i.bf16 %v5301_v58, %v5305_v31  ;;  %v3592_v53 = vpack.i.bf16 %v5303_v49, %v5299_v44  ;;  %v3602_v54 = vpack.i.bf16 %v5305_v31, %v5301_v58 }
 0x505   :  { %3573 = vrot.lane.b32.xlu1 %v3572_v51, %s3753_s13  ;;  %3568 = vrot.lane.b32.xlu0 %v3567_v30, %s3758_s22 }
 0x506   :  { %3578 = vrot.lane.b32.xlu2 %v3577_v13, %s3758_s22 }
 0x50d   :  { %3583 = vrot.lane.b32.xlu0 %v3582_v23, %s3753_s13  ;;  %3588 = vrot.lane.b32.xlu1 %v3587_v57, %s3758_s22 }
 0x50e   :  { %3598 = vrot.lane.b32.xlu2 %v3597_v2, %s3758_s22 }
 0x515   :  { %3593 = vrot.lane.b32.xlu0 %v3592_v53, %s3753_s13  ;;  %3603 = vrot.lane.b32.xlu1 %v3602_v54, %s3753_s13 }
 0x516   :  { %3613 = vrot.lane.b32.xlu2 %v3572_v51, %s3756_s20 }
 0x51d   :  { %3608 = vrot.lane.b32.xlu0 %v3567_v30, %s3759_s23  ;;  %3618 = vrot.lane.b32.xlu1 %v3577_v13, %s3759_s23 }
 0x51e   :  { %3628 = vrot.lane.b32.xlu2 %v3587_v57, %s3759_s23 }
 0x525   :  { %3623 = vrot.lane.b32.xlu0 %v3582_v23, %s3756_s20  ;;  %3633 = vrot.lane.b32.xlu1 %v3592_v53, %s3756_s20 }
 0x526   :  { %3643 = vrot.lane.b32.xlu2 %v3602_v54, %s3756_s20 }
 0x52d   :  { %3638 = vrot.lane.b32.xlu0 %v3597_v2, %s3759_s23  ;;  %3648 = vrot.lane.b32.xlu1 %v3567_v30, %s3757_s21 }
 0x52e   :  { %3658 = vrot.lane.b32.xlu2 %v3577_v13, %s3757_s21 }
 0x535   :  { %3653 = vrot.lane.b32.xlu0 %v3572_v51, %s3754_s14  ;;  %3663 = vrot.lane.b32.xlu1 %v3582_v23, %s3754_s14 }
 0x536   :  { %3673 = vrot.lane.b32.xlu2 %v3592_v53, %s3754_s14 }
 0x53d   :  { %3668 = vrot.lane.b32.xlu0 %v3587_v57, %s3757_s21  ;;  %3678 = vrot.lane.b32.xlu1 %v3597_v2, %s3757_s21 }
 0x53e   :  { %3688 = vrot.lane.b32.xlu2 %v3572_v51, %s3755_s19 }
 0x545   :  { %3683 = vrot.lane.b32.xlu0 %v3602_v54, %s3754_s14  ;;  %3693 = vrot.lane.b32.xlu1 %v3582_v23, %s3755_s19 }
 0x546   :  { %3703 = vrot.lane.b32.xlu2 %v3602_v54, %s3755_s19 }
 0x54d   :  { %3698 = vrot.lane.b32.xlu0 %v3592_v53, %s3755_s19  ;;  %3708 = vrot.lane.b32.xlu1 %v3567_v30, %s3760_s24 }
 0x54e   :  { %3718 = vrot.lane.b32.xlu2 %v3587_v57, %s3760_s24 }
 0x555   :  { %3713 = vrot.lane.b32.xlu0 %v3577_v13, %s3760_s24  ;;  %3723 = vrot.lane.b32.xlu1 %v3597_v2, %s3760_s24 }
 0x560   :  { %v3579_v36 = vpop.permute.xlu2 %3578 }
 0x561   :  { %v3581_v18 = vunpack.i.h.bf16 %v3579_v36  ;;  %v3580_v15 = vunpack.i.l.bf16 %v3579_v36 }
 0x563   :  { %v2667_v24 = vsel %vm644_vm5, %v3580_v15, %v3581_v18  ;;  %v2683_v26 = vsel %vm644_vm5, %v3581_v18, %v3580_v15 }
 0x568   :  { %v3599_v8 = vpop.permute.xlu2 %3598 }
 0x569   :  { %v3601_v17 = vunpack.i.h.bf16 %v3599_v8  ;;  %v3600_v41 = vunpack.i.l.bf16 %v3599_v8 }
 0x56b   :  { %v2665_v40 = vsel %vm644_vm5, %v3600_v41, %v3601_v17  ;;  %v2681_v16 = vsel %vm644_vm5, %v3601_v17, %v3600_v41 }
 0x570   :  { %v5354_v45 = vpop.permute.xlu2 %3613 }
 0x571   :  { %v3616_v51 = vunpack.i.h.bf16 %v5354_v45  ;;  %v3615_v30 = vunpack.i.l.bf16 %v5354_v45 }
 0x573   :  { %v2500_v56 = vsel %vm280_vm3, %v3615_v30, %v3616_v51 }
 0x577   :  { %v3574_v25 = vpop.permute.xlu1 %3573  ;;  %v3569_v0 = vpop.permute.xlu0 %3568 }
 0x578   :  { %v3576_v28 = vunpack.i.h.bf16 %v3574_v25  ;;  %v3575_v39 = vunpack.i.l.bf16 %v3574_v25  ;;  %v3571_v52 = vunpack.i.h.bf16 %v3569_v0  ;;  %v3570_v62 = vunpack.i.l.bf16 %v3569_v0  ;;  %v3629_v50 = vpop.permute.xlu2 %3628 }
 0x579   :  { %v3631_v36 = vunpack.i.h.bf16 %v3629_v50  ;;  %v3630_v8 = vunpack.i.l.bf16 %v3629_v50 }
 0x57a   :  { %v2544_v21 = vsel %vm369_vm0, %v3575_v39, %v3576_v28  ;;  %v2668_v43 = vsel %vm644_vm5, %v3570_v62, %v3571_v52  ;;  %v2684_v5 = vsel %vm644_vm5, %v3571_v52, %v3570_v62  ;;  %v5350_v22 = vsel %vm369_vm0, %v3576_v28, %v3575_v39 }
 0x57b   :  { %2841 = vmatpush.msra.mxu0 %v2544_v21  ;;  %2870 = vmatpush.msra.mxu1 %v2668_v43  ;;  %v2622_v39 = vsel %vm555_vm7, %v3630_v8, %v3631_v36  ;;  %v2638_v52 = vsel %vm555_vm7, %v3631_v36, %v3630_v8 }
 0x57c   :  { %2957 = vmatpush.msra.mxu2 %v2684_v5 }
 0x57d   :  { %2871 = vmatpush.msra.mxu1 %v2667_v24 }
 0x57e   :  { %2958 = vmatpush.msra.mxu2 %v2683_v26 }
 0x57f   :  { %v5356_v38 = vpop.permute.xlu0 %3583  ;;  %v3589_v63 = vpop.permute.xlu1 %3588 }
 0x580   :  { %v3586_v34 = vunpack.i.h.bf16 %v5356_v38  ;;  %v3585_v29 = vunpack.i.l.bf16 %v5356_v38  ;;  %v3591_v33 = vunpack.i.h.bf16 %v3589_v63  ;;  %v3590_v20 = vunpack.i.l.bf16 %v3589_v63  ;;  %v5394_v18 = vpop.permute.xlu2 %3643 }
 0x581   :  { %v3646_v17 = vunpack.i.h.bf16 %v5394_v18  ;;  %v3645_v41 = vunpack.i.l.bf16 %v5394_v18  ;;  %v2747_v18 = vld [vmem:[%s5688_s4 + $0x10] sm:$0xff] }
 0x582   :  { %v2543_v42 = vsel %vm369_vm0, %v3585_v29, %v3586_v34  ;;  %v2666_v4 = vsel %vm644_vm5, %v3590_v20, %v3591_v33  ;;  %v2682_v55 = vsel %vm644_vm5, %v3591_v33, %v3590_v20 }
 0x583   :  { %2842 = vmatpush.msra.mxu0 %v2543_v42  ;;  %2872 = vmatpush.msra.mxu1 %v2666_v4  ;;  %v2497_v42 = vsel %vm280_vm3, %v3645_v41, %v3646_v17 }
 0x584   :  { %2959 = vmatpush.msra.mxu2 %v2682_v55 }
 0x585   :  { %2873 = vmatpush.msra.mxu1 %v2665_v40 }
 0x586   :  { %2960 = vmatpush.msra.mxu2 %v2681_v16 }
 0x587   :  { %v5369_v10 = vpop.permute.xlu0 %3593  ;;  %v5371_v1 = vpop.permute.xlu1 %3603 }
 0x588   :  { %v3596_v12 = vunpack.i.h.bf16 %v5369_v10  ;;  %v3595_v37 = vunpack.i.l.bf16 %v5369_v10  ;;  %v3606_v19 = vunpack.i.h.bf16 %v5371_v1  ;;  %v3605_v32 = vunpack.i.l.bf16 %v5371_v1  ;;  %v3659_v33 = vpop.permute.xlu2 %3658  ;;  %v2749_v10 = vld [vmem:[%s5688_s4 + $0x20] sm:$0xff] }
 0x589   :  { %v2488_v1 = vsel %vm280_vm3, %v3616_v51, %v3615_v30 }
 0x58a   :  { %v2542_v13 = vsel %vm369_vm0, %v3595_v37, %v3596_v12  ;;  %v2541_v3 = vsel %vm369_vm0, %v3605_v32, %v3606_v19 }
 0x58b   :  { %2843 = vmatpush.msra.mxu0 %v2542_v13 }
 0x58d   :  { %2844 = vmatpush.msra.mxu0 %v2541_v3  ;;  %v3661_v3 = vunpack.i.h.bf16 %v3659_v33 }
 0x58f   :  { %v3609_v48 = vpop.permute.xlu0 %3608  ;;  %v3619_v23 = vpop.permute.xlu1 %3618  ;;  %2845 = vmatpush.msra.mxu0 %v2500_v56  ;;  %v3660_v56 = vunpack.i.l.bf16 %v3659_v33 }
 0x590   :  { %v3611_v57 = vunpack.i.h.bf16 %v3609_v48  ;;  %v3610_v2 = vunpack.i.l.bf16 %v3609_v48  ;;  %v3621_v53 = vunpack.i.h.bf16 %v3619_v23  ;;  %v3620_v54 = vunpack.i.l.bf16 %v3619_v23 }
 0x591   :  { %v2595_v36 = vsel %vm466_vm4, %v3661_v3, %v3660_v56 }
 0x592   :  { %v2624_v15 = vsel %vm555_vm7, %v3610_v2, %v3611_v57  ;;  %v2640_v25 = vsel %vm555_vm7, %v3611_v57, %v3610_v2  ;;  %v2623_v0 = vsel %vm555_vm7, %v3620_v54, %v3621_v53  ;;  %v2639_v28 = vsel %vm555_vm7, %v3621_v53, %v3620_v54  ;;  %v5431_v53 = vpop.permute.xlu2 %3673 }
 0x593   :  { %2874 = vmatpush.msra.mxu1 %v2624_v15  ;;  %2961 = vmatpush.msra.mxu2 %v2640_v25  ;;  %v2579_v54 = vsel %vm466_vm4, %v3660_v56, %v3661_v3 }
 0x595   :  { %2875 = vmatpush.msra.mxu1 %v2623_v0  ;;  %2962 = vmatpush.msra.mxu2 %v2639_v28 }
 0x597   :  { %v5402_v62 = vpop.permute.xlu0 %3623  ;;  %v5404_v21 = vpop.permute.xlu1 %3633  ;;  %2876 = vmatpush.msra.mxu1 %v2622_v39  ;;  %2963 = vmatpush.msra.mxu2 %v2638_v52  ;;  %v3676_v52 = vunpack.i.h.bf16 %v5431_v53 }
 0x598   :  { %v3626_v43 = vunpack.i.h.bf16 %v5402_v62  ;;  %v3625_v5 = vunpack.i.l.bf16 %v5402_v62  ;;  %v3636_v24 = vunpack.i.h.bf16 %v5404_v21  ;;  %v3635_v26 = vunpack.i.l.bf16 %v5404_v21 }
 0x599   :  { %v2485_v21 = vsel %vm280_vm3, %v3646_v17, %v3645_v41 }
 0x59a   :  { %v2499_v63 = vsel %vm280_vm3, %v3625_v5, %v3626_v43  ;;  %v2498_v20 = vsel %vm280_vm3, %v3635_v26, %v3636_v24  ;;  %v5460_v3 = vpop.permute.xlu2 %3688  ;;  %v2486_v45 = vsel %vm280_vm3, %v3636_v24, %v3635_v26  ;;  %v2752_v24 = vld [vmem:[%s5688_s4 + $0x38] sm:$0xff] }
 0x59b   :  { %2846 = vmatpush.msra.mxu0 %v2499_v63  ;;  %v3675_v63 = vunpack.i.l.bf16 %v5431_v53  ;;  %v2750_v53 = vld [vmem:[%s5688_s4 + $0x28] sm:$0xff] }
 0x59d   :  { %2847 = vmatpush.msra.mxu0 %v2498_v20 }
 0x59f   :  { %v3639_v4 = vpop.permute.xlu0 %3638  ;;  %v3649_v55 = vpop.permute.xlu1 %3648  ;;  %2848 = vmatpush.msra.mxu0 %v2497_v42  ;;  %v2454_v42 = vsel %vm191_vm1, %v3675_v63, %v3676_v52 }
 0x5a0   :  { %v3641_v40 = vunpack.i.h.bf16 %v3639_v4  ;;  %v3640_v16 = vunpack.i.l.bf16 %v3639_v4  ;;  %v3651_v50 = vunpack.i.h.bf16 %v3649_v55  ;;  %v3650_v13 = vunpack.i.l.bf16 %v3649_v55 }
 0x5a2   :  { %v2621_v48 = vsel %vm555_vm7, %v3640_v16, %v3641_v40  ;;  %v2637_v23 = vsel %vm555_vm7, %v3641_v40, %v3640_v16  ;;  %v2580_v57 = vsel %vm466_vm4, %v3650_v13, %v3651_v50  ;;  %v2596_v2 = vsel %vm466_vm4, %v3651_v50, %v3650_v13 }
 0x5a3   :  { %2877 = vmatpush.msra.mxu1 %v2621_v48  ;;  %2964 = vmatpush.msra.mxu2 %v2637_v23 }
 0x5a5   :  { %2878 = vmatpush.msra.mxu1 %v2580_v57  ;;  %2965 = vmatpush.msra.mxu2 %v2596_v2 }
 0x5a7   :  { %v5435_v8 = vpop.permute.xlu0 %3653  ;;  %v5437_v15 = vpop.permute.xlu1 %3663  ;;  %2879 = vmatpush.msra.mxu1 %v2579_v54  ;;  %2966 = vmatpush.msra.mxu2 %v2595_v36  ;;  %v3691_v36 = vunpack.i.h.bf16 %v5460_v3 }
 0x5a8   :  { %v3656_v25 = vunpack.i.h.bf16 %v5435_v8  ;;  %v3655_v0 = vunpack.i.l.bf16 %v5435_v8  ;;  %v3666_v28 = vunpack.i.h.bf16 %v5437_v15  ;;  %v3665_v39 = vunpack.i.l.bf16 %v5437_v15  ;;  %v2755_v15 = vld [vmem:[%s5688_s4 + $0x50] sm:$0xff] }
 0x5a9   :  { %v2442_v8 = vsel %vm191_vm1, %v3676_v52, %v3675_v63  ;;  %v2754_v63 = vld [vmem:[%s5688_s4 + $0x48] sm:$0xff] }
 0x5aa   :  { %v2456_v33 = vsel %vm191_vm1, %v3655_v0, %v3656_v25  ;;  %v2455_v20 = vsel %vm191_vm1, %v3665_v39, %v3666_v28  ;;  %v2444_v17 = vsel %vm191_vm1, %v3656_v25, %v3655_v0  ;;  %v2751_v25 = vld [vmem:[%s5688_s4 + $0x30] sm:$0xff] }
 0x5ab   :  { %2849 = vmatpush.msra.mxu0 %v2456_v33  ;;  %v3690_v33 = vunpack.i.l.bf16 %v5460_v3 }
 0x5ad   :  { %2850 = vmatpush.msra.mxu0 %v2455_v20 }
 0x5af   :  { %v3669_v4 = vpop.permute.xlu0 %3668  ;;  %v3679_v55 = vpop.permute.xlu1 %3678  ;;  %2851 = vmatpush.msra.mxu0 %v2454_v42 }
 0x5b0   :  { %v3671_v40 = vunpack.i.h.bf16 %v3669_v4  ;;  %v3670_v16 = vunpack.i.l.bf16 %v3669_v4  ;;  %v3681_v50 = vunpack.i.h.bf16 %v3679_v55  ;;  %v3680_v13 = vunpack.i.l.bf16 %v3679_v55 }
 0x5b2   :  { %v2578_v56 = vsel %vm466_vm4, %v3670_v16, %v3671_v40  ;;  %v2594_v48 = vsel %vm466_vm4, %v3671_v40, %v3670_v16  ;;  %v2577_v23 = vsel %vm466_vm4, %v3680_v13, %v3681_v50  ;;  %v2593_v57 = vsel %vm466_vm4, %v3681_v50, %v3680_v13 }
 0x5b3   :  { %2880 = vmatpush.msra.mxu1 %v2578_v56  ;;  %2967 = vmatpush.msra.mxu2 %v2594_v48 }
 0x5b5   :  { %2881 = vmatpush.msra.mxu1 %v2577_v23  ;;  %2968 = vmatpush.msra.mxu2 %v2593_v57 }
 0x5b7   :  { %v5466_v2 = vpop.permute.xlu0 %3683  ;;  %v5468_v54 = vpop.permute.xlu1 %3693  ;;  %2882 = vmatpush.msra.mxu1 %v5284_v59  ;;  %2969 = vmatpush.msra.mxu2 %v5288_v27 }
 0x5b8   :  { %v3686_v20 = vunpack.i.h.bf16 %v5466_v2  ;;  %v3685_v42 = vunpack.i.l.bf16 %v5466_v2  ;;  %v3696_v4 = vunpack.i.h.bf16 %v5468_v54  ;;  %v3695_v55 = vunpack.i.l.bf16 %v5468_v54  ;;  %v5485_v27 = vpop.permute.xlu2 %3703  ;;  %v2753_v2 = vld [vmem:[%s5688_s4 + $0x40] sm:$0xff]  ;;  %v2756_v54 = vld [vmem:[%s5688_s4 + $0x58] sm:$0xff] }
 0x5b9   :  { %2883 = vmatpush.msra.mxu1 %v5282_v11  ;;  %2970 = vmatpush.msra.mxu2 %v5286_v6  ;;  %v2746_v11 = vld [vmem:[%s5688_s4 + $0x8] sm:$0xff]  ;;  %v2412_v6 = vsel %vm102_vm2, %v3690_v33, %v3691_v36  ;;  %v3705_v40 = vunpack.i.l.bf16 %v5485_v27 }
 0x5ba   :  { %v2453_v59 = vsel %vm191_vm1, %v3685_v42, %v3686_v20  ;;  %v2441_v0 = vsel %vm191_vm1, %v3686_v20, %v3685_v42 }
 0x5bb   :  { %2852 = vmatpush.msra.mxu0 %v2453_v59  ;;  %2884 = vmatpush.msra.mxu1 %v5303_v49  ;;  %v2411_v49 = vsel %vm102_vm2, %v3695_v55, %v3696_v4  ;;  %v2487_v59 = vsel %vm280_vm3, %v3626_v43, %v3625_v5  ;;  %v2748_v43 = vld [vmem:[%s5688_s4 + $0x18] sm:$0xff] }
 0x5bc   :  { %2971 = vmatpush.msra.mxu2 %v5299_v44  ;;  %v3706_v44 = vunpack.i.h.bf16 %v5485_v27 }
 0x5bd   :  { %2853 = vmatpush.msra.mxu0 %v2412_v6  ;;  %2885 = vmatpush.msra.mxu1 %v5305_v31 }
 0x5be   :  { %2972 = vmatpush.msra.mxu2 %v5301_v58  ;;  %2886 = vmatmul.f32.vlgmr.msra.gmra.mxu1 %v2746_v11  ;;  %v2531_v58 = vsel %vm369_vm0, %v3586_v34, %v3585_v29  ;;  %v5530_v29 = vld [vmem:[%s5688_s4] sm:$0xff]  ;;  %v2397_v3 = vsel %vm102_vm2, %v3706_v44, %v3705_v40 }
 0x5bf   :  { %2928 = vmatpush.msrb.mxu1 %v5350_v22  ;;  %v5507_v16 = vpop.permute.xlu0 %3698  ;;  %v3709_v50 = vpop.permute.xlu1 %3708  ;;  %2854 = vmatpush.msra.mxu0 %v2411_v49  ;;  %v2530_v22 = vsel %vm369_vm0, %v3596_v12, %v3595_v37  ;;  %v2529_v12 = vsel %vm369_vm0, %v3606_v19, %v3605_v32  ;;  %v2409_v37 = vsel %vm102_vm2, %v3705_v40, %v3706_v44 }
 0x5c0   :  { %v3701_v31 = vunpack.i.h.bf16 %v5507_v16  ;;  %v3700_v13 = vunpack.i.l.bf16 %v5507_v16  ;;  %v3711_v56 = vunpack.i.h.bf16 %v3709_v50  ;;  %v3710_v48 = vunpack.i.l.bf16 %v3709_v50  ;;  %2973 = vmatmul.f32.vlgmr.msra.gmra.mxu2 %v2746_v11  ;;  %v3719_v23 = vpop.permute.xlu2 %3718 }
 0x5c1   :  { %2929 = vmatpush.msrb.mxu1 %v2531_v58  ;;  %v3721_v11 = vunpack.i.h.bf16 %v3719_v23  ;;  %v3720_v6 = vunpack.i.l.bf16 %v3719_v23 }
 0x5c2   :  { %v2410_v38 = vsel %vm102_vm2, %v3700_v13, %v3701_v31  ;;  %v2728_v34 = vsel %vm733_vm6, %v3711_v56, %v3710_v48  ;;  %v2712_v57 = vsel %vm733_vm6, %v3710_v48, %v3711_v56  ;;  %v2443_v48 = vsel %vm191_vm1, %v3666_v28, %v3665_v39 }
 0x5c3   :  { %2930 = vmatpush.msrb.mxu1 %v2530_v22  ;;  %2855 = vmatpush.msra.mxu0 %v2410_v38  ;;  %v2710_v5 = vsel %vm733_vm6, %v3720_v6, %v3721_v11  ;;  %v2726_v26 = vsel %vm733_vm6, %v3721_v11, %v3720_v6  ;;  %v2400_v28 = vsel %vm102_vm2, %v3691_v36, %v3690_v33 }
 0x5c4   :  { %2998 = vmatpush.msra.mxu3 %v2728_v34  ;;  %v2399_v39 = vsel %vm102_vm2, %v3696_v4, %v3695_v55  ;;  %v2398_v52 = vsel %vm102_vm2, %v3701_v31, %v3700_v13 }
 0x5c5   :  { %2931 = vmatpush.msrb.mxu1 %v2529_v12  ;;  %2856 = vmatpush.msra.mxu0 %v2409_v37 }
 0x5c6   :  { %2857 = vmatmul.f32.vlgmr.msra.gmra.mxu0 %v5530_v29  ;;  %2889 = vmatmul.f32.gmra.mxu1 %v2749_v10 }
 0x5c7   :  { %2911 = vmatpush.msrb.mxu0 %v2712_v57  ;;  %2932 = vmatpush.msrb.mxu1 %v2488_v1  ;;  %v3714_v19 = vpop.permute.xlu0 %3713  ;;  %v3724_v32 = vpop.permute.xlu1 %3723 }
 0x5c8   :  { %v3716_v49 = vunpack.i.h.bf16 %v3714_v19  ;;  %v3715_v50 = vunpack.i.l.bf16 %v3714_v19  ;;  %2976 = vmatmul.f32.gmra.mxu2 %v2749_v10  ;;  %v3726_v51 = vunpack.i.h.bf16 %v3724_v32  ;;  %v3725_v30 = vunpack.i.l.bf16 %v3724_v32 }
 0x5c9   :  { %2933 = vmatpush.msrb.mxu1 %v2487_v59 }
 0x5ca   :  { %v2711_v58 = vsel %vm733_vm6, %v3715_v50, %v3716_v49  ;;  %v2727_v62 = vsel %vm733_vm6, %v3716_v49, %v3715_v50  ;;  %v2709_v56 = vsel %vm733_vm6, %v3725_v30, %v3726_v51  ;;  %v2725_v41 = vsel %vm733_vm6, %v3726_v51, %v3725_v30 }
 0x5cb   :  { %2934 = vmatpush.msrb.mxu1 %v2486_v45  ;;  %2912 = vmatpush.msrb.mxu0 %v2711_v58 }
 0x5cc   :  { %2999 = vmatpush.msra.mxu3 %v2727_v62 }
 0x5cd   :  { %2935 = vmatpush.msrb.mxu1 %v2485_v21  ;;  %2913 = vmatpush.msrb.mxu0 %v2710_v5 }
 0x5ce   :  { %3000 = vmatpush.msra.mxu3 %v2726_v26  ;;  %2860 = vmatmul.f32.gmra.mxu0 %v2748_v43 }
 0x5cf   :  { %2892 = vmatmul.f32.gmra.mxu1 %v2752_v24  ;;  %2914 = vmatpush.msrb.mxu0 %v2709_v56 }
 0x5d0   :  { %2936 = vmatpush.msrb.mxu1 %v2444_v17  ;;  %3001 = vmatpush.msra.mxu3 %v2725_v41 }
 0x5d1   :  { %3063 = vmatmul.msk.f32.vlgmr.msra.gmra.mxu3 %vm1742_vm9, %v2747_v18  ;;  %2979 = vmatmul.f32.gmra.mxu2 %v2752_v24 }
 0x5d2   :  { %2937 = vmatpush.msrb.mxu1 %v2443_v48 }
 0x5d4   :  { %2938 = vmatpush.msrb.mxu1 %v2442_v8 }
 0x5d6   :  { %2939 = vmatpush.msrb.mxu1 %v2441_v0  ;;  %2863 = vmatmul.f32.gmra.mxu0 %v2751_v25 }
 0x5d7   :  { %2895 = vmatmul.f32.gmra.mxu1 %v2755_v15 }
 0x5d8   :  { %2940 = vmatpush.msrb.mxu1 %v2400_v28 }
 0x5d9   :  { %3064 = vmatmul.msk.f32.gmra.mxu3 %vm1742_vm9, %v2750_v53  ;;  %2982 = vmatmul.f32.gmra.mxu2 %v2755_v15 }
 0x5da   :  { %2941 = vmatpush.msrb.mxu1 %v2399_v39 }
 0x5dc   :  { %2942 = vmatpush.msrb.mxu1 %v2398_v52 }
 0x5de   :  { %2943 = vmatpush.msrb.mxu1 %v2397_v3  ;;  %2866 = vmatmul.f32.gmra.mxu0 %v2754_v63 }
 0x5df   :  { %2944 = vmatmul.f32.vlgmr.msrb.gmra.mxu1 %v5530_v29 }
 0x5e1   :  { %3065 = vmatmul.msk.f32.gmra.mxu3 %vm1742_vm9, %v2753_v2 }
 0x5e6   :  { %3059 = vmatmul.msk.f32.vlgmr.msrb.gmra.mxu0 %vm1742_vm9, %v2747_v18 }
 0x5e7   :  { %2947 = vmatmul.f32.gmra.mxu1 %v2748_v43 }
 0x5e9   :  { %3066 = vmatmul.msk.f32.gmra.mxu3 %vm1742_vm9, %v2756_v54 }
 0x5ee   :  { %3060 = vmatmul.msk.f32.gmra.mxu0 %vm1742_vm9, %v2750_v53 }
 0x5ef   :  { %2950 = vmatmul.f32.gmra.mxu1 %v2751_v25 }
 0x5f6   :  { %3061 = vmatmul.msk.f32.gmra.mxu0 %vm1742_vm9, %v2753_v2 }
 0x5f7   :  { %2953 = vmatmul.f32.gmra.mxu1 %v2754_v63 }
 0x5fe   :  { %3062 = vmatmul.msk.f32.gmra.mxu0 %vm1742_vm9, %v2756_v54 }
 0x63b   :  { %v2887_v36 = vpop.f32.mrf.mxu1 }
 0x643   :  { %v2858_v33 = vpop.f32.mrf.mxu0  ;;  %v2890_v20 = vpop.f32.mrf.mxu1 }
 0x644   :  { %v2974_v44 = vpop.f32.mrf.mxu2  ;;  %v2888_v10 = vadd.f32 %v2887_v36, %v2858_v33 }
 0x64b   :  { %v2861_v42 = vpop.f32.mrf.mxu0 }
 0x64c   :  { %v2893_v4 = vpop.f32.mrf.mxu1  ;;  %v2977_v22 = vpop.f32.mrf.mxu2 }
 0x653   :  { %v2864_v55 = vpop.f32.mrf.mxu0 }
 0x654   :  { %v2896_v27 = vpop.f32.mrf.mxu1  ;;  %v3003_v40 = vpop.f32.mrf.mxu3 }
 0x655   :  { %v2980_v32 = vpop.f32.mrf.mxu2 }
 0x65b   :  { %v2867_v16 = vpop.f32.mrf.mxu0 }
 0x65c   :  { %v2945_v31 = vpop.f32.mrf.mxu1  ;;  %v3006_v34 = vpop.f32.mrf.mxu3  ;;  %v2897_v56 = vadd.f32 %v2896_v27, %v2867_v16 }
 0x65d   :  { %v2975_v13 = vadd.f32 %v2974_v44, %v2945_v31  ;;  %v2983_v58 = vpop.f32.mrf.mxu2 }
 0x65f   :  { %v3004_v38 = vadd.f32 %v3003_v40, %v2975_v13 }
 0x661   :  { %v3016_v29 = vadd.f32 %v3004_v38, %v4684_v60  ;;  %v2891_v60 = vadd.f32 %v2890_v20, %v2861_v42 }
 0x663   :  { %3024 = vst [vmem:[%s5689_s8 + $0x8] sm:$0xff] %v3016_v29  ;;  %v2916_v12 = vpop.f32.mrf.mxu0 }
 0x664   :  { %v2917_v37 = vadd.f32 %v2916_v12, %v2888_v10  ;;  %v2948_v23 = vpop.f32.mrf.mxu1  ;;  %v3009_v11 = vpop.f32.mrf.mxu3 }
 0x665   :  { %v2978_v57 = vadd.f32 %v2977_v22, %v2948_v23 }
 0x666   :  { %v3015_v1 = vadd.f32 %v2917_v37, %v4681_v35 }
 0x667   :  { %v3007_v19 = vadd.f32 %v3006_v34, %v2978_v57 }
 0x668   :  { %3023 = vst [vmem:[%s5689_s8] sm:$0xff] %v3015_v1 }
 0x669   :  { %v3018_v59 = vadd.f32 %v3007_v19, %v4698_v46  ;;  %v2894_v46 = vadd.f32 %v2893_v4, %v2864_v55 }
 0x66b   :  { %3026 = vst [vmem:[%s5689_s8 + $0x18] sm:$0xff] %v3018_v59  ;;  %v2919_v6 = vpop.f32.mrf.mxu0 }
 0x66c   :  { %v2920_v49 = vadd.f32 %v2919_v6, %v2891_v60  ;;  %v2951_v50 = vpop.f32.mrf.mxu1  ;;  %v3012_v5 = vpop.f32.mrf.mxu3 }
 0x66d   :  { %v2981_v45 = vadd.f32 %v2980_v32, %v2951_v50 }
 0x66e   :  { %v3017_v35 = vadd.f32 %v2920_v49, %v4695_v7 }
 0x66f   :  { %v3010_v51 = vadd.f32 %v3009_v11, %v2981_v45 }
 0x670   :  { %3025 = vst [vmem:[%s5689_s8 + $0x10] sm:$0xff] %v3017_v35 }
 0x671   :  { %v3020_v30 = vadd.f32 %v3010_v51, %v4711_v14 }
 0x673   :  { %3028 = vst [vmem:[%s5689_s8 + $0x28] sm:$0xff] %v3020_v30  ;;  %v2922_v62 = vpop.f32.mrf.mxu0 }
 0x674   :  { %v2923_v43 = vadd.f32 %v2922_v62, %v2894_v46  ;;  %v2954_v21 = vpop.f32.mrf.mxu1 }
 0x675   :  { %v2984_v24 = vadd.f32 %v2983_v58, %v2954_v21 }
 0x676   :  { %v3019_v7 = vadd.f32 %v2923_v43, %v4708_v47 }
 0x677   :  { %v3013_v26 = vadd.f32 %v3012_v5, %v2984_v24 }
 0x678   :  { %3027 = vst [vmem:[%s5689_s8 + $0x20] sm:$0xff] %v3019_v7 }
 0x679   :  { %v3022_v14 = vadd.f32 %v3013_v26, %v4731_v9 }
 0x67b   :  { %3030 = vst [vmem:[%s5689_s8 + $0x38] sm:$0xff] %v3022_v14  ;;  %v2925_v18 = vpop.f32.mrf.mxu0 }
 0x67c   :  { %v2926_v17 = vadd.f32 %v2925_v18, %v2897_v56 }
 0x67e   :  { %v3021_v41 = vadd.f32 %v2926_v17, %v4734_v61 }
 0x680   :  { %3029 = vst [vmem:[%s5689_s8 + $0x30] sm:$0xff] %v3021_v41 }

</bundles_post_ra>
